<compile_context>
chip_gen: v6e
topology: v6e:2x2x1
jax: 0.10.0
libtpu: 0.0.40
codegen_flags: <defaults>
</compile_context>

<pallas_src>
import math
import functools

import jax
import jax.numpy as jnp
from jax.experimental import pallas as pl
from jax.experimental.pallas import tpu as pltpu


def _learnable_attention_kernel(x_ref, wqkv_ref, bqkv_ref, wp_ref, bp_ref,
                                o_ref, y_ref, *, n_head):
    """One grid step = `batch_tile` batch elements.

    x_ref    : (Bt, T, C)   wqkv_ref : (C, 3C)   bqkv_ref : (1, 3C) f32
    wp_ref   : (C, C)       bp_ref   : (1, C) f32
    o_ref    : (Bt, T, C)   y_ref    : (Bt, T, C) compute-dtype VMEM scratch
    """
    Bt, T, C = x_ref.shape
    D = C // n_head
    cdt = x_ref.dtype                              # compute dtype (bf16 default)

    # ---- fused QKV projection: M = Bt*T rows, N = 3C cols, one MXU pass ----
    # (1/sqrt(D) already folded into the query columns / bias by the wrapper.)
    x2 = x_ref[...].reshape(Bt * T, C)
    qkv = (jnp.dot(x2, wqkv_ref[...], preferred_element_type=jnp.float32)
           + bqkv_ref[...])                        # (Bt*T, 3C), f32 accumulation

    q3 = qkv[:, 0 * C:1 * C].astype(cdt).reshape(Bt, T, C)
    k3 = qkv[:, 1 * C:2 * C].astype(cdt).reshape(Bt, T, C)
    v3 = qkv[:, 2 * C:3 * C].astype(cdt).reshape(Bt, T, C)

    # NOTE: the module's learnable mask is a (1,1,1,1) scalar added uniformly to
    # every score before softmax; softmax is shift-invariant, so the add has no
    # effect on the forward output and is elided here.
    # TODO(synk): if the mask ever becomes non-scalar (e.g. (1,1,T,T)), add it
    #             back to `s` below before the max-subtraction.

    # ---- per-head attention; batched over Bt via 3-D einsum ----
    for h in range(n_head):                        # static unroll over heads
        sl = slice(h * D, (h + 1) * D)
        qh = q3[:, :, sl]                          # (Bt, T, D)
        kh = k3[:, :, sl]
        vh = v3[:, :, sl]

        # contraction on last dims: no explicit K transpose through the XLU
        s = jnp.einsum('bqd,bkd->bqk', qh, kh,
                       preferred_element_type=jnp.float32)      # (Bt, T, T) f32
        s = s - jnp.max(s, axis=-1, keepdims=True)              # stable softmax
        e = jnp.exp(s)
        denom = jnp.sum(e, axis=-1, keepdims=True)
        p = e * pl.reciprocal(denom, approx=False)
        # attn_drop: identity (eval mode)
        yh = jnp.einsum('bqk,bkd->bqd', p.astype(cdt), vh,
                        preferred_element_type=jnp.float32)     # (Bt, T, D) f32
        y_ref[:, :, sl] = yh.astype(y_ref.dtype)   # slab into compute-dtype scratch

    # ---- output projection; resid_drop: identity (eval mode) ----
    y2 = y_ref[...].reshape(Bt * T, C)
    out = (jnp.dot(y2, wp_ref[...], preferred_element_type=jnp.float32)
           + bp_ref[...])
    o_ref[...] = out.reshape(Bt, T, C).astype(o_ref.dtype)


def _tpu_info():
    """(has_two_tensorcores, vmem_capacity_bytes) for the local TPU generation."""
    two_tc = False
    vmem_cap = 64 * 1024 * 1024          # conservative fallback (v7x per-TC)
    try:
        kind = jax.devices()[0].device_kind.lower()
        two_tc = ("v7" in kind) or ("7x" in kind)
    except Exception:
        pass
    try:
        vmem_cap = int(pltpu.get_tpu_info().vmem_capacity_bytes)
    except Exception:
        pass
    return two_tc, vmem_cap


def _pick_batch_tile(B, T, two_tc):
    divisors = [d for d in range(1, B + 1) if B % d == 0]
    if two_tc and B >= 2:
        # keep >= 2 grid steps so both v7x TensorCores get work
        divisors = [d for d in divisors if B // d >= 2]
    target_rows = 256                     # fill the 256-row MXU feed on v6e/v7x
    for d in divisors:
        if d * T >= target_rows:
            return d
    return divisors[-1]


def learnable_attention(x, params, n_head, *, batch_tile=None,
                        compute_dtype=jnp.bfloat16):
    """x: (B, T, C).  params: torch-Linear-style weights + 'mask' (1,1,1,1)."""
    B, T, C = x.shape
    assert C % n_head == 0
    D = C // n_head

    if compute_dtype is None:
        compute_dtype = x.dtype
    dt = jnp.dtype(compute_dtype)
    x = x.astype(dt)
    itm = dt.itemsize

    # Fold 1/sqrt(D) into the query weights/bias; torch stores (out, in).
    scale = 1.0 / math.sqrt(D)
    wqkv = jnp.concatenate(
        [params["wq"].T * scale, params["wk"].T, params["wv"].T], axis=1).astype(dt)
    bqkv = jnp.concatenate(
        [params["bq"] * scale, params["bk"], params["bv"]], axis=0
    ).reshape(1, 3 * C).astype(jnp.float32)
    wp = params["wp"].T.astype(dt)
    bp = params["bp"].reshape(1, C).astype(jnp.float32)
    # params["mask"] (scalar) is a no-op in the forward pass (softmax shift
    # invariance) and is intentionally not passed to the kernel.

    two_tc, vmem_cap = _tpu_info()

    if batch_tile is None:
        batch_tile = _pick_batch_tile(B, T, two_tc)

    def vmem_estimate(bt):
        tile_io = bt * T * C * itm                          # x or o tile
        weights = (3 * C * C + C * C) * itm + 4 * C * 4     # Wqkv+Wp, f32 biases
        scratch = bt * T * C * itm                          # y scratch
        work = bt * T * 3 * C * (4 + itm) + 3 * bt * T * T * 4
        return 4 * tile_io + 2 * weights + scratch + work

    # keep the per-step footprint well inside this generation's VMEM
    while batch_tile > 1 and vmem_estimate(batch_tile) > vmem_cap // 2:
        batch_tile -= 1
        while B % batch_tile != 0:
            batch_tile -= 1
    assert B % batch_tile == 0
    grid = (B // batch_tile,)

    vmem_est = vmem_estimate(batch_tile)
    vmem_limit = int(min(0.65 * vmem_cap, max(16 * 1024 * 1024, 2 * vmem_est)))

    # Advisory cost estimate for the XLA scheduler around the custom call.
    flops = B * (8 * T * C * C + 4 * T * T * C)
    transcendentals = B * n_head * T * T
    bytes_accessed = (2 * B * T * C) * itm + (wqkv.size + wp.size) * itm \
        + (bqkv.size + bp.size) * 4
    cost = pl.CostEstimate(flops=flops, transcendentals=transcendentals,
                           bytes_accessed=int(bytes_accessed))

    kernel = functools.partial(_learnable_attention_kernel, n_head=n_head)

    return pl.pallas_call(
        kernel,
        out_shape=jax.ShapeDtypeStruct((B, T, C), dt),
        grid_spec=pltpu.PrefetchScalarGridSpec(
            num_scalar_prefetch=0,
            grid=grid,
            in_specs=[
                pl.BlockSpec((batch_tile, T, C), lambda b: (b, 0, 0)),   # x
                pl.BlockSpec((C, 3 * C), lambda b: (0, 0)),              # Wqkv
                pl.BlockSpec((1, 3 * C), lambda b: (0, 0)),              # bqkv
                pl.BlockSpec((C, C), lambda b: (0, 0)),                  # Wp
                pl.BlockSpec((1, C), lambda b: (0, 0)),                  # bp
            ],
            out_specs=pl.BlockSpec((batch_tile, T, C), lambda b: (b, 0, 0)),
            scratch_shapes=[pltpu.VMEM((batch_tile, T, C), dt)],
        ),
        compiler_params=pltpu.CompilerParams(
            dimension_semantics=("parallel",),
            vmem_limit_bytes=vmem_limit),
        cost_estimate=cost,
    )(x, wqkv, bqkv, wp, bp)


def _reference(x, params, n_head):
    """Pure-JAX reference mirroring the PyTorch forward (eval mode), true f32."""
    B, T, C = x.shape
    D = C // n_head
    hp = jax.lax.Precision.HIGHEST

    def lin(y, w, b):
        return jnp.einsum('btc,oc->bto', y, w, precision=hp) + b

    q = lin(x, params["wq"], params["bq"]).reshape(B, T, n_head, D).transpose(0, 2, 1, 3)
    k = lin(x, params["wk"], params["bk"]).reshape(B, T, n_head, D).transpose(0, 2, 1, 3)
    v = lin(x, params["wv"], params["bv"]).reshape(B, T, n_head, D).transpose(0, 2, 1, 3)
    att = jnp.einsum("bhqd,bhkd->bhqk", q, k, precision=hp) / math.sqrt(D)
    att = att + params["mask"].reshape(())          # learnable scalar mask
    att = jax.nn.softmax(att, axis=-1)
    y = jnp.einsum("bhqk,bhkd->bhqd", att, v, precision=hp)
    y = y.transpose(0, 2, 1, 3).reshape(B, T, C)
    return lin(y, params["wp"], params["bp"])


if __name__ == "__main__":
    # Shapes consistent with Transfuser's transformer2 (n_embd=128) and a
    # (n_views+1)*seq_len*vert_anchors*horz_anchors = 128 token sequence.
    B, T, C = 2, 128, 128
    n_head = 4

    key = jax.random.PRNGKey(0)
    keys = jax.random.split(key, 9)
    x = jax.random.normal(keys[0], (B, T, C), dtype=jnp.float32)

    s = 1.0 / math.sqrt(C)
    params = {
        "wq": jax.random.uniform(keys[1], (C, C), jnp.float32, -s, s),
        "bq": jax.random.uniform(keys[2], (C,), jnp.float32, -s, s),
        "wk": jax.random.uniform(keys[3], (C, C), jnp.float32, -s, s),
        "bk": jax.random.uniform(keys[4], (C,), jnp.float32, -s, s),
        "wv": jax.random.uniform(keys[5], (C, C), jnp.float32, -s, s),
        "bv": jax.random.uniform(keys[6], (C,), jnp.float32, -s, s),
        "wp": jax.random.uniform(keys[7], (C, C), jnp.float32, -s, s),
        "bp": jax.random.uniform(keys[8], (C,), jnp.float32, -s, s),
        "mask": jnp.full((1, 1, 1, 1), 0.05, dtype=jnp.float32),
    }

    ref = _reference(x, params, n_head)

    # Default (bfloat16 operands, f32 accumulation) path.
    out_bf16 = learnable_attention(x, params, n_head)
    out_bf16 = jax.block_until_ready(out_bf16)
    assert out_bf16.shape == (B, T, C)
    assert jnp.allclose(out_bf16.astype(jnp.float32), ref, atol=5e-2, rtol=5e-2), \
        "bf16 path mismatch vs reference"

    # f32 compute path (tighter structural check).
    out_f32 = learnable_attention(x, params, n_head, compute_dtype=jnp.float32)
    out_f32 = jax.block_until_ready(out_f32)
    assert out_f32.shape == (B, T, C)
    assert jnp.allclose(out_f32, ref, atol=3e-3, rtol=3e-3), \
        "f32 path mismatch vs reference"

    print("KERNEL_OK")
</pallas_src>

<mosaic_0001>
module attributes {stable_mosaic.version = 11 : i64} {
  func.func @_learnable_attention_kernel(%arg0: i32, %arg1: memref<2x128x128xbf16, #tpu.memory_space<vmem>>, %arg2: memref<128x384xbf16, #tpu.memory_space<vmem>>, %arg3: memref<1x384xf32, #tpu.memory_space<vmem>>, %arg4: memref<128x128xbf16, #tpu.memory_space<vmem>>, %arg5: memref<1x128xf32, #tpu.memory_space<vmem>>, %arg6: memref<2x128x128xbf16, #tpu.memory_space<vmem>>, %arg7: memref<2x128x128xbf16, #tpu.memory_space<vmem>>) attributes {dimension_semantics = [#tpu.dimension_semantics<parallel>], iteration_bounds = array<i64: 1>, scalar_prefetch = 0 : i64, scratch_operands = 1 : i64, tpu.core_type = #tpu.core_type<tc>, window_params = [{transform_indices = @transform_0, window_bounds = array<i64: 2, 128, 128>}, {pipeline_mode = #tpu.pipeline_mode<synchronous>, transform_indices = @transform_1, window_bounds = array<i64: 128, 384>}, {pipeline_mode = #tpu.pipeline_mode<synchronous>, transform_indices = @transform_2, window_bounds = array<i64: 1, 384>}, {pipeline_mode = #tpu.pipeline_mode<synchronous>, transform_indices = @transform_3, window_bounds = array<i64: 128, 128>}, {pipeline_mode = #tpu.pipeline_mode<synchronous>, transform_indices = @transform_4, window_bounds = array<i64: 1, 128>}, {transform_indices = @transform_5, window_bounds = array<i64: 2, 128, 128>}]} {
    %c0 = arith.constant 0 : index
    %c0_0 = arith.constant 0 : index
    %c0_1 = arith.constant 0 : index
    %0 = vector.load %arg1[%c0, %c0_0, %c0_1] : memref<2x128x128xbf16, #tpu.memory_space<vmem>>, vector<2x128x128xbf16>
    %1 = vector.shape_cast %0 : vector<2x128x128xbf16> to vector<256x128xbf16>
    %c0_2 = arith.constant 0 : index
    %c0_3 = arith.constant 0 : index
    %2 = vector.load %arg2[%c0_2, %c0_3] : memref<128x384xbf16, #tpu.memory_space<vmem>>, vector<128x384xbf16>
    %cst = arith.constant dense<0.000000e+00> : vector<256x384xf32>
    %3 = tpu.matmul %1, %2, %cst {dimension_numbers = #tpu.dot_dimension_numbers<[1], [0], [0], [1], [0, 0, 1, 1], [], []>} : vector<256x128xbf16>, vector<128x384xbf16>, vector<256x384xf32> -> vector<256x384xf32>
    %c0_4 = arith.constant 0 : index
    %c0_5 = arith.constant 0 : index
    %4 = vector.load %arg3[%c0_4, %c0_5] : memref<1x384xf32, #tpu.memory_space<vmem>>, vector<1x384xf32>
    %5 = vector.broadcast %4 : vector<1x384xf32> to vector<256x384xf32>
    %6 = arith.addf %3, %5 : vector<256x384xf32>
    %7 = vector.extract_strided_slice %6 {offsets = [0, 0], sizes = [256, 128], strides = [1, 1]} : vector<256x384xf32> to vector<256x128xf32>
    %8 = arith.truncf %7 : vector<256x128xf32> to vector<256x128xbf16>
    %9 = vector.shape_cast %8 : vector<256x128xbf16> to vector<2x128x128xbf16>
    %10 = vector.extract_strided_slice %6 {offsets = [0, 128], sizes = [256, 128], strides = [1, 1]} : vector<256x384xf32> to vector<256x128xf32>
    %11 = arith.truncf %10 : vector<256x128xf32> to vector<256x128xbf16>
    %12 = vector.shape_cast %11 : vector<256x128xbf16> to vector<2x128x128xbf16>
    %13 = vector.extract_strided_slice %6 {offsets = [0, 256], sizes = [256, 128], strides = [1, 1]} : vector<256x384xf32> to vector<256x128xf32>
    %14 = arith.truncf %13 : vector<256x128xf32> to vector<256x128xbf16>
    %15 = vector.shape_cast %14 : vector<256x128xbf16> to vector<2x128x128xbf16>
    %16 = vector.extract_strided_slice %9 {offsets = [0, 0, 0], sizes = [2, 128, 32], strides = [1, 1, 1]} : vector<2x128x128xbf16> to vector<2x128x32xbf16>
    %17 = vector.extract_strided_slice %12 {offsets = [0, 0, 0], sizes = [2, 128, 32], strides = [1, 1, 1]} : vector<2x128x128xbf16> to vector<2x128x32xbf16>
    %18 = vector.extract_strided_slice %15 {offsets = [0, 0, 0], sizes = [2, 128, 32], strides = [1, 1, 1]} : vector<2x128x128xbf16> to vector<2x128x32xbf16>
    "tpu.trace_start"() <{level = 10 : i32, message = "bqd,bkd->bqk"}> : () -> ()
    %cst_6 = arith.constant dense<0.000000e+00> : vector<2x128x128xf32>
    %19 = tpu.matmul %16, %17, %cst_6 {dimension_numbers = #tpu.dot_dimension_numbers<[2], [2], [1], [1], [0, 0, 0, 1, 1, 1], [0], [0]>} : vector<2x128x32xbf16>, vector<2x128x32xbf16>, vector<2x128x128xf32> -> vector<2x128x128xf32>
    "tpu.trace_stop"() : () -> ()
    %cst_7 = arith.constant dense<0xFF800000> : vector<2x128xf32>
    %20 = vector.multi_reduction <maximumf>, %19, %cst_7 [2] : vector<2x128x128xf32> to vector<2x128xf32>
    %21 = vector.shape_cast %20 : vector<2x128xf32> to vector<2x128x1xf32>
    %22 = vector.broadcast %21 : vector<2x128x1xf32> to vector<2x128x128xf32>
    %23 = arith.subf %19, %22 : vector<2x128x128xf32>
    %24 = math.exp %23 : vector<2x128x128xf32>
    %cst_8 = arith.constant dense<0.000000e+00> : vector<2x128xf32>
    %25 = vector.multi_reduction <add>, %24, %cst_8 [2] : vector<2x128x128xf32> to vector<2x128xf32>
    %26 = vector.shape_cast %25 : vector<2x128xf32> to vector<2x128x1xf32>
    %27 = tpu.reciprocal %26 : vector<2x128x1xf32> -> vector<2x128x1xf32>
    %28 = vector.broadcast %27 : vector<2x128x1xf32> to vector<2x128x128xf32>
    %29 = arith.mulf %24, %28 : vector<2x128x128xf32>
    %30 = arith.truncf %29 : vector<2x128x128xf32> to vector<2x128x128xbf16>
    "tpu.trace_start"() <{level = 10 : i32, message = "bqk,bkd->bqd"}> : () -> ()
    %cst_9 = arith.constant dense<0.000000e+00> : vector<2x128x32xf32>
    %31 = tpu.matmul %30, %18, %cst_9 {dimension_numbers = #tpu.dot_dimension_numbers<[2], [1], [1], [2], [0, 0, 0, 1, 1, 2], [0], [0]>} : vector<2x128x128xbf16>, vector<2x128x32xbf16>, vector<2x128x32xf32> -> vector<2x128x32xf32>
    "tpu.trace_stop"() : () -> ()
    %32 = arith.truncf %31 : vector<2x128x32xf32> to vector<2x128x32xbf16>
    %c0_10 = arith.constant 0 : index
    %c0_11 = arith.constant 0 : index
    %c0_12 = arith.constant 0 : index
    %33 = vector.load %arg7[%c0_10, %c0_11, %c0_12] : memref<2x128x128xbf16, #tpu.memory_space<vmem>>, vector<2x128x32xbf16>
    tpu.vector_store %arg7[%c0_10, %c0_11, %c0_12], %32 {strides = array<i32>} : memref<2x128x128xbf16, #tpu.memory_space<vmem>>, vector<2x128x32xbf16>,
    %34 = vector.extract_strided_slice %9 {offsets = [0, 0, 32], sizes = [2, 128, 32], strides = [1, 1, 1]} : vector<2x128x128xbf16> to vector<2x128x32xbf16>
    %35 = vector.extract_strided_slice %12 {offsets = [0, 0, 32], sizes = [2, 128, 32], strides = [1, 1, 1]} : vector<2x128x128xbf16> to vector<2x128x32xbf16>
    %36 = vector.extract_strided_slice %15 {offsets = [0, 0, 32], sizes = [2, 128, 32], strides = [1, 1, 1]} : vector<2x128x128xbf16> to vector<2x128x32xbf16>
    "tpu.trace_start"() <{level = 10 : i32, message = "bqd,bkd->bqk"}> : () -> ()
    %cst_13 = arith.constant dense<0.000000e+00> : vector<2x128x128xf32>
    %37 = tpu.matmul %34, %35, %cst_13 {dimension_numbers = #tpu.dot_dimension_numbers<[2], [2], [1], [1], [0, 0, 0, 1, 1, 1], [0], [0]>} : vector<2x128x32xbf16>, vector<2x128x32xbf16>, vector<2x128x128xf32> -> vector<2x128x128xf32>
    "tpu.trace_stop"() : () -> ()
    %cst_14 = arith.constant dense<0xFF800000> : vector<2x128xf32>
    %38 = vector.multi_reduction <maximumf>, %37, %cst_14 [2] : vector<2x128x128xf32> to vector<2x128xf32>
    %39 = vector.shape_cast %38 : vector<2x128xf32> to vector<2x128x1xf32>
    %40 = vector.broadcast %39 : vector<2x128x1xf32> to vector<2x128x128xf32>
    %41 = arith.subf %37, %40 : vector<2x128x128xf32>
    %42 = math.exp %41 : vector<2x128x128xf32>
    %cst_15 = arith.constant dense<0.000000e+00> : vector<2x128xf32>
    %43 = vector.multi_reduction <add>, %42, %cst_15 [2] : vector<2x128x128xf32> to vector<2x128xf32>
    %44 = vector.shape_cast %43 : vector<2x128xf32> to vector<2x128x1xf32>
    %45 = tpu.reciprocal %44 : vector<2x128x1xf32> -> vector<2x128x1xf32>
    %46 = vector.broadcast %45 : vector<2x128x1xf32> to vector<2x128x128xf32>
    %47 = arith.mulf %42, %46 : vector<2x128x128xf32>
    %48 = arith.truncf %47 : vector<2x128x128xf32> to vector<2x128x128xbf16>
    "tpu.trace_start"() <{level = 10 : i32, message = "bqk,bkd->bqd"}> : () -> ()
    %cst_16 = arith.constant dense<0.000000e+00> : vector<2x128x32xf32>
    %49 = tpu.matmul %48, %36, %cst_16 {dimension_numbers = #tpu.dot_dimension_numbers<[2], [1], [1], [2], [0, 0, 0, 1, 1, 2], [0], [0]>} : vector<2x128x128xbf16>, vector<2x128x32xbf16>, vector<2x128x32xf32> -> vector<2x128x32xf32>
    "tpu.trace_stop"() : () -> ()
    %50 = arith.truncf %49 : vector<2x128x32xf32> to vector<2x128x32xbf16>
    %c0_17 = arith.constant 0 : index
    %c0_18 = arith.constant 0 : index
    %c32 = arith.constant 32 : index
    %51 = vector.load %arg7[%c0_17, %c0_18, %c32] : memref<2x128x128xbf16, #tpu.memory_space<vmem>>, vector<2x128x32xbf16>
    tpu.vector_store %arg7[%c0_17, %c0_18, %c32], %50 {strides = array<i32>} : memref<2x128x128xbf16, #tpu.memory_space<vmem>>, vector<2x128x32xbf16>,
    %52 = vector.extract_strided_slice %9 {offsets = [0, 0, 64], sizes = [2, 128, 32], strides = [1, 1, 1]} : vector<2x128x128xbf16> to vector<2x128x32xbf16>
    %53 = vector.extract_strided_slice %12 {offsets = [0, 0, 64], sizes = [2, 128, 32], strides = [1, 1, 1]} : vector<2x128x128xbf16> to vector<2x128x32xbf16>
    %54 = vector.extract_strided_slice %15 {offsets = [0, 0, 64], sizes = [2, 128, 32], strides = [1, 1, 1]} : vector<2x128x128xbf16> to vector<2x128x32xbf16>
    "tpu.trace_start"() <{level = 10 : i32, message = "bqd,bkd->bqk"}> : () -> ()
    %cst_19 = arith.constant dense<0.000000e+00> : vector<2x128x128xf32>
    %55 = tpu.matmul %52, %53, %cst_19 {dimension_numbers = #tpu.dot_dimension_numbers<[2], [2], [1], [1], [0, 0, 0, 1, 1, 1], [0], [0]>} : vector<2x128x32xbf16>, vector<2x128x32xbf16>, vector<2x128x128xf32> -> vector<2x128x128xf32>
    "tpu.trace_stop"() : () -> ()
    %cst_20 = arith.constant dense<0xFF800000> : vector<2x128xf32>
    %56 = vector.multi_reduction <maximumf>, %55, %cst_20 [2] : vector<2x128x128xf32> to vector<2x128xf32>
    %57 = vector.shape_cast %56 : vector<2x128xf32> to vector<2x128x1xf32>
    %58 = vector.broadcast %57 : vector<2x128x1xf32> to vector<2x128x128xf32>
    %59 = arith.subf %55, %58 : vector<2x128x128xf32>
    %60 = math.exp %59 : vector<2x128x128xf32>
    %cst_21 = arith.constant dense<0.000000e+00> : vector<2x128xf32>
    %61 = vector.multi_reduction <add>, %60, %cst_21 [2] : vector<2x128x128xf32> to vector<2x128xf32>
    %62 = vector.shape_cast %61 : vector<2x128xf32> to vector<2x128x1xf32>
    %63 = tpu.reciprocal %62 : vector<2x128x1xf32> -> vector<2x128x1xf32>
    %64 = vector.broadcast %63 : vector<2x128x1xf32> to vector<2x128x128xf32>
    %65 = arith.mulf %60, %64 : vector<2x128x128xf32>
    %66 = arith.truncf %65 : vector<2x128x128xf32> to vector<2x128x128xbf16>
    "tpu.trace_start"() <{level = 10 : i32, message = "bqk,bkd->bqd"}> : () -> ()
    %cst_22 = arith.constant dense<0.000000e+00> : vector<2x128x32xf32>
    %67 = tpu.matmul %66, %54, %cst_22 {dimension_numbers = #tpu.dot_dimension_numbers<[2], [1], [1], [2], [0, 0, 0, 1, 1, 2], [0], [0]>} : vector<2x128x128xbf16>, vector<2x128x32xbf16>, vector<2x128x32xf32> -> vector<2x128x32xf32>
    "tpu.trace_stop"() : () -> ()
    %68 = arith.truncf %67 : vector<2x128x32xf32> to vector<2x128x32xbf16>
    %c0_23 = arith.constant 0 : index
    %c0_24 = arith.constant 0 : index
    %c64 = arith.constant 64 : index
    %69 = vector.load %arg7[%c0_23, %c0_24, %c64] : memref<2x128x128xbf16, #tpu.memory_space<vmem>>, vector<2x128x32xbf16>
    tpu.vector_store %arg7[%c0_23, %c0_24, %c64], %68 {strides = array<i32>} : memref<2x128x128xbf16, #tpu.memory_space<vmem>>, vector<2x128x32xbf16>,
    %70 = vector.extract_strided_slice %9 {offsets = [0, 0, 96], sizes = [2, 128, 32], strides = [1, 1, 1]} : vector<2x128x128xbf16> to vector<2x128x32xbf16>
    %71 = vector.extract_strided_slice %12 {offsets = [0, 0, 96], sizes = [2, 128, 32], strides = [1, 1, 1]} : vector<2x128x128xbf16> to vector<2x128x32xbf16>
    %72 = vector.extract_strided_slice %15 {offsets = [0, 0, 96], sizes = [2, 128, 32], strides = [1, 1, 1]} : vector<2x128x128xbf16> to vector<2x128x32xbf16>
    "tpu.trace_start"() <{level = 10 : i32, message = "bqd,bkd->bqk"}> : () -> ()
    %cst_25 = arith.constant dense<0.000000e+00> : vector<2x128x128xf32>
    %73 = tpu.matmul %70, %71, %cst_25 {dimension_numbers = #tpu.dot_dimension_numbers<[2], [2], [1], [1], [0, 0, 0, 1, 1, 1], [0], [0]>} : vector<2x128x32xbf16>, vector<2x128x32xbf16>, vector<2x128x128xf32> -> vector<2x128x128xf32>
    "tpu.trace_stop"() : () -> ()
    %cst_26 = arith.constant dense<0xFF800000> : vector<2x128xf32>
    %74 = vector.multi_reduction <maximumf>, %73, %cst_26 [2] : vector<2x128x128xf32> to vector<2x128xf32>
    %75 = vector.shape_cast %74 : vector<2x128xf32> to vector<2x128x1xf32>
    %76 = vector.broadcast %75 : vector<2x128x1xf32> to vector<2x128x128xf32>
    %77 = arith.subf %73, %76 : vector<2x128x128xf32>
    %78 = math.exp %77 : vector<2x128x128xf32>
    %cst_27 = arith.constant dense<0.000000e+00> : vector<2x128xf32>
    %79 = vector.multi_reduction <add>, %78, %cst_27 [2] : vector<2x128x128xf32> to vector<2x128xf32>
    %80 = vector.shape_cast %79 : vector<2x128xf32> to vector<2x128x1xf32>
    %81 = tpu.reciprocal %80 : vector<2x128x1xf32> -> vector<2x128x1xf32>
    %82 = vector.broadcast %81 : vector<2x128x1xf32> to vector<2x128x128xf32>
    %83 = arith.mulf %78, %82 : vector<2x128x128xf32>
    %84 = arith.truncf %83 : vector<2x128x128xf32> to vector<2x128x128xbf16>
    "tpu.trace_start"() <{level = 10 : i32, message = "bqk,bkd->bqd"}> : () -> ()
    %cst_28 = arith.constant dense<0.000000e+00> : vector<2x128x32xf32>
    %85 = tpu.matmul %84, %72, %cst_28 {dimension_numbers = #tpu.dot_dimension_numbers<[2], [1], [1], [2], [0, 0, 0, 1, 1, 2], [0], [0]>} : vector<2x128x128xbf16>, vector<2x128x32xbf16>, vector<2x128x32xf32> -> vector<2x128x32xf32>
    "tpu.trace_stop"() : () -> ()
    %86 = arith.truncf %85 : vector<2x128x32xf32> to vector<2x128x32xbf16>
    %c0_29 = arith.constant 0 : index
    %c0_30 = arith.constant 0 : index
    %c96 = arith.constant 96 : index
    %87 = vector.load %arg7[%c0_29, %c0_30, %c96] : memref<2x128x128xbf16, #tpu.memory_space<vmem>>, vector<2x128x32xbf16>
    tpu.vector_store %arg7[%c0_29, %c0_30, %c96], %86 {strides = array<i32>} : memref<2x128x128xbf16, #tpu.memory_space<vmem>>, vector<2x128x32xbf16>,
    %c0_31 = arith.constant 0 : index
    %c0_32 = arith.constant 0 : index
    %c0_33 = arith.constant 0 : index
    %88 = vector.load %arg7[%c0_31, %c0_32, %c0_33] : memref<2x128x128xbf16, #tpu.memory_space<vmem>>, vector<2x128x128xbf16>
    %89 = vector.shape_cast %88 : vector<2x128x128xbf16> to vector<256x128xbf16>
    %c0_34 = arith.constant 0 : index
    %c0_35 = arith.constant 0 : index
    %90 = vector.load %arg4[%c0_34, %c0_35] : memref<128x128xbf16, #tpu.memory_space<vmem>>, vector<128x128xbf16>
    %cst_36 = arith.constant dense<0.000000e+00> : vector<256x128xf32>
    %91 = tpu.matmul %89, %90, %cst_36 {dimension_numbers = #tpu.dot_dimension_numbers<[1], [0], [0], [1], [0, 0, 1, 1], [], []>} : vector<256x128xbf16>, vector<128x128xbf16>, vector<256x128xf32> -> vector<256x128xf32>
    %c0_37 = arith.constant 0 : index
    %c0_38 = arith.constant 0 : index
    %92 = vector.load %arg5[%c0_37, %c0_38] : memref<1x128xf32, #tpu.memory_space<vmem>>, vector<1x128xf32>
    %93 = vector.broadcast %92 : vector<1x128xf32> to vector<256x128xf32>
    %94 = arith.addf %91, %93 : vector<256x128xf32>
    %95 = vector.shape_cast %94 : vector<256x128xf32> to vector<2x128x128xf32>
    %96 = arith.truncf %95 : vector<2x128x128xf32> to vector<2x128x128xbf16>
    %c0_39 = arith.constant 0 : index
    %c0_40 = arith.constant 0 : index
    %c0_41 = arith.constant 0 : index
    %97 = vector.load %arg6[%c0_39, %c0_40, %c0_41] : memref<2x128x128xbf16, #tpu.memory_space<vmem>>, vector<2x128x128xbf16>
    tpu.vector_store %arg6[%c0_39, %c0_40, %c0_41], %96 {strides = array<i32>} : memref<2x128x128xbf16, #tpu.memory_space<vmem>>, vector<2x128x128xbf16>,
    return
  }
  func.func @transform_0(%arg0: i32) -> (i32, i32, i32) {
    %c0_i32 = arith.constant 0 : i32
    %c0_i32_0 = arith.constant 0 : i32
    %c0_i32_1 = arith.constant 0 : i32
    return %arg0, %c0_i32, %c0_i32_0 : i32, i32, i32
  }
  func.func @transform_1(%arg0: i32) -> (i32, i32) {
    %c0_i32 = arith.constant 0 : i32
    %c0_i32_0 = arith.constant 0 : i32
    %c0_i32_1 = arith.constant 0 : i32
    return %c0_i32, %c0_i32_0 : i32, i32
  }
  func.func @transform_2(%arg0: i32) -> (i32, i32) {
    %c0_i32 = arith.constant 0 : i32
    %c0_i32_0 = arith.constant 0 : i32
    %c0_i32_1 = arith.constant 0 : i32
    return %c0_i32, %c0_i32_0 : i32, i32
  }
  func.func @transform_3(%arg0: i32) -> (i32, i32) {
    %c0_i32 = arith.constant 0 : i32
    %c0_i32_0 = arith.constant 0 : i32
    %c0_i32_1 = arith.constant 0 : i32
    return %c0_i32, %c0_i32_0 : i32, i32
  }
  func.func @transform_4(%arg0: i32) -> (i32, i32) {
    %c0_i32 = arith.constant 0 : i32
    %c0_i32_0 = arith.constant 0 : i32
    %c0_i32_1 = arith.constant 0 : i32
    return %c0_i32, %c0_i32_0 : i32, i32
  }
  func.func @transform_5(%arg0: i32) -> (i32, i32, i32) {
    %c0_i32 = arith.constant 0 : i32
    %c0_i32_0 = arith.constant 0 : i32
    %c0_i32_1 = arith.constant 0 : i32
    return %arg0, %c0_i32, %c0_i32_0 : i32, i32, i32
  }
}

</mosaic_0001>

<bundles_post_ra>
// kernel: tpu_custom_call.1
= control target key start
LH: loop header
LB: loop body
LE: loop exit
PB: predicated region body
PF: predicated region fallthrough
CT: control target
= control target key end

     0   :  { %10 = vsyncpa [#allocation4], 0  ;;  %s10530_s0 = inlined_call_operand.hbm [shape: bf16[2,128,128], index: 0, kind: input, shape index: {}]   ;;  %s10531_s1 = inlined_call_operand.hbm [shape: bf16[128,384], index: 1, kind: input, shape index: {}]   ;;  %s10532_s2 = inlined_call_operand.vmem [shape: f32[1,384], index: 2, kind: input, shape index: {}]   ;;  %s10533_s3 = inlined_call_operand.hbm [shape: bf16[128,128], index: 3, kind: input, shape index: {}]   ;;  %s10534_s4 = inlined_call_operand.vmem [shape: f32[1,128], index: 4, kind: input, shape index: {}]   ;;  %s10535_s5 = inlined_call_operand.hbm [shape: bf16[2,128,128], index: 5, kind: output, shape index: {}]  }
   0x1   :  { %11 = vsyncpa [#allocation7], 0 }
   0x2   :  { %12 = vsyncpa [#allocation5], 0  ;;  %s7898_s18 = smov [#allocation6]  }
   0x3   :  { %s30_s19 = sshll.u32 %s7898_s18, 4  ;;  %s31_s19 = int_to_ptr.vmem [resolvable:$true] %s30_s19 }
   0x4   :  { %s7820_s20 = scalar_lea.vmem %s31_s19, 3072  ;;  %p7825_p1 = scmp.lt.s32.totalorder %s31_s19, %s31_s19 }
   0x5   :  { %p7821_p0 = scmp.ne.s32.totalorder %s31_s19, %s7820_s20  ;;  %p7826_p2 = scmp.lt.s32.totalorder %s7820_s20, %s7820_s20 }
   0x7   :  { %p7827_p3 = por %p7826_p2, %p7825_p1 }
   0x9   :  { %p7828_p4 = pnand %p7827_p3, %p7821_p0 }
   0xb   :  { %7831 = shalt.err (!%p7828_p4)
}
   0xc   :  { %s7899_s21 = smov 192   ;;  %s7900_s22 = smov 12  }
   0xd   :  { %36 = dma.hbm_to_vmem [thread:$0]  %s10531_s1, 3072, %s31_s19, [#allocation7], %s7899_s21, %s7899_s21, %s7900_s22  }
   0xe   :  { %s7901_s25 = smov [#allocation3]  }
   0xf   :  { %s18_s26 = sshll.u32 %s7901_s25, 4  ;;  %s19_s26 = int_to_ptr.vmem [resolvable:$true] %s18_s26 }
  0x10   :  { %s7840_s27 = scalar_lea.vmem %s19_s26, 2048  ;;  %p7845_p6 = scmp.lt.s32.totalorder %s19_s26, %s19_s26 }
  0x11   :  { %p7841_p5 = scmp.ne.s32.totalorder %s19_s26, %s7840_s27  ;;  %p7846_p7 = scmp.lt.s32.totalorder %s7840_s27, %s7840_s27 }
  0x13   :  { %p7847_p8 = por %p7846_p7, %p7845_p6 }
  0x15   :  { %p7848_p9 = pnand %p7847_p8, %p7841_p5 }
  0x17   :  { %7851 = shalt.err (!%p7848_p9)
}
  0x18   :  { %s7902_s28 = smov 64   ;;  %s7903_s29 = smov 4  }
  0x19   :  { %24 = dma.hbm_to_vmem [thread:$0]  %s10530_s0, 2048, %s19_s26, [#allocation4], %s7902_s28, %s7902_s28, %s7903_s29  }
  0x1a   :  { %s7904_s1 = smov [#allocation8]  }
  0x1b   :  { %s44_s7 = sshll.u32 %s7904_s1, 4  ;;  %s45_s7 = int_to_ptr.vmem [resolvable:$true] %s44_s7 }
  0x1c   :  { %s7860_s8 = scalar_lea.vmem %s45_s7, 1024  ;;  %p7865_p11 = scmp.lt.s32.totalorder %s45_s7, %s45_s7 }
  0x1d   :  { %p7861_p10 = scmp.ne.s32.totalorder %s45_s7, %s7860_s8  ;;  %p7866_p12 = scmp.lt.s32.totalorder %s7860_s8, %s7860_s8 }
  0x1f   :  { %p7867_p13 = por %p7866_p12, %p7865_p11 }
  0x21   :  { %p7868_p0 = pnand %p7867_p13, %p7861_p10 }
  0x23   :  { %7871 = shalt.err (!%p7868_p0)
}
  0x24   :  { %50 = dma.hbm_to_vmem [thread:$0]  %s10533_s3, 1024, %s45_s7, [#allocation7], %s7902_s28, %s7902_s28, %s7903_s29  }
  0x25   :  { %7892 = dma.done.wait [#allocation4], 2048  }
  0x26   :  { %7893 = vsyncadd [#allocation4], 4294965248 }
  0x27   :  { %7894 = dma.done.wait [#allocation7], 4096  }
  0x28   :  { %7895 = vsyncadd [#allocation7], 4294963200  ;;  %v7905_v0 = vmov 0   ;;  %v7228_v1 = vld [vmem:[#allocation6 + $0xac] ss:$12 sps:$4 sm:$0xff]   ;;  %v7252_v18 = vld [vmem:[#allocation3] sm:$0xff]   ;;  %v129_v41 = vlaneseq }
  0x29   :  { %400 = vmatprep.mubr.bf16.mxu0 %v7905_v0  ;;  %520 = vmatprep.mubr.bf16.mxu1 %v7905_v0  ;;  %v7230_v2 = vld [vmem:[#allocation6 + $0xa8] ss:$12 sps:$4 sm:$0xff]   ;;  %v7233_v4 = vld [vmem:[#allocation6 + $0x90] ss:$12 sps:$4 sm:$0xff]   ;;  %v7236_v6 = vld [vmem:[#allocation6 + $0x78] ss:$12 sps:$4 sm:$0xff]  }
  0x2a   :  { %368 = vmatprep.subr.bf16.mxu0 %v7228_v1  ;;  %7137 = vmatprep.subr.bf16.mxu1 %v7228_v1  ;;  %v7231_v3 = vld [vmem:[#allocation6 + $0x94] ss:$12 sps:$4 sm:$0xff]   ;;  %v7234_v5 = vld [vmem:[#allocation6 + $0x7c] ss:$12 sps:$4 sm:$0xff]   ;;  %v7237_v7 = vld [vmem:[#allocation6 + $0x64] ss:$12 sps:$4 sm:$0xff]  }
  0x2b   :  { %369 = vmatpush1.bf16.msra.mxu0 %v7230_v2  ;;  %7145 = vmatpush1.bf16.msra.mxu1 %v7230_v2  ;;  %v7239_v8 = vld [vmem:[#allocation6 + $0x60] ss:$12 sps:$4 sm:$0xff]   ;;  %v7242_v10 = vld [vmem:[#allocation6 + $0x48] ss:$12 sps:$4 sm:$0xff]   ;;  %v7245_v12 = vld [vmem:[#allocation6 + $0x30] ss:$12 sps:$4 sm:$0xff]  }
  0x2c   :  { %370 = vmatprep.subr.bf16.mxu0 %v7231_v3  ;;  %7138 = vmatprep.subr.bf16.mxu1 %v7231_v3  ;;  %v7240_v9 = vld [vmem:[#allocation6 + $0x4c] ss:$12 sps:$4 sm:$0xff]   ;;  %v7243_v11 = vld [vmem:[#allocation6 + $0x34] ss:$12 sps:$4 sm:$0xff]   ;;  %v7246_v13 = vld [vmem:[#allocation6 + $0x1c] ss:$12 sps:$4 sm:$0xff]  }
  0x2d   :  { %v7248_v14 = vld [vmem:[#allocation6 + $0x18] ss:$12 sps:$4 sm:$0xff]   ;;  %v7251_v16 = vld [vmem:[#allocation6] ss:$12 sps:$4 sm:$0xff]   ;;  %v7268_v17 = vld [vmem:[#allocation6 + $0xb0] ss:$12 sps:$4 sm:$0xff]  }
  0x2e   :  { %v7249_v15 = vld [vmem:[#allocation6 + $0x4] ss:$12 sps:$4 sm:$0xff]   ;;  %v7270_v21 = vld [vmem:[#allocation6 + $0x80] ss:$12 sps:$4 sm:$0xff]   ;;  %v7271_v24 = vld [vmem:[#allocation6 + $0x68] ss:$12 sps:$4 sm:$0xff]  }
  0x2f   :  { %371 = vmatpush1.bf16.msra.mxu0 %v7233_v4  ;;  %7146 = vmatpush1.bf16.msra.mxu1 %v7233_v4  ;;  %v7956_v19 = vld [vmem:[#allocation3 + $0x60] sm:$0xff]   ;;  %v7254_v22 = vld [vmem:[#allocation3 + $0x8] sm:$0xff]   ;;  %v7272_v25 = vld [vmem:[#allocation6 + $0x50] ss:$12 sps:$4 sm:$0xff]   ;;  %v7978_v42 = vshrl.u32 %v129_v41, 7  ;;  %vm770_vm0 = vcmask 261120  }
  0x30   :  { %372 = vmatprep.subr.bf16.mxu0 %v7234_v5  ;;  %7139 = vmatprep.subr.bf16.mxu1 %v7234_v5  ;;  %v7269_v20 = vld [vmem:[#allocation6 + $0x98] ss:$12 sps:$4 sm:$0xff]   ;;  %v7961_v23 = vld [vmem:[#allocation3 + $0x68] sm:$0xff]   ;;  %v7256_v26 = vld [vmem:[#allocation3 + $0x10] sm:$0xff]   ;;  %vm1687_vm1 = vcmask 257024   ;;  %s7907_s11 = smov 32  }
  0x31   :  { %v7257_v27 = vld [vmem:[#allocation3 + $0x70] sm:$0xff]   ;;  %v7273_v28 = vld [vmem:[#allocation6 + $0x38] ss:$12 sps:$4 sm:$0xff]   ;;  %v7274_v29 = vld [vmem:[#allocation6 + $0x20] ss:$12 sps:$4 sm:$0xff]   ;;  %v131_v43 = vsub.s32 0, %v7978_v42 }
  0x32   :  { %v7258_v30 = vld [vmem:[#allocation3 + $0x18] sm:$0xff]   ;;  %v7275_v32 = vld [vmem:[#allocation6 + $0x8] ss:$12 sps:$4 sm:$0xff]   ;;  %v7260_v33 = vld [vmem:[#allocation3 + $0x20] sm:$0xff]   ;;  %v135_v58 = vsub.s32 1, %v7978_v42  ;;  %vm2860_vm2 = vcmask 519424  }
  0x33   :  { %373 = vmatpush1.bf16.msra.mxu0 %v7236_v6  ;;  %7147 = vmatpush1.bf16.msra.mxu1 %v7236_v6  ;;  %v7259_v31 = vld [vmem:[#allocation3 + $0x78] sm:$0xff]   ;;  %v7261_v34 = vld [vmem:[#allocation3 + $0x28] sm:$0xff]   ;;  %v7262_v35 = vld [vmem:[#allocation3 + $0x30] sm:$0xff]   ;;  %vm3985_vm3 = vcmask 781824   ;;  %vm5110_vm4 = vcmask 1044224  }
  0x34   :  { %374 = vmatprep.subr.bf16.mxu0 %v7237_v7  ;;  %7140 = vmatprep.subr.bf16.mxu1 %v7237_v7  ;;  %v7263_v36 = vld [vmem:[#allocation3 + $0x38] sm:$0xff]   ;;  %v7264_v37 = vld [vmem:[#allocation3 + $0x40] sm:$0xff]   ;;  %v7265_v38 = vld [vmem:[#allocation3 + $0x48] sm:$0xff]  }
  0x35   :  { %v7266_v39 = vld [vmem:[#allocation3 + $0x50] sm:$0xff]   ;;  %v7267_v40 = vld [vmem:[#allocation3 + $0x58] sm:$0xff]   ;;  %v7984_v44 = vld [vmem:[%s10532_s2] sm:$0x7]  ;;  %s7906_s2 = smov 96  }
  0x36   :  { %v7987_v47 = vrot.slane %v7984_v44, %v131_v43  ;;  %v8009_v1 = vrot.slane %v7984_v44, %v135_v58 }
  0x37   :  { %375 = vmatpush1.bf16.msra.mxu0 %v7239_v8  ;;  %7148 = vmatpush1.bf16.msra.mxu1 %v7239_v8 }
  0x38   :  { %376 = vmatprep.subr.bf16.mxu0 %v7240_v9  ;;  %7141 = vmatprep.subr.bf16.mxu1 %v7240_v9 }
  0x3b   :  { %377 = vmatpush1.bf16.msra.mxu0 %v7242_v10  ;;  %7149 = vmatpush1.bf16.msra.mxu1 %v7242_v10 }
  0x3c   :  { %378 = vmatprep.subr.bf16.mxu0 %v7243_v11  ;;  %7142 = vmatprep.subr.bf16.mxu1 %v7243_v11 }
  0x3f   :  { %379 = vmatpush1.bf16.msra.mxu0 %v7245_v12  ;;  %7150 = vmatpush1.bf16.msra.mxu1 %v7245_v12 }
  0x40   :  { %380 = vmatprep.subr.bf16.mxu0 %v7246_v13  ;;  %7143 = vmatprep.subr.bf16.mxu1 %v7246_v13 }
  0x43   :  { %381 = vmatpush1.bf16.msra.mxu0 %v7248_v14  ;;  %7151 = vmatpush1.bf16.msra.mxu1 %v7248_v14 }
  0x44   :  { %382 = vmatprep.subr.bf16.mxu0 %v7249_v15  ;;  %7144 = vmatprep.subr.bf16.mxu1 %v7249_v15 }
  0x47   :  { %383 = vmatpush1.bf16.msra.mxu0 %v7251_v16  ;;  %7152 = vmatpush1.bf16.msra.mxu1 %v7251_v16 }
  0x48   :  { %6529 = vmatprep.subr.bf16.mxu1 %v7268_v17 }
  0x4a   :  { %401 = vmatmul.mubr.bf16.vlgmr.msra.gmra.mxu0 %v7252_v18  ;;  %521 = vmatmul.mubr.bf16.vlgmr.msra.gmra.mxu1 %v7956_v19 }
  0x4b   :  { %410 = vmatprep.mubr.bf16.mxu0 %v7905_v0  ;;  %530 = vmatprep.mubr.bf16.mxu1 %v7905_v0 }
  0x4c   :  { %6530 = vmatpush3.bf16.msra.mxu1 %v7268_v17 }
  0x4d   :  { %6531 = vmatprep.subr.bf16.mxu1 %v7269_v20 }
  0x50   :  { %6532 = vmatpush3.bf16.msra.mxu1 %v7269_v20 }
  0x51   :  { %6533 = vmatprep.subr.bf16.mxu1 %v7270_v21 }
  0x52   :  { %411 = vmatmul.mubr.bf16.gmra.mxu0 %v7254_v22  ;;  %531 = vmatmul.mubr.bf16.gmra.mxu1 %v7961_v23 }
  0x53   :  { %420 = vmatprep.mubr.bf16.mxu0 %v7905_v0  ;;  %540 = vmatprep.mubr.bf16.mxu1 %v7905_v0 }
  0x54   :  { %6534 = vmatpush3.bf16.msra.mxu1 %v7270_v21 }
  0x55   :  { %6535 = vmatprep.subr.bf16.mxu1 %v7271_v24 }
  0x58   :  { %6536 = vmatpush3.bf16.msra.mxu1 %v7271_v24 }
  0x59   :  { %6537 = vmatprep.subr.bf16.mxu1 %v7272_v25 }
  0x5a   :  { %421 = vmatmul.mubr.bf16.gmra.mxu0 %v7256_v26  ;;  %541 = vmatmul.mubr.bf16.gmra.mxu1 %v7257_v27 }
  0x5b   :  { %430 = vmatprep.mubr.bf16.mxu0 %v7905_v0  ;;  %550 = vmatprep.mubr.bf16.mxu1 %v7905_v0 }
  0x5c   :  { %6538 = vmatpush3.bf16.msra.mxu1 %v7272_v25 }
  0x5d   :  { %6539 = vmatprep.subr.bf16.mxu1 %v7273_v28 }
  0x60   :  { %6540 = vmatpush3.bf16.msra.mxu1 %v7273_v28 }
  0x61   :  { %6541 = vmatprep.subr.bf16.mxu1 %v7274_v29 }
  0x62   :  { %431 = vmatmul.mubr.bf16.gmra.mxu0 %v7258_v30  ;;  %551 = vmatmul.mubr.bf16.gmra.mxu1 %v7259_v31 }
  0x63   :  { %440 = vmatprep.mubr.bf16.mxu0 %v7905_v0  ;;  %6545 = vmatprep.mubr.bf16.mxu1 %v7252_v18 }
  0x64   :  { %6542 = vmatpush3.bf16.msra.mxu1 %v7274_v29 }
  0x65   :  { %6543 = vmatprep.subr.bf16.mxu1 %v7275_v32 }
  0x68   :  { %6544 = vmatpush3.bf16.msra.mxu1 %v7275_v32 }
  0x6a   :  { %441 = vmatmul.mubr.bf16.gmra.mxu0 %v7260_v33 }
  0x6b   :  { %450 = vmatprep.mubr.bf16.mxu0 %v7905_v0  ;;  %6546 = vmatmul.mubr.bf16.vlgmr.msra.gmra.mxu1 %v7254_v22 }
  0x6c   :  { %6549 = vmatprep.mubr.bf16.mxu1 %v7256_v26 }
  0x72   :  { %451 = vmatmul.mubr.bf16.gmra.mxu0 %v7261_v34 }
  0x73   :  { %460 = vmatprep.mubr.bf16.mxu0 %v7905_v0  ;;  %6550 = vmatmul.mubr.bf16.gmra.mxu1 %v7258_v30 }
  0x74   :  { %6553 = vmatprep.mubr.bf16.mxu1 %v7260_v33 }
  0x7a   :  { %461 = vmatmul.mubr.bf16.gmra.mxu0 %v7262_v35 }
  0x7b   :  { %470 = vmatprep.mubr.bf16.mxu0 %v7905_v0  ;;  %6554 = vmatmul.mubr.bf16.gmra.mxu1 %v7261_v34 }
  0x7c   :  { %6557 = vmatprep.mubr.bf16.mxu1 %v7262_v35 }
  0x82   :  { %471 = vmatmul.mubr.bf16.gmra.mxu0 %v7263_v36 }
  0x83   :  { %480 = vmatprep.mubr.bf16.mxu0 %v7905_v0  ;;  %6558 = vmatmul.mubr.bf16.gmra.mxu1 %v7263_v36 }
  0x84   :  { %6561 = vmatprep.mubr.bf16.mxu1 %v7264_v37 }
  0x8a   :  { %481 = vmatmul.mubr.bf16.gmra.mxu0 %v7264_v37 }
  0x8b   :  { %490 = vmatprep.mubr.bf16.mxu0 %v7905_v0  ;;  %6562 = vmatmul.mubr.bf16.gmra.mxu1 %v7265_v38 }
  0x8c   :  { %6565 = vmatprep.mubr.bf16.mxu1 %v7266_v39 }
  0x92   :  { %491 = vmatmul.mubr.bf16.gmra.mxu0 %v7265_v38 }
  0x93   :  { %500 = vmatprep.mubr.bf16.mxu0 %v7905_v0  ;;  %6566 = vmatmul.mubr.bf16.gmra.mxu1 %v7267_v40 }
  0x94   :  { %6569 = vmatprep.mubr.bf16.mxu1 %v7956_v19 }
  0x9a   :  { %501 = vmatmul.mubr.bf16.gmra.mxu0 %v7266_v39 }
  0x9b   :  { %510 = vmatprep.mubr.bf16.mxu0 %v7905_v0  ;;  %6570 = vmatmul.mubr.bf16.gmra.mxu1 %v7961_v23 }
  0x9c   :  { %6573 = vmatprep.mubr.bf16.mxu1 %v7257_v27 }
  0xa2   :  { %511 = vmatmul.mubr.bf16.gmra.mxu0 %v7267_v40 }
  0xa3   :  { %6574 = vmatmul.mubr.bf16.gmra.mxu1 %v7259_v31 }
 0x10a   :  { %v402_v45 = vpop.f32.mrf.mxu0  ;;  %v522_v46 = vpop.f32.mrf.mxu1 }
 0x10b   :  { %v523_v50 = vadd.f32 %v522_v46, %v7987_v47  ;;  %v403_v53 = vadd.f32 %v402_v45, %v7987_v47 }
 0x10c   :  { %v7989_v48 = vpop.f32.mrf.mxu0  ;;  %v7991_v49 = vpop.f32.mrf.mxu1 }
 0x10e   :  { %v406_v51 = vpop.f32.mrf.mxu0  ;;  %v526_v52 = vpop.f32.mrf.mxu1 }
 0x10f   :  { %v407_v54 = vadd.f32 %v406_v51, %v7987_v47  ;;  %v527_v55 = vadd.f32 %v526_v52, %v7987_v47 }
 0x110   :  { %v7997_v56 = vpop.f32.mrf.mxu0  ;;  %v7999_v57 = vpop.f32.mrf.mxu1 }
 0x111   :  { %v8002_v59 = vpack.c.bf16 %v407_v54, %v403_v53  ;;  %v8004_v60 = vpack.c.bf16 %v527_v55, %v523_v50 }
 0x112   :  { %v412_v61 = vpop.f32.mrf.mxu0  ;;  %v532_v62 = vpop.f32.mrf.mxu1 }
 0x113   :  { %10636 = vst [vmem:[#allocation13_spill] sm:$0xff] %v8002_v59  ;;  %10637 = vst [vmem:[#allocation14_spill] sm:$0xff] %v8004_v60  ;;  %6593 = vmatprep.mubr.msk.bf16.mxu1 %vm770_vm0, %v8002_v59  ;;  %v533_v2 = vadd.f32 %v532_v62, %v7987_v47  ;;  %v413_v5 = vadd.f32 %v412_v61, %v7987_v47 }
 0x114   :  { %v414_v63 = vpop.f32.mrf.mxu0  ;;  %v534_v0 = vpop.f32.mrf.mxu1 }
 0x115   :  { %v535_v6 = vadd.f32 %v534_v0, %v8009_v1  ;;  %v415_v9 = vadd.f32 %v414_v63, %v8009_v1 }
 0x116   :  { %v416_v3 = vpop.f32.mrf.mxu0  ;;  %v536_v4 = vpop.f32.mrf.mxu1 }
 0x117   :  { %v417_v7 = vadd.f32 %v416_v3, %v7987_v47  ;;  %v537_v8 = vadd.f32 %v536_v4, %v7987_v47 }
 0x118   :  { %v418_v10 = vpop.f32.mrf.mxu0  ;;  %v538_v11 = vpop.f32.mrf.mxu1 }
 0x119   :  { %v8017_v12 = vpack.c.bf16 %v417_v7, %v413_v5  ;;  %v8019_v13 = vpack.c.bf16 %v537_v8, %v533_v2  ;;  %v419_v14 = vadd.f32 %v418_v10, %v8009_v1  ;;  %v539_v15 = vadd.f32 %v538_v11, %v8009_v1 }
 0x11a   :  { %v422_v16 = vpop.f32.mrf.mxu0  ;;  %v542_v17 = vpop.f32.mrf.mxu1 }
 0x11b   :  { %10638 = vst [vmem:[#allocation15_spill] sm:$0xff] %v8017_v12  ;;  %10639 = vst [vmem:[#allocation16_spill] sm:$0xff] %v8019_v13  ;;  %v8023_v18 = vpack.c.bf16 %v419_v14, %v415_v9  ;;  %v8025_v19 = vpack.c.bf16 %v539_v15, %v535_v6  ;;  %v543_v22 = vadd.f32 %v542_v17, %v7987_v47 }
 0x11c   :  { %v424_v20 = vpop.f32.mrf.mxu0  ;;  %v544_v21 = vpop.f32.mrf.mxu1  ;;  %v423_v25 = vadd.f32 %v422_v16, %v7987_v47 }
 0x11d   :  { %10640 = vst [vmem:[#allocation17_spill] sm:$0xff] %v8023_v18  ;;  %10641 = vst [vmem:[#allocation18_spill] sm:$0xff] %v8025_v19  ;;  %1754 = vrot.lane.b32.xlu0 %v8023_v18, %s7906_s2  ;;  %1955 = vrot.lane.b32.xlu1 %v8025_v19, %s7906_s2  ;;  %v545_v26 = vadd.f32 %v544_v21, %v8009_v1  ;;  %v425_v29 = vadd.f32 %v424_v20, %v8009_v1 }
 0x11e   :  { %v426_v23 = vpop.f32.mrf.mxu0  ;;  %v546_v24 = vpop.f32.mrf.mxu1 }
 0x11f   :  { %v427_v27 = vadd.f32 %v426_v23, %v7987_v47  ;;  %v547_v28 = vadd.f32 %v546_v24, %v7987_v47 }
 0x120   :  { %v428_v30 = vpop.f32.mrf.mxu0  ;;  %v548_v31 = vpop.f32.mrf.mxu1 }
 0x121   :  { %v8037_v32 = vpack.c.bf16 %v427_v27, %v423_v25  ;;  %v8039_v33 = vpack.c.bf16 %v547_v28, %v543_v22  ;;  %v429_v34 = vadd.f32 %v428_v30, %v8009_v1  ;;  %v549_v35 = vadd.f32 %v548_v31, %v8009_v1 }
 0x122   :  { %v432_v36 = vpop.f32.mrf.mxu0  ;;  %v552_v37 = vpop.f32.mrf.mxu1  ;;  %v525_v25 = vadd.f32 %v7991_v49, %v8009_v1  ;;  %v529_v27 = vadd.f32 %v7999_v57, %v8009_v1  ;;  %v956_v49 = vsel %vm770_vm0, %v8025_v19, 0 }
 0x123   :  { %10642 = vst [vmem:[#allocation19_spill] sm:$0xff] %v8037_v32  ;;  %10643 = vst [vmem:[#allocation20_spill] sm:$0xff] %v8039_v33  ;;  %v8043_v38 = vpack.c.bf16 %v429_v34, %v425_v29  ;;  %v8045_v39 = vpack.c.bf16 %v549_v35, %v545_v26  ;;  %v553_v43 = vadd.f32 %v552_v37, %v7987_v47 }
 0x124   :  { %v434_v40 = vpop.f32.mrf.mxu0  ;;  %v554_v41 = vpop.f32.mrf.mxu1  ;;  %v433_v50 = vadd.f32 %v432_v36, %v7987_v47  ;;  %v8103_v36 = vpack.c.bf16 %v529_v27, %v525_v25 }
 0x125   :  { %10644 = vst [vmem:[#allocation21_spill] sm:$0xff] %v8043_v38  ;;  %10645 = vst [vmem:[#allocation22_spill] sm:$0xff] %v8045_v39  ;;  %1756 = vrot.lane.b32.xlu0 %v8043_v38, %s7906_s2  ;;  %1957 = vrot.lane.b32.xlu1 %v8045_v39, %s7906_s2  ;;  %v555_v51 = vadd.f32 %v554_v41, %v8009_v1  ;;  %v435_v54 = vadd.f32 %v434_v40, %v8009_v1  ;;  %v959_v20 = vsel %vm770_vm0, %v8045_v39, 0 }
 0x126   :  { %v436_v45 = vpop.f32.mrf.mxu0  ;;  %v556_v46 = vpop.f32.mrf.mxu1  ;;  %10654 = vst [vmem:[#allocation31_spill] sm:$0xff] %v8103_v36 }
 0x127   :  { %v437_v52 = vadd.f32 %v436_v45, %v7987_v47  ;;  %v557_v53 = vadd.f32 %v556_v46, %v7987_v47 }
 0x128   :  { %v438_v55 = vpop.f32.mrf.mxu0  ;;  %v558_v58 = vpop.f32.mrf.mxu1 }
 0x129   :  { %v8057_v61 = vpack.c.bf16 %v437_v52, %v433_v50  ;;  %v8059_v62 = vpack.c.bf16 %v557_v53, %v553_v43  ;;  %v439_v63 = vadd.f32 %v438_v55, %v8009_v1  ;;  %v559_v0 = vadd.f32 %v558_v58, %v8009_v1 }
 0x12a   :  { %v442_v2 = vpop.f32.mrf.mxu0  ;;  %v953_v53 = vsel %vm770_vm0, %v8103_v36, 0 }
 0x12b   :  { %10646 = vst [vmem:[#allocation23_spill] sm:$0xff] %v8057_v61  ;;  %10647 = vst [vmem:[#allocation24_spill] sm:$0xff] %v8059_v62  ;;  %v8063_v3 = vpack.c.bf16 %v439_v63, %v435_v54  ;;  %v8065_v4 = vpack.c.bf16 %v559_v0, %v555_v51  ;;  %v443_v8 = vadd.f32 %v442_v2, %v7987_v47  ;;  %v8155_v25 = vpop.f32.mrf.mxu1 }
 0x12c   :  { %v444_v5 = vpop.f32.mrf.mxu0 }
 0x12d   :  { %10648 = vst [vmem:[#allocation25_spill] sm:$0xff] %v8063_v3  ;;  %10649 = vst [vmem:[#allocation26_spill] sm:$0xff] %v8065_v4  ;;  %7161 = vmatprep.subr.msk.bf16.mxu0 %vm770_vm0, %v8065_v4  ;;  %1758 = vrot.lane.b32.xlu0 %v8063_v3, %s7906_s2  ;;  %v962_v6 = vsel %vm770_vm0, %v8065_v4, 0  ;;  %v445_v11 = vadd.f32 %v444_v5, %v8009_v1  ;;  %v8159_v27 = vpop.f32.mrf.mxu1 }
 0x12e   :  { %v446_v7 = vpop.f32.mrf.mxu0  ;;  %6610 = vmatpush3.bf16.xpose.msra.mxu0 %v962_v6  ;;  %1959 = vrot.lane.b32.xlu1 %v8065_v4, %s7906_s2 }
 0x12f   :  { %v447_v9 = vadd.f32 %v446_v7, %v7987_v47  ;;  %7162 = vmatprep.subr.msk.bf16.mxu0 %vm770_vm0, %v8045_v39 }
 0x130   :  { %v448_v10 = vpop.f32.mrf.mxu0 }
 0x131   :  { %v8080_v14 = vpack.c.bf16 %v447_v9, %v443_v8  ;;  %v449_v15 = vadd.f32 %v448_v10, %v8009_v1 }
 0x132   :  { %v452_v16 = vpop.f32.mrf.mxu0 }
 0x133   :  { %10650 = vst [vmem:[#allocation27_spill] sm:$0xff] %v8080_v14  ;;  %v8083_v17 = vpack.c.bf16 %v449_v15, %v445_v11  ;;  %v453_v23 = vadd.f32 %v452_v16, %v7987_v47 }
 0x134   :  { %v454_v21 = vpop.f32.mrf.mxu0 }
 0x135   :  { %10651 = vst [vmem:[#allocation28_spill] sm:$0xff] %v8083_v17  ;;  %1760 = vrot.lane.b32.xlu0 %v8083_v17, %s7906_s2  ;;  %v455_v28 = vadd.f32 %v454_v21, %v8009_v1 }
 0x136   :  { %v456_v22 = vpop.f32.mrf.mxu0  ;;  %6612 = vmatpush3.bf16.xpose.msra.mxu0 %v959_v20 }
 0x137   :  { %v457_v24 = vadd.f32 %v456_v22, %v7987_v47  ;;  %7163 = vmatprep.subr.msk.bf16.mxu0 %vm770_vm0, %v8025_v19 }
 0x138   :  { %v458_v26 = vpop.f32.mrf.mxu0 }
 0x139   :  { %v8098_v29 = vpack.c.bf16 %v457_v24, %v453_v23  ;;  %v459_v30 = vadd.f32 %v458_v26, %v8009_v1 }
 0x13a   :  { %v462_v31 = vpop.f32.mrf.mxu0 }
 0x13b   :  { %10652 = vst [vmem:[#allocation29_spill] sm:$0xff] %v8098_v29  ;;  %v8101_v34 = vpack.c.bf16 %v459_v30, %v455_v28  ;;  %v463_v57 = vadd.f32 %v462_v31, %v7987_v47  ;;  %v8163_v30 = vpop.f32.mrf.mxu1 }
 0x13c   :  { %v464_v35 = vpop.f32.mrf.mxu0 }
 0x13d   :  { %10653 = vst [vmem:[#allocation30_spill] sm:$0xff] %v8101_v34  ;;  %1762 = vrot.lane.b32.xlu0 %v8101_v34, %s7906_s2  ;;  %v465_v43 = vadd.f32 %v464_v35, %v8009_v1  ;;  %v8165_v35 = vpop.f32.mrf.mxu1 }
 0x13e   :  { %v466_v37 = vpop.f32.mrf.mxu0  ;;  %6614 = vmatpush3.bf16.xpose.msra.mxu0 %v956_v49  ;;  %v811_v49 = vsel %vm770_vm0, %v8101_v34, 0 }
 0x13f   :  { %v467_v40 = vadd.f32 %v466_v37, %v7987_v47  ;;  %7164 = vmatprep.subr.msk.bf16.mxu0 %vm770_vm0, %v8103_v36 }
 0x140   :  { %v468_v41 = vpop.f32.mrf.mxu0 }
 0x141   :  { %v8114_v45 = vpack.c.bf16 %v467_v40, %v463_v57  ;;  %v469_v46 = vadd.f32 %v468_v41, %v8009_v1  ;;  %v8171_v57 = vpop.f32.mrf.mxu1 }
 0x142   :  { %v472_v50 = vpop.f32.mrf.mxu0 }
 0x143   :  { %10655 = vst [vmem:[#allocation32_spill] sm:$0xff] %v8114_v45  ;;  %v8117_v51 = vpack.c.bf16 %v469_v46, %v465_v43  ;;  %v473_v55 = vadd.f32 %v472_v50, %v7987_v47  ;;  %v8175_v41 = vpop.f32.mrf.mxu1 }
 0x144   :  { %v474_v52 = vpop.f32.mrf.mxu0 }
 0x145   :  { %10656 = vst [vmem:[#allocation33_spill] sm:$0xff] %v8117_v51  ;;  %1764 = vrot.lane.b32.xlu1 %v8117_v51, %s7906_s2  ;;  %v475_v0 = vadd.f32 %v474_v52, %v8009_v1  ;;  %v814_v23 = vsel %vm770_vm0, %v8117_v51, 0  ;;  %v8179_v46 = vpop.f32.mrf.mxu1 }
 0x146   :  { %v476_v54 = vpop.f32.mrf.mxu0  ;;  %6616 = vmatpush3.bf16.xpose.msra.mxu0 %v953_v53  ;;  %v808_v53 = vsel %vm770_vm0, %v8083_v17, 0 }
 0x147   :  { %v477_v58 = vadd.f32 %v476_v54, %v7987_v47  ;;  %v8181_v52 = vpop.f32.mrf.mxu1 }
 0x148   :  { %v478_v63 = vpop.f32.mrf.mxu0 }
 0x149   :  { %v8126_v2 = vpack.c.bf16 %v477_v58, %v473_v55  ;;  %v479_v5 = vadd.f32 %v478_v63, %v8009_v1  ;;  %v8187_v55 = vpop.f32.mrf.mxu1 }
 0x14a   :  { %v482_v6 = vpop.f32.mrf.mxu0 }
 0x14b   :  { %10657 = vst [vmem:[#allocation34_spill] sm:$0xff] %v8126_v2  ;;  %v8129_v7 = vpack.c.bf16 %v479_v5, %v475_v0  ;;  %v483_v11 = vadd.f32 %v482_v6, %v7987_v47  ;;  %v8191_v63 = vpop.f32.mrf.mxu1 }
 0x14c   :  { %v8131_v8 = vpop.f32.mrf.mxu0 }
 0x14d   :  { %10658 = vst [vmem:[#allocation35_spill] sm:$0xff] %v8129_v7  ;;  %7153 = vmatprep.subr.msk.bf16.mxu1 %vm770_vm0, %v8129_v7  ;;  %1766 = vrot.lane.b32.xlu0 %v8129_v7, %s7906_s2  ;;  %v817_v9 = vsel %vm770_vm0, %v8129_v7, 0 }
 0x14e   :  { %v486_v10 = vpop.f32.mrf.mxu0  ;;  %6578 = vmatpush3.bf16.xpose.msra.mxu1 %v817_v9  ;;  %v8196_v9 = vpop.f32.mrf.mxu1 }
 0x14f   :  { %v487_v15 = vadd.f32 %v486_v10, %v7987_v47  ;;  %7154 = vmatprep.subr.msk.bf16.mxu1 %vm770_vm0, %v8117_v51 }
 0x150   :  { %v8143_v16 = vpop.f32.mrf.mxu0 }
 0x151   :  { %v8145_v20 = vpack.c.bf16 %v487_v15, %v483_v11  ;;  %v8201_v15 = vpop.f32.mrf.mxu1 }
 0x152   :  { %v8147_v21 = vpop.f32.mrf.mxu0 }
 0x153   :  { %10659 = vst [vmem:[#allocation36_spill] sm:$0xff] %v8145_v20  ;;  %6625 = vmatprep.mubr.msk.bf16.mxu0 %vm770_vm0, %v8145_v20 }
 0x154   :  { %v494_v22 = vpop.f32.mrf.mxu0 }
 0x156   :  { %v8153_v24 = vpop.f32.mrf.mxu0  ;;  %6580 = vmatpush3.bf16.xpose.msra.mxu1 %v814_v23 }
 0x157   :  { %7155 = vmatprep.subr.msk.bf16.mxu1 %vm770_vm0, %v8101_v34 }
 0x158   :  { %v498_v26 = vpop.f32.mrf.mxu0 }
 0x15a   :  { %v8161_v28 = vpop.f32.mrf.mxu0 }
 0x15c   :  { %v504_v31 = vpop.f32.mrf.mxu0 }
 0x15d   :  { %v505_v10 = vadd.f32 %v504_v31, %v8009_v1 }
 0x15e   :  { %v8169_v37 = vpop.f32.mrf.mxu0  ;;  %6582 = vmatpush3.bf16.xpose.msra.mxu1 %v811_v49  ;;  %v805_v49 = vsel %vm770_vm0, %v8063_v3, 0 }
 0x15f   :  { %7156 = vmatprep.subr.msk.bf16.mxu1 %vm770_vm0, %v8083_v17 }
 0x160   :  { %v508_v40 = vpop.f32.mrf.mxu0 }
 0x161   :  { %v509_v0 = vadd.f32 %v508_v40, %v8009_v1 }
 0x162   :  { %v8177_v43 = vpop.f32.mrf.mxu0 }
 0x163   :  { %v8203_v23 = vpack.c.bf16 %v509_v0, %v505_v10 }
 0x164   :  { %v514_v50 = vpop.f32.mrf.mxu0 }
 0x165   :  { %v515_v5 = vadd.f32 %v514_v50, %v8009_v1  ;;  %v6559_v50 = vpop.f32.mrf.mxu1 }
 0x166   :  { %v8185_v54 = vpop.f32.mrf.mxu0  ;;  %6584 = vmatpush3.bf16.xpose.msra.mxu1 %v808_v53  ;;  %v499_v53 = vadd.f32 %v498_v26, %v8009_v1 }
 0x167   :  { %7157 = vmatprep.subr.msk.bf16.mxu1 %vm770_vm0, %v8063_v3  ;;  %v643_v31 = vpop.f32.mrf.mxu1 }
 0x168   :  { %v518_v58 = vpop.f32.mrf.mxu0 }
 0x169   :  { %v519_v6 = vadd.f32 %v518_v58, %v8009_v1  ;;  %v139_v58 = vsub.s32 2, %v7978_v42  ;;  %v6560_v0 = vpop.f32.mrf.mxu1 }
 0x16b   :  { %v8199_v11 = vpack.c.bf16 %v519_v6, %v515_v5  ;;  %v495_v5 = vadd.f32 %v494_v22, %v8009_v1  ;;  %v646_v6 = vpop.f32.mrf.mxu1  ;;  %v8225_v19 = vrot.slane %v7984_v44, %v139_v58  ;;  %v409_v22 = vadd.f32 %v7997_v56, %v8009_v1 }
 0x16c   :  { %v405_v58 = vadd.f32 %v7989_v48, %v8009_v1  ;;  %v799_v56 = vsel %vm770_vm0, %v8023_v18, 0 }
 0x16d   :  { %10660 = vst [vmem:[#allocation37_spill] sm:$0xff] %v8199_v11  ;;  %7165 = vmatprep.subr.msk.bf16.mxu0 %vm770_vm0, %v8199_v11  ;;  %v950_v40 = vsel %vm770_vm0, %v8199_v11, 0  ;;  %v8218_v10 = vpack.c.bf16 %v499_v53, %v495_v5  ;;  %v6563_v26 = vpop.f32.mrf.mxu1  ;;  %v489_v5 = vadd.f32 %v8143_v16, %v8009_v1 }
 0x16e   :  { %6586 = vmatpush3.bf16.xpose.msra.mxu1 %v805_v49  ;;  %6618 = vmatpush3.bf16.xpose.msra.mxu0 %v950_v40  ;;  %v802_v49 = vsel %vm770_vm0, %v8043_v38, 0  ;;  %v947_v40 = vsel %vm770_vm0, %v8203_v23, 0  ;;  %v668_v42 = vadd.f32 %v6563_v26, %v8225_v19  ;;  %v8242_v4 = vpack.c.bf16 %v409_v22, %v405_v58 }
 0x16f   :  { %7158 = vmatprep.subr.msk.bf16.mxu1 %vm770_vm0, %v8043_v38  ;;  %7166 = vmatprep.subr.msk.bf16.mxu0 %vm770_vm0, %v8203_v23  ;;  %v659_v53 = vpop.f32.mrf.mxu1  ;;  %v944_v16 = vsel %vm770_vm0, %v8218_v10, 0  ;;  %v655_v22 = vadd.f32 %v6560_v0, %v8225_v19 }
 0x170   :  { %v660_v44 = vadd.f32 %v659_v53, %v8225_v19  ;;  %10661 = vst [vmem:[#allocation38_spill] sm:$0xff] %v8242_v4 }
 0x176   :  { %6588 = vmatpush3.bf16.xpose.msra.mxu1 %v802_v49  ;;  %6620 = vmatpush3.bf16.xpose.msra.mxu0 %v947_v40  ;;  %v6564_v49 = vpop.f32.mrf.mxu1  ;;  %v485_v40 = vadd.f32 %v8131_v8, %v8009_v1  ;;  %v652_v1 = vadd.f32 %v6559_v50, %v8225_v19 }
 0x177   :  { %7159 = vmatprep.subr.msk.bf16.mxu1 %vm770_vm0, %v8023_v18  ;;  %7167 = vmatprep.subr.msk.bf16.mxu0 %vm770_vm0, %v8218_v10  ;;  %v671_v38 = vadd.f32 %v6564_v49, %v8225_v19 }
 0x178   :  { %v662_v26 = vpop.f32.mrf.mxu1  ;;  %v8246_v17 = vpack.c.bf16 %v489_v5, %v485_v40  ;;  %v8263_v40 = vpack.c.bf16 %v655_v22, %v652_v1  ;;  %v497_v1 = vadd.f32 %v8153_v24, %v7987_v47  ;;  %v503_v24 = vadd.f32 %v8161_v28, %v7987_v47 }
 0x179   :  { %v8250_v53 = vpack.c.bf16 %v671_v38, %v668_v42  ;;  %v663_v48 = vadd.f32 %v662_v26, %v8225_v19  ;;  %v796_v26 = vsel %vm770_vm0, %v8242_v4, 0 }
 0x17a   :  { %10662 = vst [vmem:[#allocation39_spill] sm:$0xff] %v8246_v17  ;;  %v6567_v8 = vpop.f32.mrf.mxu1  ;;  %10665 = vst [vmem:[#allocation42_spill] sm:$0xff] %v8263_v40 }
 0x17b   :  { %10663 = vst [vmem:[#allocation40_spill] sm:$0xff] %v8250_v53  ;;  %v8259_v5 = vpack.c.bf16 %v663_v48, %v660_v44  ;;  %v684_v38 = vadd.f32 %v6567_v8, %v8225_v19 }
 0x17c   :  { %v675_v42 = vpop.f32.mrf.mxu1 }
 0x17d   :  { %10664 = vst [vmem:[#allocation41_spill] sm:$0xff] %v8259_v5  ;;  %v676_v58 = vadd.f32 %v675_v42, %v8225_v19  ;;  %v507_v42 = vadd.f32 %v8169_v37, %v7987_v47  ;;  %v636_v37 = vadd.f32 %v8187_v55, %v8225_v19 }
 0x17e   :  { %6590 = vmatpush3.bf16.xpose.msra.mxu1 %v799_v56  ;;  %6622 = vmatpush3.bf16.xpose.msra.mxu0 %v944_v16  ;;  %v6568_v49 = vpop.f32.mrf.mxu1  ;;  %v941_v16 = vsel %vm770_vm0, %v8246_v17, 0 }
 0x17f   :  { %7160 = vmatprep.subr.msk.bf16.mxu1 %vm770_vm0, %v8242_v4  ;;  %7168 = vmatprep.subr.msk.bf16.mxu0 %vm770_vm0, %v8246_v17  ;;  %v687_v50 = vadd.f32 %v6568_v49, %v8225_v19  ;;  %v647_v49 = vadd.f32 %v646_v6, %v8225_v19 }
 0x180   :  { %v678_v56 = vpop.f32.mrf.mxu1 }
 0x181   :  { %v8270_v0 = vpack.c.bf16 %v687_v50, %v684_v38  ;;  %v679_v44 = vadd.f32 %v678_v56, %v8225_v19  ;;  %v644_v38 = vadd.f32 %v643_v31, %v8225_v19  ;;  %v493_v56 = vadd.f32 %v8147_v21, %v7987_v47 }
 0x182   :  { %v6571_v48 = vpop.f32.mrf.mxu1  ;;  %v639_v31 = vadd.f32 %v8196_v9, %v8225_v19  ;;  %v517_v9 = vadd.f32 %v8185_v54, %v7987_v47 }
 0x183   :  { %10666 = vst [vmem:[#allocation43_spill] sm:$0xff] %v8270_v0  ;;  %v8276_v8 = vpack.c.bf16 %v679_v44, %v676_v58  ;;  %v700_v22 = vadd.f32 %v6571_v48, %v8225_v19  ;;  %v8291_v48 = vpack.c.bf16 %v507_v42, %v503_v24  ;;  %v8297_v6 = vpack.c.bf16 %v647_v49, %v644_v38 }
 0x184   :  { %v691_v50 = vpop.f32.mrf.mxu1  ;;  %v8317_v38 = vpack.c.bf16 %v639_v31, %v636_v37  ;;  %v631_v49 = vadd.f32 %v8201_v15, %v8225_v19  ;;  %v615_v37 = vadd.f32 %v8181_v52, %v8225_v19  ;;  %v604_v31 = vadd.f32 %v8155_v25, %v8225_v19 }
 0x185   :  { %10667 = vst [vmem:[#allocation44_spill] sm:$0xff] %v8276_v8  ;;  %10669 = vst [vmem:[#allocation46_spill] sm:$0xff] %v8291_v48  ;;  %v596_v25 = vadd.f32 %v8159_v27, %v8225_v19 }
 0x186   :  { %6592 = vmatpush3.bf16.xpose.msra.mxu1 %v796_v26  ;;  %6624 = vmatpush3.bf16.xpose.msra.mxu0 %v941_v16  ;;  %v692_v26 = vadd.f32 %v691_v50, %v8225_v19  ;;  %v6572_v58 = vpop.f32.mrf.mxu1  ;;  %v8288_v16 = vpack.c.bf16 %v497_v1, %v493_v56  ;;  %10670 = vst [vmem:[#allocation47_spill] sm:$0xff] %v8297_v6  ;;  %10673 = vst [vmem:[#allocation50_spill] sm:$0xff] %v8317_v38 }
 0x187   :  { %6641 = vmatprep.subr.bf16.mxu1 %v8263_v40  ;;  %v703_v44 = vadd.f32 %v6572_v58, %v8225_v19  ;;  %v513_v56 = vadd.f32 %v8177_v43, %v7987_v47  ;;  %v612_v43 = vadd.f32 %v8175_v41, %v8225_v19  ;;  %v599_v41 = vadd.f32 %v8165_v35, %v8225_v19 }
 0x188   :  { %10668 = vst [vmem:[#allocation45_spill] sm:$0xff] %v8288_v16  ;;  %v694_v21 = vpop.f32.mrf.mxu1 }
 0x189   :  { %v8303_v28 = vpack.c.bf16 %v703_v44, %v700_v22  ;;  %v695_v1 = vadd.f32 %v694_v21, %v8225_v19  ;;  %v628_v22 = vadd.f32 %v8191_v63, %v8225_v19  ;;  %v8325_v58 = vpack.c.bf16 %v517_v9, %v513_v56 }
 0x18a   :  { %v6575_v55 = vpop.f32.mrf.mxu1  ;;  %v620_v63 = vadd.f32 %v8171_v57, %v8225_v19  ;;  %v607_v21 = vadd.f32 %v8163_v30, %v8225_v19  ;;  %v8379_v52 = vpack.c.bf16 %v599_v41, %v596_v25 }
 0x18b   :  { %10671 = vst [vmem:[#allocation48_spill] sm:$0xff] %v8303_v28  ;;  %v8313_v42 = vpack.c.bf16 %v695_v1, %v692_v26  ;;  %10674 = vst [vmem:[#allocation51_spill] sm:$0xff] %v8325_v58  ;;  %v623_v26 = vadd.f32 %v8179_v46, %v8225_v19  ;;  %v8332_v15 = vpack.c.bf16 %v631_v49, %v628_v22 }
 0x18c   :  { %v707_v50 = vpop.f32.mrf.mxu1  ;;  %v8359_v1 = vpack.c.bf16 %v615_v37, %v612_v43  ;;  %v8373_v30 = vpack.c.bf16 %v607_v21, %v604_v31  ;;  %10680 = vst [vmem:[#allocation57_spill] sm:$0xff] %v8379_v52  ;;  %v716_v9 = vadd.f32 %v6575_v55, %v8225_v19 }
 0x18d   :  { %6594 = vmatmul.mubr.msk.bf16.vlgmr.msra.gmra.mxu1 %vm770_vm0, %v8017_v12  ;;  %6626 = vmatmul.mubr.msk.bf16.vlgmr.msra.gmra.mxu0 %vm770_vm0, %v8288_v16  ;;  %10672 = vst [vmem:[#allocation49_spill] sm:$0xff] %v8313_v42  ;;  %v708_v54 = vadd.f32 %v707_v50, %v8225_v19  ;;  %10675 = vst [vmem:[#allocation52_spill] sm:$0xff] %v8332_v15  ;;  %v8349_v46 = vpack.c.bf16 %v623_v26, %v620_v63 }
 0x18e   :  { %6597 = vmatprep.mubr.msk.bf16.mxu1 %vm770_vm0, %v8037_v32  ;;  %6629 = vmatprep.mubr.msk.bf16.mxu0 %vm770_vm0, %v8291_v48  ;;  %v6576_v24 = vpop.f32.mrf.mxu1  ;;  %10678 = vst [vmem:[#allocation55_spill] sm:$0xff] %v8359_v1  ;;  %10679 = vst [vmem:[#allocation56_spill] sm:$0xff] %v8373_v30 }
 0x18f   :  { %6642 = vmatpush3.bf16.msra.mxu1 %v8263_v40  ;;  %10677 = vst [vmem:[#allocation54_spill] sm:$0xff] %v8349_v46  ;;  %v719_v22 = vadd.f32 %v6576_v24, %v8225_v19  ;;  %v1755_v35 = vpop.permute.xlu0 %1754  ;;  %v8394_v49 = vpop.permute.xlu1 %1955 }
 0x190   :  { %6643 = vmatprep.subr.bf16.mxu1 %v8297_v6  ;;  %v710_v44 = vpop.f32.mrf.mxu1  ;;  %10682 = vst [vmem:[#allocation59_spill] sm:$0xff] %v8394_v49  ;;  %v1796_v25 = vsel %vm770_vm0, %v1755_v35, 0 }
 0x191   :  { %v711_v47 = vadd.f32 %v710_v44, %v8225_v19  ;;  %v8390_v27 = vpack.c.bf16 %v719_v22, %v716_v9 }
 0x193   :  { %6644 = vmatpush3.bf16.msra.mxu1 %v8297_v6  ;;  %v8345_v57 = vpack.c.bf16 %v711_v47, %v708_v54  ;;  %10681 = vst [vmem:[#allocation58_spill] sm:$0xff] %v8390_v27 }
 0x194   :  { %6645 = vmatprep.subr.bf16.mxu1 %v8317_v38 }
 0x195   :  { %6598 = vmatmul.mubr.msk.bf16.gmra.mxu1 %vm770_vm0, %v8057_v61  ;;  %6630 = vmatmul.mubr.msk.bf16.gmra.mxu0 %vm770_vm0, %v8325_v58  ;;  %10676 = vst [vmem:[#allocation53_spill] sm:$0xff] %v8345_v57 }
 0x196   :  { %6601 = vmatprep.mubr.msk.bf16.mxu1 %vm770_vm0, %v8080_v14  ;;  %6633 = vmatprep.mubr.msk.bf16.mxu0 %vm770_vm0, %v8004_v60 }
 0x197   :  { %6646 = vmatpush3.bf16.msra.mxu1 %v8317_v38  ;;  %v1757_v55 = vpop.permute.xlu0 %1756  ;;  %v8396_v50 = vpop.permute.xlu1 %1957 }
 0x198   :  { %6647 = vmatprep.subr.bf16.mxu1 %v8332_v15  ;;  %10683 = vst [vmem:[#allocation60_spill] sm:$0xff] %v8396_v50  ;;  %v1799_v21 = vsel %vm770_vm0, %v1757_v55, 0 }
 0x19b   :  { %6648 = vmatpush3.bf16.msra.mxu1 %v8332_v15 }
 0x19c   :  { %6649 = vmatprep.subr.bf16.mxu1 %v8349_v46 }
 0x19d   :  { %6602 = vmatmul.mubr.msk.bf16.gmra.mxu1 %vm770_vm0, %v8098_v29  ;;  %6634 = vmatmul.mubr.msk.bf16.gmra.mxu0 %vm770_vm0, %v8019_v13 }
 0x19e   :  { %6605 = vmatprep.mubr.msk.bf16.mxu1 %vm770_vm0, %v8114_v45  ;;  %6637 = vmatprep.mubr.msk.bf16.mxu0 %vm770_vm0, %v8039_v33 }
 0x19f   :  { %6650 = vmatpush3.bf16.msra.mxu1 %v8349_v46  ;;  %v1759_v19 = vpop.permute.xlu0 %1758 }
 0x1a0   :  { %6651 = vmatprep.subr.bf16.mxu1 %v8359_v1  ;;  %v8398_v54 = vpop.permute.xlu1 %1959  ;;  %v1802_v31 = vsel %vm770_vm0, %v1759_v19, 0 }
 0x1a1   :  { %10684 = vst [vmem:[#allocation61_spill] sm:$0xff] %v8398_v54 }
 0x1a3   :  { %6652 = vmatpush3.bf16.msra.mxu1 %v8359_v1 }
 0x1a4   :  { %6653 = vmatprep.subr.bf16.mxu1 %v8373_v30 }
 0x1a5   :  { %6606 = vmatmul.mubr.msk.bf16.gmra.mxu1 %vm770_vm0, %v8126_v2  ;;  %6638 = vmatmul.mubr.msk.bf16.gmra.mxu0 %vm770_vm0, %v8059_v62 }
 0x1a7   :  { %6654 = vmatpush3.bf16.msra.mxu1 %v8373_v30  ;;  %v1761_v56 = vpop.permute.xlu0 %1760 }
 0x1a8   :  { %6655 = vmatprep.subr.bf16.mxu1 %v8379_v52  ;;  %v1805_v37 = vsel %vm770_vm0, %v1761_v56, 0 }
 0x1ab   :  { %6656 = vmatpush3.bf16.msra.mxu1 %v8379_v52 }
 0x1ac   :  { %6673 = vmatprep.subr.bf16.mxu1 %v8390_v27 }
 0x1af   :  { %v1763_v24 = vpop.permute.xlu0 %1762 }
 0x1b0   :  { %v1808_v43 = vsel %vm770_vm0, %v1763_v24, 0 }
 0x1b7   :  { %v1765_v44 = vpop.permute.xlu1 %1764 }
 0x1b8   :  { %v1811_v47 = vsel %vm770_vm0, %v1765_v44, 0 }
 0x1bf   :  { %v1767_v63 = vpop.permute.xlu0 %1766 }
 0x1c0   :  { %7169 = vmatprep.subr.msk.bf16.mxu0 %vm770_vm0, %v1767_v63  ;;  %v1814_v26 = vsel %vm770_vm0, %v1767_v63, 0 }
 0x1c1   :  { %6706 = vmatpush3.bf16.xpose.msra.mxu0 %v1814_v26 }
 0x1c2   :  { %7170 = vmatprep.subr.msk.bf16.mxu0 %vm770_vm0, %v1765_v44 }
 0x1c9   :  { %6708 = vmatpush3.bf16.xpose.msra.mxu0 %v1811_v47 }
 0x1ca   :  { %7171 = vmatprep.subr.msk.bf16.mxu0 %vm770_vm0, %v1763_v24 }
 0x1d1   :  { %6710 = vmatpush3.bf16.xpose.msra.mxu0 %v1808_v43 }
 0x1d2   :  { %7172 = vmatprep.subr.msk.bf16.mxu0 %vm770_vm0, %v1761_v56 }
 0x1d9   :  { %6712 = vmatpush3.bf16.xpose.msra.mxu0 %v1805_v37 }
 0x1da   :  { %7173 = vmatprep.subr.msk.bf16.mxu0 %vm770_vm0, %v1759_v19 }
 0x1e1   :  { %6714 = vmatpush3.bf16.xpose.msra.mxu0 %v1802_v31 }
 0x1e2   :  { %7174 = vmatprep.subr.msk.bf16.mxu0 %vm770_vm0, %v1757_v55 }
 0x1e9   :  { %6716 = vmatpush3.bf16.xpose.msra.mxu0 %v1799_v21 }
 0x1ea   :  { %7175 = vmatprep.subr.msk.bf16.mxu0 %vm770_vm0, %v1755_v35 }
 0x1f1   :  { %6718 = vmatpush3.bf16.xpose.msra.mxu0 %v1796_v25 }
 0x24d   :  { %v8414_v41 = vpop.f32.mrf.mxu1  ;;  %v8416_v9 = vpop.f32.mrf.mxu0 }
 0x24e   :  { %1097 = vmax.xlane.f32.xlu0 %v8416_v9  ;;  %1065 = vmax.xlane.f32.xlu1 %v8414_v41 }
 0x24f   :  { %v8420_v22 = vpop.f32.mrf.mxu1  ;;  %v8422_v19 = vpop.f32.mrf.mxu0 }
 0x251   :  { %v8424_v56 = vpop.f32.mrf.mxu1  ;;  %v8426_v55 = vpop.f32.mrf.mxu0 }
 0x252   :  { %1061 = vmax.xlane.f32.xlu0 %v8420_v22  ;;  %1067 = vmax.xlane.f32.xlu1 %v8424_v56 }
 0x253   :  { %v8430_v35 = vpop.f32.mrf.mxu1  ;;  %v8432_v24 = vpop.f32.mrf.mxu0 }
 0x255   :  { %v8434_v63 = vpop.f32.mrf.mxu1  ;;  %v8438_v26 = vpop.f32.mrf.mxu0 }
 0x256   :  { %1093 = vmax.xlane.f32.xlu0 %v8422_v19  ;;  %1099 = vmax.xlane.f32.xlu1 %v8426_v55 }
 0x257   :  { %v8440_v44 = vpop.f32.mrf.mxu1  ;;  %v8444_v47 = vpop.f32.mrf.mxu0 }
 0x259   :  { %v8446_v43 = vpop.f32.mrf.mxu1  ;;  %v8450_v37 = vpop.f32.mrf.mxu0 }
 0x25a   :  { %1095 = vmax.xlane.f32.xlu1 %v8432_v24  ;;  %1063 = vmax.xlane.f32.xlu0 %v8430_v35 }
 0x25b   :  { %v8452_v31 = vpop.f32.mrf.mxu1  ;;  %v8456_v21 = vpop.f32.mrf.mxu0 }
 0x25d   :  { %v8458_v25 = vpop.f32.mrf.mxu1  ;;  %v8462_v34 = vpop.f32.mrf.mxu0 }
 0x25e   :  { %1073 = vmax.xlane.f32.xlu0 %v8434_v63  ;;  %1075 = vmax.xlane.f32.xlu1 %v8446_v43 }
 0x25f   :  { %v8464_v51 = vpop.f32.mrf.mxu1  ;;  %v8468_v18 = vpop.f32.mrf.mxu0 }
 0x261   :  { %v8470_v7 = vpop.f32.mrf.mxu1  ;;  %v8474_v39 = vpop.f32.mrf.mxu0 }
 0x262   :  { %1105 = vmax.xlane.f32.xlu0 %v8438_v26  ;;  %1107 = vmax.xlane.f32.xlu1 %v8450_v37 }
 0x263   :  { %v8476_v3 = vpop.f32.mrf.mxu1  ;;  %v8480_v52 = vpop.f32.mrf.mxu0 }
 0x265   :  { %v8482_v30 = vpop.f32.mrf.mxu1  ;;  %v8486_v1 = vpop.f32.mrf.mxu0 }
 0x266   :  { %1069 = vmax.xlane.f32.xlu0 %v8440_v44  ;;  %1071 = vmax.xlane.f32.xlu1 %v8452_v31 }
 0x267   :  { %v8488_v15 = vpop.f32.mrf.mxu1  ;;  %v8492_v46 = vpop.f32.mrf.mxu0 }
 0x269   :  { %v8494_v38 = vpop.f32.mrf.mxu1  ;;  %v8498_v40 = vpop.f32.mrf.mxu0 }
 0x26a   :  { %1101 = vmax.xlane.f32.xlu0 %v8444_v47  ;;  %1103 = vmax.xlane.f32.xlu1 %v8456_v21 }
 0x26b   :  { %v8502_v6 = vpop.f32.mrf.mxu1  ;;  %v8506_v49 = vpop.f32.mrf.mxu0 }
 0x26e   :  { %1081 = vmax.xlane.f32.xlu0 %v8458_v25  ;;  %1083 = vmax.xlane.f32.xlu1 %v8470_v7 }
 0x272   :  { %1113 = vmax.xlane.f32.xlu0 %v8462_v34  ;;  %1115 = vmax.xlane.f32.xlu1 %v8474_v39 }
 0x276   :  { %1077 = vmax.xlane.f32.xlu0 %v8464_v51  ;;  %1079 = vmax.xlane.f32.xlu1 %v8476_v3 }
 0x27a   :  { %1109 = vmax.xlane.f32.xlu0 %v8468_v18  ;;  %1111 = vmax.xlane.f32.xlu1 %v8480_v52 }
 0x27e   :  { %1089 = vmax.xlane.f32.xlu0 %v8482_v30  ;;  %1091 = vmax.xlane.f32.xlu1 %v8494_v38 }
 0x282   :  { %1121 = vmax.xlane.f32.xlu0 %v8486_v1  ;;  %1123 = vmax.xlane.f32.xlu1 %v8498_v40 }
 0x286   :  { %1085 = vmax.xlane.f32.xlu0 %v8488_v15  ;;  %1087 = vmax.xlane.f32.xlu1 %v8502_v6 }
 0x28a   :  { %1119 = vmax.xlane.f32.xlu1 %v8506_v49 }
 0x29c   :  { %1752 = vrot.lane.b32.xlu0 %v8242_v4, %s7906_s2 }
 0x2bb   :  { %1117 = vmax.xlane.f32.xlu0 %v8492_v46 }
 0x2d7   :  { %v1098_v50 = vpop.xlane.xlu0 %1097  ;;  %v1066_v54 = vpop.xlane.xlu1 %1065 }
 0x2d8   :  { %v1143_v5 = vsub.f32 %v8416_v9, %v1098_v50  ;;  %v1127_v53 = vsub.f32 %v8414_v41, %v1066_v54 }
 0x2da   :  { %v1193_v8 = vmul.f32 1.442695, %v1143_v5  ;;  %v1161_v0 = vmul.f32 1.442695, %v1127_v53 }
 0x2db   :  { %v1062_v42 = vpop.xlane.xlu0 %1061  ;;  %v1068_v28 = vpop.xlane.xlu1 %1067 }
 0x2dc   :  { %7300 = vpow2.f32 %v1193_v8  ;;  %v1125_v57 = vsub.f32 %v8420_v22, %v1062_v42  ;;  %v1128_v4 = vsub.f32 %v8424_v56, %v1068_v28 }
 0x2dd   :  { %7302 = vpow2.f32 %v1161_v0 }
 0x2de   :  { %v1157_v27 = vmul.f32 1.442695, %v1125_v57  ;;  %v1163_v53 = vmul.f32 1.442695, %v1128_v4 }
 0x2df   :  { %v1094_v62 = vpop.xlane.xlu0 %1093  ;;  %v1100_v13 = vpop.xlane.xlu1 %1099 }
 0x2e0   :  { %7304 = vpow2.f32 %v1157_v27  ;;  %v1141_v58 = vsub.f32 %v8422_v19, %v1094_v62  ;;  %v1144_v50 = vsub.f32 %v8426_v55, %v1100_v13 }
 0x2e2   :  { %v1189_v2 = vmul.f32 1.442695, %v1141_v58  ;;  %v1195_v41 = vmul.f32 1.442695, %v1144_v50 }
 0x2e3   :  { %v1096_v54 = vpop.xlane.xlu1 %1095  ;;  %v1064_v5 = vpop.xlane.xlu0 %1063 }
 0x2e4   :  { %7306 = vpow2.f32 %v1189_v2  ;;  %v1126_v8 = vsub.f32 %v8430_v35, %v1064_v5  ;;  %v1142_v13 = vsub.f32 %v8432_v24, %v1096_v54 }
 0x2e5   :  { %7308 = vpow2.f32 %v1163_v53 }
 0x2e6   :  { %7310 = vpow2.f32 %v1195_v41  ;;  %v1159_v4 = vmul.f32 1.442695, %v1126_v8  ;;  %v1191_v56 = vmul.f32 1.442695, %v1142_v13 }
 0x2e7   :  { %v1074_v42 = vpop.xlane.xlu0 %1073  ;;  %v1076_v0 = vpop.xlane.xlu1 %1075 }
 0x2e8   :  { %v1131_v57 = vsub.f32 %v8434_v63, %v1074_v42  ;;  %v1132_v55 = vsub.f32 %v8446_v43, %v1076_v0 }
 0x2e9   :  { %v8520_v27 = vpop.eup %7300 }
 0x2ea   :  { %v8522_v28 = vpop.eup %7302  ;;  %v1169_v62 = vmul.f32 1.442695, %v1131_v57  ;;  %1257 = vadd.xlane.f32.xlu1 %v8520_v27 }
 0x2eb   :  { %1225 = vadd.xlane.f32.xlu0 %v8522_v28  ;;  %v1106_v2 = vpop.xlane.xlu0 %1105  ;;  %v1108_v58 = vpop.xlane.xlu1 %1107 }
 0x2ec   :  { %7312 = vpow2.f32 %v1169_v62  ;;  %v1147_v9 = vsub.f32 %v8438_v26, %v1106_v2  ;;  %v1171_v26 = vmul.f32 1.442695, %v1132_v55  ;;  %v1148_v5 = vsub.f32 %v8450_v37, %v1108_v58 }
 0x2ed   :  { %v8528_v22 = vpop.eup %7304  ;;  %7314 = vpow2.f32 %v1159_v4 }
 0x2ee   :  { %v1201_v19 = vmul.f32 1.442695, %v1147_v9 }
 0x2ef   :  { %1221 = vadd.xlane.f32.xlu0 %v8528_v22  ;;  %v1070_v35 = vpop.xlane.xlu0 %1069  ;;  %v1072_v63 = vpop.xlane.xlu1 %1071 }
 0x2f0   :  { %7316 = vpow2.f32 %v1201_v19  ;;  %v1129_v24 = vsub.f32 %v8440_v44, %v1070_v35  ;;  %v1130_v43 = vsub.f32 %v8452_v31, %v1072_v63  ;;  %v1203_v44 = vmul.f32 1.442695, %v1148_v5 }
 0x2f1   :  { %v8533_v50 = vpop.eup %7306  ;;  %7318 = vpow2.f32 %v1191_v56 }
 0x2f2   :  { %v1165_v54 = vmul.f32 1.442695, %v1129_v24  ;;  %1253 = vadd.xlane.f32.xlu1 %v8533_v50  ;;  %v8539_v42 = vpop.eup %7308  ;;  %v1167_v37 = vmul.f32 1.442695, %v1130_v43 }
 0x2f3   :  { %v1102_v53 = vpop.xlane.xlu0 %1101  ;;  %v1104_v41 = vpop.xlane.xlu1 %1103 }
 0x2f4   :  { %7320 = vpow2.f32 %v1165_v54  ;;  %v1145_v8 = vsub.f32 %v8444_v47, %v1102_v53  ;;  %v1146_v57 = vsub.f32 %v8456_v21, %v1104_v41  ;;  %v8543_v4 = vpop.eup %7310 }
 0x2f5   :  { %7322 = vpow2.f32 %v1171_v26 }
 0x2f6   :  { %v1197_v0 = vmul.f32 1.442695, %v1145_v8  ;;  %1227 = vadd.xlane.f32.xlu1 %v8539_v42  ;;  %v1199_v47 = vmul.f32 1.442695, %v1146_v57 }
 0x2f7   :  { %v1082_v62 = vpop.xlane.xlu0 %1081  ;;  %v1084_v13 = vpop.xlane.xlu1 %1083 }
 0x2f8   :  { %7324 = vpow2.f32 %v1197_v0  ;;  %v1135_v2 = vsub.f32 %v8458_v25, %v1082_v62 }
 0x2f9   :  { %v8546_v31 = vpop.eup %7312  ;;  %7326 = vpow2.f32 %v1203_v44 }
 0x2fa   :  { %1233 = vadd.xlane.f32.xlu0 %v8546_v31  ;;  %1259 = vadd.xlane.f32.xlu1 %v8543_v4  ;;  %v8550_v19 = vpop.eup %7314  ;;  %7328 = vpow2.f32 %v1167_v37  ;;  %v1177_v21 = vmul.f32 1.442695, %v1135_v2 }
 0x2fb   :  { %v1114_v58 = vpop.xlane.xlu0 %1113  ;;  %v1116_v9 = vpop.xlane.xlu1 %1115  ;;  %7330 = vpow2.f32 %v1199_v47 }
 0x2fc   :  { %v1151_v56 = vsub.f32 %v8462_v34, %v1114_v58  ;;  %7332 = vpow2.f32 %v1177_v21  ;;  %v1136_v34 = vsub.f32 %v8470_v7, %v1084_v13  ;;  %v1152_v7 = vsub.f32 %v8474_v39, %v1116_v9 }
 0x2fd   :  { %v8553_v55 = vpop.eup %7316 }
 0x2fe   :  { %1265 = vadd.xlane.f32.xlu0 %v8553_v55  ;;  %1223 = vadd.xlane.f32.xlu1 %v8550_v19  ;;  %v8557_v63 = vpop.eup %7318  ;;  %v1209_v24 = vmul.f32 1.442695, %v1151_v56  ;;  %v1179_v57 = vmul.f32 1.442695, %v1136_v34  ;;  %v1211_v47 = vmul.f32 1.442695, %v1152_v7 }
 0x2ff   :  { %v1078_v25 = vpop.xlane.xlu0 %1077  ;;  %v1080_v35 = vpop.xlane.xlu1 %1079 }
 0x300   :  { %v1133_v54 = vsub.f32 %v8464_v51, %v1078_v25  ;;  %7334 = vpow2.f32 %v1209_v24  ;;  %v1134_v58 = vsub.f32 %v8476_v3, %v1080_v35 }
 0x301   :  { %v8560_v26 = vpop.eup %7320 }
 0x302   :  { %1229 = vadd.xlane.f32.xlu0 %v8560_v26  ;;  %1255 = vadd.xlane.f32.xlu1 %v8557_v63  ;;  %v1173_v5 = vmul.f32 1.442695, %v1133_v54  ;;  %v8565_v43 = vpop.eup %7322 }
 0x303   :  { %v1110_v53 = vpop.xlane.xlu0 %1109  ;;  %v1112_v41 = vpop.xlane.xlu1 %1111 }
 0x304   :  { %v1149_v8 = vsub.f32 %v8468_v18, %v1110_v53  ;;  %v1150_v0 = vsub.f32 %v8480_v52, %v1112_v41  ;;  %7336 = vpow2.f32 %v1173_v5 }
 0x305   :  { %v8569_v44 = vpop.eup %7324 }
 0x306   :  { %v1205_v51 = vmul.f32 1.442695, %v1149_v8  ;;  %1261 = vadd.xlane.f32.xlu0 %v8569_v44  ;;  %1235 = vadd.xlane.f32.xlu1 %v8565_v43  ;;  %v8574_v37 = vpop.eup %7326  ;;  %v1207_v2 = vmul.f32 1.442695, %v1150_v0 }
 0x307   :  { %v1090_v62 = vpop.xlane.xlu0 %1089  ;;  %v1092_v13 = vpop.xlane.xlu1 %1091 }
 0x308   :  { %7338 = vpow2.f32 %v1205_v51  ;;  %v1139_v18 = vsub.f32 %v8482_v30, %v1090_v62  ;;  %v8577_v52 = vpop.eup %7328  ;;  %v1175_v30 = vmul.f32 1.442695, %v1134_v58  ;;  %v1140_v24 = vsub.f32 %v8494_v38, %v1092_v13 }
 0x309   :  { %7340 = vpow2.f32 %v1179_v57  ;;  %v8584_v21 = vpop.eup %7330 }
 0x30a   :  { %1267 = vadd.xlane.f32.xlu0 %v8574_v37  ;;  %1231 = vadd.xlane.f32.xlu1 %v8577_v52  ;;  %7342 = vpow2.f32 %v1207_v2  ;;  %v1185_v56 = vmul.f32 1.442695, %v1139_v18  ;;  %v8586_v25 = vpop.eup %7332  ;;  %v1187_v41 = vmul.f32 1.442695, %v1140_v24 }
 0x30b   :  { %v1122_v39 = vpop.xlane.xlu0 %1121  ;;  %v8582_v9 = vpop.xlane.xlu1 %1123  ;;  %7344 = vpow2.f32 %v1211_v47 }
 0x30c   :  { %7346 = vpow2.f32 %v1185_v56  ;;  %v1155_v3 = vsub.f32 %v8486_v1, %v1122_v39 }
 0x30d   :  { %v8593_v34 = vpop.eup %7334  ;;  %7348 = vpow2.f32 %v1175_v30 }
 0x30e   :  { %1241 = vadd.xlane.f32.xlu0 %v8586_v25  ;;  %1263 = vadd.xlane.f32.xlu1 %v8584_v21  ;;  %v1217_v51 = vmul.f32 1.442695, %v1155_v3 }
 0x30f   :  { %v1086_v54 = vpop.xlane.xlu0 %1085  ;;  %v1088_v5 = vpop.xlane.xlu1 %1087 }
 0x310   :  { %v1137_v35 = vsub.f32 %v8488_v15, %v1086_v54  ;;  %v1138_v38 = vsub.f32 %v8502_v6, %v1088_v5 }
 0x311   :  { %v8596_v0 = vpop.eup %7336 }
 0x312   :  { %v1181_v53 = vmul.f32 1.442695, %v1137_v35  ;;  %1273 = vadd.xlane.f32.xlu0 %v8593_v34  ;;  %v1183_v7 = vmul.f32 1.442695, %v1138_v38  ;;  %v1156_v35 = vsub.f32 %v8498_v40, %v8582_v9 }
 0x313   :  { %v1753_v8 = vpop.permute.xlu0 %1752  ;;  %v1120_v56 = vpop.xlane.xlu1 %1119 }
 0x314   :  { %7350 = vpow2.f32 %v1181_v53  ;;  %7176 = vmatprep.subr.msk.bf16.mxu0 %vm770_vm0, %v1753_v8  ;;  %v1793_v1 = vsel %vm770_vm0, %v1753_v8, 0  ;;  %v1154_v30 = vsub.f32 %v8506_v49, %v1120_v56  ;;  %v1219_v53 = vmul.f32 1.442695, %v1156_v35 }
 0x315   :  { %v8601_v15 = vpop.eup %7338  ;;  %6720 = vmatpush3.bf16.xpose.msra.mxu0 %v1793_v1  ;;  %7352 = vpow2.f32 %v1187_v41 }
 0x316   :  { %1237 = vadd.xlane.f32.xlu0 %v8596_v0  ;;  %1269 = vadd.xlane.f32.xlu1 %v8601_v15  ;;  %v8605_v57 = vpop.eup %7340  ;;  %7354 = vpow2.f32 %v1217_v51  ;;  %v1215_v54 = vmul.f32 1.442695, %v1154_v30 }
 0x317   :  { %v8607_v62 = vpop.eup %7342  ;;  %7356 = vpow2.f32 %v1183_v7 }
 0x318   :  { %v8611_v6 = vpop.eup %7344  ;;  %7358 = vpow2.f32 %v1215_v54 }
 0x319   :  { %v8613_v13 = vpop.eup %7346 }
 0x31a   :  { %1271 = vadd.xlane.f32.xlu0 %v8607_v62  ;;  %1243 = vadd.xlane.f32.xlu1 %v8605_v57  ;;  %v8617_v2 = vpop.eup %7348 }
 0x31e   :  { %1249 = vadd.xlane.f32.xlu0 %v8613_v13  ;;  %1275 = vadd.xlane.f32.xlu1 %v8611_v6 }
 0x321   :  { %v8619_v18 = vpop.eup %7350 }
 0x322   :  { %1245 = vadd.xlane.f32.xlu0 %v8619_v18  ;;  %1239 = vadd.xlane.f32.xlu1 %v8617_v2  ;;  %v8623_v47 = vpop.eup %7352 }
 0x323   :  { %v8625_v58 = vpop.eup %7354 }
 0x324   :  { %v8629_v39 = vpop.eup %7356 }
 0x325   :  { %v8640_v41 = vpop.eup %7358 }
 0x326   :  { %1281 = vadd.xlane.f32.xlu0 %v8625_v58  ;;  %1251 = vadd.xlane.f32.xlu1 %v8623_v47 }
 0x32a   :  { %1247 = vadd.xlane.f32.xlu1 %v8629_v39 }
 0x33b   :  { %1953 = vrot.lane.b32.xlu1 %v8103_v36, %s7906_s2 }
 0x33c   :  { %1728 = vrot.lane.b32.xlu0 %v8002_v59, %s7906_s2 }
 0x344   :  { %v1118_v24 = vpop.xlane.xlu0 %1117 }
 0x345   :  { %v1153_v3 = vsub.f32 %v8492_v46, %v1118_v24 }
 0x347   :  { %v1213_v5 = vmul.f32 1.442695, %v1153_v3 }
 0x349   :  { %7360 = vpow2.f32 %v1213_v5  ;;  %v10685_v5 = vld [vmem:[#allocation34_spill] sm:$0xff] }
 0x34a   :  { %7362 = vpow2.f32 %v1219_v53 }
 0x356   :  { %v8643_v8 = vpop.eup %7360 }
 0x357   :  { %v8646_v49 = vpop.eup %7362 }
 0x35b   :  { %1279 = vadd.xlane.f32.xlu0 %v8640_v41 }
 0x35f   :  { %1277 = vadd.xlane.f32.xlu1 %v8643_v8 }
 0x363   :  { %1283 = vadd.xlane.f32.xlu1 %v8646_v49 }
 0x371   :  { %1947 = vrot.lane.b32.xlu0 %v8218_v10, %s7906_s2 }
 0x373   :  { %v8655_v40 = vpop.xlane.xlu1 %1257 }
 0x374   :  { %1730 = vrot.lane.b32.xlu1 %v8017_v12, %s7906_s2  ;;  %v1226_v46 = vpop.xlane.xlu0 %1225 }
 0x375   :  { %1921 = vrot.lane.b32.xlu0 %v8145_v20, %s7906_s2 }
 0x378   :  { %1951 = vrot.lane.b32.xlu1 %v8199_v11, %s7906_s2  ;;  %v1222_v51 = vpop.xlane.xlu0 %1221 }
 0x379   :  { %1732 = vrot.lane.b32.xlu0 %v8037_v32, %s7906_s2 }
 0x37b   :  { %v8661_v9 = vpop.xlane.xlu1 %1253 }
 0x37c   :  { %1949 = vrot.lane.b32.xlu1 %v8203_v23, %s7906_s2 }
 0x37d   :  { %1736 = vrot.lane.b32.xlu0 %v8080_v14, %s7906_s2 }
 0x37f   :  { %v1228_v38 = vpop.xlane.xlu1 %1227 }
 0x380   :  { %1945 = vrot.lane.b32.xlu1 %v8246_v17, %s7906_s2  ;;  %7364 = vrcp.f32 %v1228_v38 }
 0x381   :  { %1740 = vrot.lane.b32.xlu0 %v8114_v45, %s7906_s2  ;;  %7366 = vrcp.f32 %v1222_v51 }
 0x382   :  { %7368 = vrcp.f32 %v1226_v46 }
 0x383   :  { %v1234_v1 = vpop.xlane.xlu0 %1233  ;;  %v8671_v7 = vpop.xlane.xlu1 %1259 }
 0x384   :  { %1923 = vrot.lane.b32.xlu1 %v8288_v16, %s7906_s2  ;;  %v10692_v16 = vld [vmem:[#allocation49_spill] sm:$0xff] }
 0x385   :  { %1925 = vrot.lane.b32.xlu0 %v8291_v48, %s7906_s2 }
 0x387   :  { %v8677_v56 = vpop.xlane.xlu0 %1265  ;;  %v1224_v30 = vpop.xlane.xlu1 %1223 }
 0x388   :  { %1734 = vrot.lane.b32.xlu1 %v8057_v61, %s7906_s2  ;;  %7370 = vrcp.f32 %v1224_v30  ;;  %v10686_v30 = vld [vmem:[#allocation51_spill] sm:$0xff] }
 0x389   :  { %1929 = vrot.lane.b32.xlu0 %v8004_v60, %s7906_s2 }
 0x38b   :  { %v1230_v24 = vpop.xlane.xlu0 %1229  ;;  %v8683_v54 = vpop.xlane.xlu1 %1255 }
 0x38c   :  { %1738 = vrot.lane.b32.xlu1 %v8098_v29, %s7906_s2 }
 0x38d   :  { %1933 = vrot.lane.b32.xlu0 %v8039_v33, %s7906_s2  ;;  %v7365_v53 = vpop.eup %7364 }
 0x38e   :  { %v7367_v38 = vpop.eup %7366  ;;  %v1320_v48 = vmul.f32 %v7365_v53, %v8539_v42  ;;  %v10689_v42 = vld [vmem:[#allocation58_spill] sm:$0xff] }
 0x38f   :  { %v8689_v3 = vpop.xlane.xlu0 %1261  ;;  %v1236_v35 = vpop.xlane.xlu1 %1235  ;;  %v1317_v45 = vmul.f32 %v7367_v38, %v8528_v22  ;;  %v10690_v22 = vld [vmem:[#allocation53_spill] sm:$0xff] }
 0x390   :  { %1742 = vrot.lane.b32.xlu1 %v10685_v5, %s7906_s2  ;;  %7372 = vrcp.f32 %v1236_v35  ;;  %v7369_v60 = vpop.eup %7368 }
 0x391   :  { %7374 = vrcp.f32 %v1230_v24  ;;  %v10687_v24 = vld [vmem:[#allocation16_spill] sm:$0xff]  ;;  %v1319_v5 = vmul.f32 %v7369_v60, %v8522_v28 }
 0x392   :  { %7376 = vrcp.f32 %v1234_v1 }
 0x393   :  { %v8693_v46 = vpop.xlane.xlu0 %1267  ;;  %v1232_v51 = vpop.xlane.xlu1 %1231  ;;  %v1350_v1 = vpack.c.bf16 %v1320_v48, %v1319_v5 }
 0x394   :  { %1927 = vrot.lane.b32.xlu1 %v10686_v30, %s7906_s2  ;;  %7378 = vrcp.f32 %v1232_v51  ;;  %v10688_v51 = vld [vmem:[#allocation24_spill] sm:$0xff] }
 0x395   :  { %v7371_v33 = vpop.eup %7370 }
 0x396   :  { %v1318_v35 = vmul.f32 %v7371_v33, %v8550_v19 }
 0x397   :  { %v1242_v29 = vpop.xlane.xlu0 %1241  ;;  %v1264_v14 = vpop.xlane.xlu1 %1263 }
 0x398   :  { %1931 = vrot.lane.b32.xlu1 %v10687_v24, %s7906_s2  ;;  %v1349_v61 = vpack.c.bf16 %v1318_v35, %v1317_v45 }
 0x39a   :  { %6657 = vmatprep.mubr.bf16.mxu1 %v1349_v61  ;;  %v10691_v61 = vld [vmem:[#allocation48_spill] sm:$0xff] }
 0x39b   :  { %v8703_v30 = vpop.xlane.xlu0 %1273  ;;  %6658 = vmatmul.mubr.bf16.vlgmr.msra.gmra.mxu1 %v1350_v1 }
 0x39c   :  { %1935 = vrot.lane.b32.xlu1 %v10688_v51, %s7906_s2  ;;  %6674 = vmatpush3.bf16.msra.mxu1 %v10689_v42 }
 0x39d   :  { %6675 = vmatprep.subr.bf16.mxu1 %v10690_v22  ;;  %v7373_v33 = vpop.eup %7372 }
 0x39e   :  { %v7375_v38 = vpop.eup %7374  ;;  %v1324_v48 = vmul.f32 %v7373_v33, %v8565_v43  ;;  %v10693_v43 = vld [vmem:[#allocation43_spill] sm:$0xff] }
 0x39f   :  { %v1238_v19 = vpop.xlane.xlu0 %1237  ;;  %v8709_v53 = vpop.xlane.xlu1 %1269  ;;  %v1321_v35 = vmul.f32 %v7375_v38, %v8560_v26 }
 0x3a0   :  { %v7377_v60 = vpop.eup %7376  ;;  %6676 = vmatpush3.bf16.msra.mxu1 %v10690_v22 }
 0x3a1   :  { %v7379_v45 = vpop.eup %7378  ;;  %6677 = vmatprep.subr.bf16.mxu1 %v10691_v61  ;;  %v1323_v51 = vmul.f32 %v7377_v60, %v8546_v31  ;;  %v10694_v31 = vld [vmem:[#allocation44_spill] sm:$0xff] }
 0x3a2   :  { %v1322_v1 = vmul.f32 %v7379_v45, %v8577_v52 }
 0x3a3   :  { %v8714_v28 = vpop.xlane.xlu0 %1271  ;;  %v1244_v5 = vpop.xlane.xlu1 %1243  ;;  %v1352_v32 = vpack.c.bf16 %v1324_v48, %v1323_v51 }
 0x3a4   :  { %6678 = vmatpush3.bf16.msra.mxu1 %v10691_v61  ;;  %v1351_v24 = vpack.c.bf16 %v1322_v1, %v1321_v35  ;;  %7380 = vrcp.f32 %v1244_v5 }
 0x3a5   :  { %6679 = vmatprep.subr.bf16.mxu1 %v10692_v16  ;;  %7382 = vrcp.f32 %v1238_v19 }
 0x3a6   :  { %6661 = vmatprep.mubr.bf16.mxu1 %v1351_v24  ;;  %7384 = vrcp.f32 %v1242_v29  ;;  %v10696_v29 = vld [vmem:[#allocation41_spill] sm:$0xff] }
 0x3a7   :  { %v1250_v17 = vpop.xlane.xlu0 %1249  ;;  %v8721_v20 = vpop.xlane.xlu1 %1275  ;;  %6662 = vmatmul.mubr.bf16.gmra.mxu1 %v1352_v32  ;;  %v10695_v32 = vld [vmem:[#allocation40_spill] sm:$0xff] }
 0x3a8   :  { %6680 = vmatpush3.bf16.msra.mxu1 %v10692_v16 }
 0x3a9   :  { %6681 = vmatprep.subr.bf16.mxu1 %v10693_v43 }
 0x3ab   :  { %v1246_v26 = vpop.xlane.xlu0 %1245  ;;  %v1240_v52 = vpop.xlane.xlu1 %1239 }
 0x3ac   :  { %6682 = vmatpush3.bf16.msra.mxu1 %v10693_v43  ;;  %7386 = vrcp.f32 %v1240_v52 }
 0x3ad   :  { %6683 = vmatprep.subr.bf16.mxu1 %v10694_v31  ;;  %7388 = vrcp.f32 %v8683_v54 }
 0x3ae   :  { %7390 = vrcp.f32 %v1246_v26 }
 0x3af   :  { %v8727_v51 = vpop.xlane.xlu0 %1281  ;;  %v1252_v24 = vpop.xlane.xlu1 %1251 }
 0x3b0   :  { %6684 = vmatpush3.bf16.msra.mxu1 %v10694_v31  ;;  %7392 = vrcp.f32 %v1252_v24 }
 0x3b1   :  { %6685 = vmatprep.subr.bf16.mxu1 %v10695_v32  ;;  %7394 = vrcp.f32 %v1250_v17  ;;  %v7381_v38 = vpop.eup %7380  ;;  %v10697_v17 = vld [vmem:[#allocation61_spill] sm:$0xff] }
 0x3b2   :  { %v7383_v54 = vpop.eup %7382  ;;  %v1328_v48 = vmul.f32 %v7381_v38, %v8605_v57 }
 0x3b3   :  { %v1729_v33 = vpop.permute.xlu0 %1728  ;;  %v1248_v19 = vpop.xlane.xlu1 %1247 }
 0x3b4   :  { %7396 = vrcp.f32 %v1248_v19  ;;  %6721 = vmatprep.mubr.msk.bf16.mxu0 %vm770_vm0, %v1729_v33  ;;  %6686 = vmatpush3.bf16.msra.mxu1 %v10695_v32  ;;  %v7385_v60 = vpop.eup %7384 }
 0x3b5   :  { %7398 = vrcp.f32 %v8661_v9  ;;  %6687 = vmatprep.subr.bf16.mxu1 %v10696_v29  ;;  %v1325_v9 = vmul.f32 %v7383_v54, %v8596_v0  ;;  %v1327_v35 = vmul.f32 %v7385_v60, %v8586_v25 }
 0x3b6   :  { %7400 = vrcp.f32 %v8671_v7 }
 0x3b7   :  { %7402 = vrcp.f32 %v1264_v14  ;;  %v1354_v7 = vpack.c.bf16 %v1328_v48, %v1327_v35 }
 0x3b8   :  { %6688 = vmatpush3.bf16.msra.mxu1 %v10696_v29  ;;  %7404 = vrcp.f32 %v8655_v40 }
 0x3b9   :  { %v7387_v45 = vpop.eup %7386  ;;  %7177 = vmatprep.subr.msk.bf16.mxu1 %vm770_vm0, %v10697_v17  ;;  %7406 = vrcp.f32 %v8689_v3 }
 0x3ba   :  { %v1326_v5 = vmul.f32 %v7387_v45, %v8617_v2  ;;  %v7389_v1 = vpop.eup %7388  ;;  %7408 = vrcp.f32 %v8693_v46 }
 0x3bb   :  { %v7391_v52 = vpop.eup %7390  ;;  %7410 = vrcp.f32 %v8714_v28  ;;  %v1334_v40 = vmul.f32 %v7389_v1, %v8557_v63 }
 0x3bc   :  { %v1353_v26 = vpack.c.bf16 %v1326_v5, %v1325_v9  ;;  %v1329_v0 = vmul.f32 %v7391_v52, %v8619_v18  ;;  %7412 = vrcp.f32 %v8677_v56  ;;  %v2007_v9 = vsel %vm770_vm0, %v10697_v17, 0 }
 0x3bd   :  { %v7393_v24 = vpop.eup %7392  ;;  %7414 = vrcp.f32 %v8709_v53 }
 0x3be   :  { %6665 = vmatprep.mubr.bf16.mxu1 %v1353_v26  ;;  %v7395_v33 = vpop.eup %7394  ;;  %v1332_v25 = vmul.f32 %v7393_v24, %v8623_v47  ;;  %7416 = vrcp.f32 %v8721_v20  ;;  %v1954_v24 = vpop.permute.xlu1 %1953 }
 0x3bf   :  { %6666 = vmatmul.mubr.bf16.gmra.mxu1 %v1354_v7  ;;  %v1331_v19 = vmul.f32 %v7395_v33, %v8613_v13  ;;  %7418 = vrcp.f32 %v8703_v30  ;;  %v10699_v7 = vld [vmem:[#allocation59_spill] sm:$0xff] }
 0x3c1   :  { %v7397_v57 = vpop.eup %7396  ;;  %v1356_v46 = vpack.c.bf16 %v1332_v25, %v1331_v19 }
 0x3c2   :  { %v7399_v14 = vpop.eup %7398  ;;  %v1330_v2 = vmul.f32 %v7397_v57, %v8629_v39  ;;  %v1998_v57 = vsel %vm770_vm0, %v1954_v24, 0 }
 0x3c3   :  { %v1333_v38 = vmul.f32 %v7399_v14, %v8533_v50  ;;  %v7401_v18 = vpop.eup %7400 }
 0x3c4   :  { %v1355_v3 = vpack.c.bf16 %v1330_v2, %v1329_v0  ;;  %v7403_v39 = vpop.eup %7402  ;;  %v1336_v63 = vmul.f32 %v7401_v18, %v8543_v4  ;;  %v10698_v4 = vld [vmem:[#allocation60_spill] sm:$0xff] }
 0x3c5   :  { %v1357_v54 = vpack.c.bf16 %v1334_v40, %v1333_v38  ;;  %v7405_v47 = vpop.eup %7404  ;;  %v1338_v56 = vmul.f32 %v7403_v39, %v8584_v21  ;;  %v2004_v17 = vsel %vm770_vm0, %v10698_v4, 0 }
 0x3c6   :  { %6669 = vmatprep.mubr.bf16.mxu1 %v1355_v3  ;;  %v7407_v28 = vpop.eup %7406  ;;  %v1335_v13 = vmul.f32 %v7405_v47, %v8520_v27 }
 0x3c7   :  { %6670 = vmatmul.mubr.bf16.gmra.mxu1 %v1356_v46  ;;  %v1337_v50 = vmul.f32 %v7407_v28, %v8569_v44  ;;  %v7409_v60 = vpop.eup %7408 }
 0x3c8   :  { %6689 = vmatprep.mubr.bf16.mxu1 %v1357_v54  ;;  %v1358_v53 = vpack.c.bf16 %v1336_v63, %v1335_v13  ;;  %v7411_v48 = vpop.eup %7410  ;;  %v1340_v21 = vmul.f32 %v7409_v60, %v8574_v37 }
 0x3c9   :  { %v1359_v45 = vpack.c.bf16 %v1338_v56, %v1337_v50  ;;  %v7413_v5 = vpop.eup %7412  ;;  %v1342_v27 = vmul.f32 %v7411_v48, %v8607_v62 }
 0x3ca   :  { %v7415_v20 = vpop.eup %7414  ;;  %v1339_v44 = vmul.f32 %v7413_v5, %v8553_v55 }
 0x3cb   :  { %v1341_v30 = vmul.f32 %v7415_v20, %v8601_v15  ;;  %v7417_v1 = vpop.eup %7416  ;;  %v2001_v15 = vsel %vm770_vm0, %v10699_v7, 0 }
 0x3cc   :  { %v1360_v35 = vpack.c.bf16 %v1340_v21, %v1339_v44  ;;  %v7419_v52 = vpop.eup %7418  ;;  %v1344_v37 = vmul.f32 %v7417_v1, %v8611_v6 }
 0x3cd   :  { %v1361_v26 = vpack.c.bf16 %v1342_v27, %v1341_v30  ;;  %v1343_v62 = vmul.f32 %v7419_v52, %v8593_v34 }
 0x3cf   :  { %6690 = vmatmul.mubr.bf16.vlgmr.msra.gmra.mxu1 %v1358_v53  ;;  %v1362_v55 = vpack.c.bf16 %v1344_v37, %v1343_v62 }
 0x3d0   :  { %6738 = vmatpush3.bf16.xpose.msra.mxu1 %v2007_v9  ;;  %6693 = vmatprep.mubr.bf16.mxu1 %v1359_v45 }
 0x3d1   :  { %7178 = vmatprep.subr.msk.bf16.mxu1 %vm770_vm0, %v10698_v4 }
 0x3d7   :  { %6694 = vmatmul.mubr.bf16.gmra.mxu1 %v1360_v35 }
 0x3d8   :  { %6740 = vmatpush3.bf16.xpose.msra.mxu1 %v2004_v17  ;;  %6697 = vmatprep.mubr.bf16.mxu1 %v1361_v26 }
 0x3d9   :  { %7179 = vmatprep.subr.msk.bf16.mxu1 %vm770_vm0, %v10699_v7 }
 0x3df   :  { %6698 = vmatmul.mubr.bf16.gmra.mxu1 %v1362_v55 }
 0x3e0   :  { %6742 = vmatpush3.bf16.xpose.msra.mxu1 %v2001_v15 }
 0x3e1   :  { %7180 = vmatprep.subr.msk.bf16.mxu1 %vm770_vm0, %v1954_v24 }
 0x3e4   :  { %v1280_v33 = vpop.xlane.xlu0 %1279 }
 0x3e5   :  { %7420 = vrcp.f32 %v1280_v33 }
 0x3e8   :  { %v1948_v14 = vpop.permute.xlu0 %1947  ;;  %v1278_v0 = vpop.xlane.xlu1 %1277  ;;  %6744 = vmatpush3.bf16.xpose.msra.mxu1 %v1998_v57 }
 0x3e9   :  { %7422 = vrcp.f32 %v1278_v0  ;;  %v1989_v60 = vsel %vm770_vm0, %v1948_v14, 0 }
 0x3ea   :  { %7424 = vrcp.f32 %v8727_v51 }
 0x3ec   :  { %v1922_v34 = vpop.permute.xlu0 %1921  ;;  %v1284_v6 = vpop.xlane.xlu1 %1283 }
 0x3ed   :  { %7426 = vrcp.f32 %v1284_v6 }
 0x3f0   :  { %v1733_v2 = vpop.permute.xlu0 %1732  ;;  %v1731_v25 = vpop.permute.xlu1 %1730 }
 0x3f1   :  { %6722 = vmatmul.mubr.msk.bf16.vlgmr.msra.gmra.mxu0 %vm770_vm0, %v1731_v25 }
 0x3f2   :  { %6725 = vmatprep.mubr.msk.bf16.mxu0 %vm770_vm0, %v1733_v2  ;;  %v7421_v40 = vpop.eup %7420 }
 0x3f3   :  { %v1346_v51 = vmul.f32 %v7421_v40, %v8640_v41 }
 0x3f4   :  { %v1952_v3 = vpop.permute.xlu1 %1951  ;;  %v1737_v53 = vpop.permute.xlu0 %1736 }
 0x3f5   :  { %7181 = vmatprep.subr.msk.bf16.mxu1 %vm770_vm0, %v1952_v3  ;;  %v1995_v19 = vsel %vm770_vm0, %v1952_v3, 0 }
 0x3f6   :  { %v7423_v38 = vpop.eup %7422  ;;  %6746 = vmatpush3.bf16.xpose.msra.mxu1 %v1995_v19 }
 0x3f7   :  { %v1345_v46 = vmul.f32 %v7423_v38, %v8643_v8  ;;  %v7425_v18 = vpop.eup %7424 }
 0x3f8   :  { %v1950_v54 = vpop.permute.xlu1 %1949  ;;  %v1347_v28 = vmul.f32 %v7425_v18, %v8625_v58 }
 0x3f9   :  { %7182 = vmatprep.subr.msk.bf16.mxu1 %vm770_vm0, %v1950_v54  ;;  %v1363_v39 = vpack.c.bf16 %v1346_v51, %v1345_v46  ;;  %v1992_v13 = vsel %vm770_vm0, %v1950_v54, 0 }
 0x3fa   :  { %v7427_v47 = vpop.eup %7426 }
 0x3fb   :  { %6701 = vmatprep.mubr.bf16.mxu1 %v1363_v39  ;;  %v1348_v63 = vmul.f32 %v7427_v47, %v8646_v49  ;;  %v1741_v49 = vpop.permute.xlu0 %1740 }
 0x3fc   :  { %v1946_v56 = vpop.permute.xlu1 %1945 }
 0x3fd   :  { %v1364_v50 = vpack.c.bf16 %v1348_v63, %v1347_v28  ;;  %v1986_v45 = vsel %vm770_vm0, %v1946_v56, 0 }
 0x3fe   :  { %6748 = vmatpush3.bf16.xpose.msra.mxu1 %v1992_v13 }
 0x3ff   :  { %6702 = vmatmul.mubr.bf16.gmra.mxu1 %v1364_v50  ;;  %7183 = vmatprep.subr.msk.bf16.mxu1 %vm770_vm0, %v1948_v14  ;;  %v1926_v9 = vpop.permute.xlu0 %1925 }
 0x400   :  { %6753 = vmatprep.mubr.msk.bf16.mxu1 %vm770_vm0, %v1922_v34  ;;  %v1924_v41 = vpop.permute.xlu1 %1923 }
 0x403   :  { %v1930_v20 = vpop.permute.xlu0 %1929 }
 0x404   :  { %v1735_v8 = vpop.permute.xlu1 %1734 }
 0x405   :  { %6726 = vmatmul.mubr.msk.bf16.gmra.mxu0 %vm770_vm0, %v1735_v8 }
 0x406   :  { %6729 = vmatprep.mubr.msk.bf16.mxu0 %vm770_vm0, %v1737_v53  ;;  %6750 = vmatpush3.bf16.xpose.msra.mxu1 %v1989_v60 }
 0x407   :  { %7184 = vmatprep.subr.msk.bf16.mxu1 %vm770_vm0, %v1946_v56  ;;  %v1934_v21 = vpop.permute.xlu0 %1933 }
 0x408   :  { %v1739_v58 = vpop.permute.xlu1 %1738 }
 0x40c   :  { %v1743_v48 = vpop.permute.xlu1 %1742 }
 0x40d   :  { %6730 = vmatmul.mubr.msk.bf16.gmra.mxu0 %vm770_vm0, %v1739_v58 }
 0x40e   :  { %6733 = vmatprep.mubr.msk.bf16.mxu0 %vm770_vm0, %v1741_v49  ;;  %6752 = vmatpush3.bf16.xpose.msra.mxu1 %v1986_v45 }
 0x410   :  { %v1928_v5 = vpop.permute.xlu1 %1927 }
 0x414   :  { %v1932_v4 = vpop.permute.xlu1 %1931 }
 0x415   :  { %6734 = vmatmul.mubr.msk.bf16.gmra.mxu0 %vm770_vm0, %v1743_v48  ;;  %6754 = vmatmul.mubr.msk.bf16.vlgmr.msra.gmra.mxu1 %vm770_vm0, %v1924_v41 }
 0x416   :  { %6757 = vmatprep.mubr.msk.bf16.mxu1 %vm770_vm0, %v1926_v9 }
 0x418   :  { %v1936_v27 = vpop.permute.xlu1 %1935 }
 0x41d   :  { %6758 = vmatmul.mubr.msk.bf16.gmra.mxu1 %vm770_vm0, %v1928_v5 }
 0x41e   :  { %6761 = vmatprep.mubr.msk.bf16.mxu1 %vm770_vm0, %v1930_v20 }
 0x425   :  { %6762 = vmatmul.mubr.msk.bf16.gmra.mxu1 %vm770_vm0, %v1932_v4 }
 0x426   :  { %6765 = vmatprep.mubr.msk.bf16.mxu1 %vm770_vm0, %v1934_v21 }
 0x42d   :  { %6766 = vmatmul.mubr.msk.bf16.gmra.mxu1 %vm770_vm0, %v1936_v27 }
 0x45b   :  { %v6659_v44 = vpop.f32.mrf.mxu1 }
 0x45c   :  { %v5972_v30 = vpack.c.bf16 %v6659_v44, %v6659_v44 }
 0x45d   :  { %v1399_v35 = vpop.f32.mrf.mxu1 }
 0x45e   :  { %1690 = vst.msk [vmem:[#allocation2 + $0x8] sm:$0xf] %vm1687_vm1, %v5972_v30  ;;  %v5970_v1 = vpack.c.bf16 %v1399_v35, %v1399_v35 }
 0x45f   :  { %v6660_v26 = vpop.f32.mrf.mxu1 }
 0x460   :  { %1688 = vst.msk [vmem:[#allocation2] sm:$0xf] %vm1687_vm1, %v5970_v1  ;;  %v5973_v17 = vpack.c.bf16 %v6660_v26, %v6660_v26 }
 0x461   :  { %v1402_v52 = vpop.f32.mrf.mxu1 }
 0x462   :  { %1691 = vst.msk [vmem:[#allocation2 + $0xc] sm:$0xf] %vm1687_vm1, %v5973_v17  ;;  %v5971_v7 = vpack.c.bf16 %v1402_v52, %v1402_v52 }
 0x464   :  { %1689 = vst.msk [vmem:[#allocation2 + $0x4] sm:$0xf] %vm1687_vm1, %v5971_v7 }
 0x467   :  { %v6663_v37 = vpop.f32.mrf.mxu1 }
 0x468   :  { %v5976_v62 = vpack.c.bf16 %v6663_v37, %v6663_v37 }
 0x469   :  { %v1415_v55 = vpop.f32.mrf.mxu1 }
 0x46a   :  { %1694 = vst.msk [vmem:[#allocation2 + $0x18] sm:$0xf] %vm1687_vm1, %v5976_v62  ;;  %v5974_v15 = vpack.c.bf16 %v1415_v55, %v1415_v55 }
 0x46b   :  { %v6664_v24 = vpop.f32.mrf.mxu1 }
 0x46c   :  { %1692 = vst.msk [vmem:[#allocation2 + $0x10] sm:$0xf] %vm1687_vm1, %v5974_v15  ;;  %v5977_v33 = vpack.c.bf16 %v6664_v24, %v6664_v24 }
 0x46d   :  { %v1418_v57 = vpop.f32.mrf.mxu1 }
 0x46e   :  { %1695 = vst.msk [vmem:[#allocation2 + $0x1c] sm:$0xf] %vm1687_vm1, %v5977_v33  ;;  %v5975_v14 = vpack.c.bf16 %v1418_v57, %v1418_v57 }
 0x470   :  { %1693 = vst.msk [vmem:[#allocation2 + $0x14] sm:$0xf] %vm1687_vm1, %v5975_v14 }
 0x47f   :  { %v6667_v0 = vpop.f32.mrf.mxu1 }
 0x480   :  { %v5980_v34 = vpack.c.bf16 %v6667_v0, %v6667_v0 }
 0x481   :  { %v1431_v6 = vpop.f32.mrf.mxu1 }
 0x482   :  { %1698 = vst.msk [vmem:[#allocation2 + $0x28] sm:$0xf] %vm1687_vm1, %v5980_v34  ;;  %v5978_v2 = vpack.c.bf16 %v1431_v6, %v1431_v6 }
 0x483   :  { %v6668_v25 = vpop.f32.mrf.mxu1 }
 0x484   :  { %1696 = vst.msk [vmem:[#allocation2 + $0x20] sm:$0xf] %vm1687_vm1, %v5978_v2  ;;  %v5981_v40 = vpack.c.bf16 %v6668_v25, %v6668_v25 }
 0x485   :  { %v1434_v3 = vpop.f32.mrf.mxu1 }
 0x486   :  { %1699 = vst.msk [vmem:[#allocation2 + $0x2c] sm:$0xf] %vm1687_vm1, %v5981_v40  ;;  %v5979_v19 = vpack.c.bf16 %v1434_v3, %v1434_v3 }
 0x487   :  { %v6671_v38 = vpop.f32.mrf.mxu1 }
 0x488   :  { %1697 = vst.msk [vmem:[#allocation2 + $0x24] sm:$0xf] %vm1687_vm1, %v5979_v19  ;;  %v5984_v46 = vpack.c.bf16 %v6671_v38, %v6671_v38 }
 0x489   :  { %v1447_v51 = vpop.f32.mrf.mxu1 }
 0x48a   :  { %1702 = vst.msk [vmem:[#allocation2 + $0x38] sm:$0xf] %vm1687_vm1, %v5984_v46  ;;  %v5982_v18 = vpack.c.bf16 %v1447_v51, %v1447_v51 }
 0x48b   :  { %v6672_v54 = vpop.f32.mrf.mxu1 }
 0x48c   :  { %1700 = vst.msk [vmem:[#allocation2 + $0x30] sm:$0xf] %vm1687_vm1, %v5982_v18  ;;  %v5985_v39 = vpack.c.bf16 %v6672_v54, %v6672_v54 }
 0x48d   :  { %v1450_v47 = vpop.f32.mrf.mxu1 }
 0x48e   :  { %1703 = vst.msk [vmem:[#allocation2 + $0x3c] sm:$0xf] %vm1687_vm1, %v5985_v39  ;;  %v5983_v28 = vpack.c.bf16 %v1450_v47, %v1450_v47  ;;  %v10700_v47 = vld [vmem:[#allocation47_spill] sm:$0xff] }
 0x48f   :  { %v6691_v63 = vpop.f32.mrf.mxu1 }
 0x490   :  { %1701 = vst.msk [vmem:[#allocation2 + $0x34] sm:$0xf] %vm1687_vm1, %v5983_v28  ;;  %v5988_v56 = vpack.c.bf16 %v6691_v63, %v6691_v63  ;;  %v10701_v28 = vld [vmem:[#allocation42_spill] sm:$0xff] }
 0x491   :  { %v1496_v13 = vpop.f32.mrf.mxu1  ;;  %v10702_v63 = vld [vmem:[#allocation50_spill] sm:$0xff] }
 0x492   :  { %1706 = vst.msk [vmem:[#allocation2 + $0x48] sm:$0xf] %vm1687_vm1, %v5988_v56  ;;  %v5986_v50 = vpack.c.bf16 %v1496_v13, %v1496_v13  ;;  %v10703_v56 = vld [vmem:[#allocation54_spill] sm:$0xff]  ;;  %v10704_v13 = vld [vmem:[#allocation52_spill] sm:$0xff] }
 0x493   :  { %v6692_v41 = vpop.f32.mrf.mxu1 }
 0x494   :  { %1704 = vst.msk [vmem:[#allocation2 + $0x40] sm:$0xf] %vm1687_vm1, %v5986_v50  ;;  %v5989_v8 = vpack.c.bf16 %v6692_v41, %v6692_v41  ;;  %v10705_v50 = vld [vmem:[#allocation55_spill] sm:$0xff]  ;;  %v10706_v41 = vld [vmem:[#allocation56_spill] sm:$0xff] }
 0x495   :  { %v1499_v53 = vpop.f32.mrf.mxu1 }
 0x496   :  { %1707 = vst.msk [vmem:[#allocation2 + $0x4c] sm:$0xf] %vm1687_vm1, %v5989_v8  ;;  %v5987_v60 = vpack.c.bf16 %v1499_v53, %v1499_v53  ;;  %v10707_v8 = vld [vmem:[#allocation57_spill] sm:$0xff] }
 0x497   :  { %v6695_v58 = vpop.f32.mrf.mxu1  ;;  %v10708_v53 = vld [vmem:[#allocation25_spill] sm:$0xff] }
 0x498   :  { %1705 = vst.msk [vmem:[#allocation2 + $0x44] sm:$0xf] %vm1687_vm1, %v5987_v60  ;;  %v5992_v49 = vpack.c.bf16 %v6695_v58, %v6695_v58  ;;  %v10709_v60 = vld [vmem:[#allocation22_spill] sm:$0xff]  ;;  %v10710_v58 = vld [vmem:[#allocation35_spill] sm:$0xff] }
 0x499   :  { %v1512_v45 = vpop.f32.mrf.mxu1 }
 0x49a   :  { %1710 = vst.msk [vmem:[#allocation2 + $0x58] sm:$0xf] %vm1687_vm1, %v5992_v49  ;;  %v5990_v48 = vpack.c.bf16 %v1512_v45, %v1512_v45  ;;  %v10711_v49 = vld [vmem:[#allocation17_spill] sm:$0xff]  ;;  %v10712_v45 = vld [vmem:[#allocation38_spill] sm:$0xff] }
 0x49b   :  { %v6696_v9 = vpop.f32.mrf.mxu1 }
 0x49c   :  { %1708 = vst.msk [vmem:[#allocation2 + $0x50] sm:$0xf] %vm1687_vm1, %v5990_v48  ;;  %v5993_v5 = vpack.c.bf16 %v6696_v9, %v6696_v9  ;;  %v10713_v48 = vld [vmem:[#allocation33_spill] sm:$0xff]  ;;  %v10714_v9 = vld [vmem:[#allocation30_spill] sm:$0xff] }
 0x49d   :  { %v1515_v20 = vpop.f32.mrf.mxu1 }
 0x49e   :  { %1711 = vst.msk [vmem:[#allocation2 + $0x5c] sm:$0xf] %vm1687_vm1, %v5993_v5  ;;  %v5991_v4 = vpack.c.bf16 %v1515_v20, %v1515_v20  ;;  %v10715_v5 = vld [vmem:[#allocation28_spill] sm:$0xff]  ;;  %v10716_v20 = vld [vmem:[#allocation26_spill] sm:$0xff] }
 0x49f   :  { %v6699_v21 = vpop.f32.mrf.mxu1 }
 0x4a0   :  { %1709 = vst.msk [vmem:[#allocation2 + $0x54] sm:$0xf] %vm1687_vm1, %v5991_v4  ;;  %v5996_v27 = vpack.c.bf16 %v6699_v21, %v6699_v21  ;;  %v10717_v4 = vld [vmem:[#allocation21_spill] sm:$0xff]  ;;  %v10718_v21 = vld [vmem:[#allocation18_spill] sm:$0xff] }
 0x4a1   :  { %v1528_v44 = vpop.f32.mrf.mxu1 }
 0x4a2   :  { %1714 = vst.msk [vmem:[#allocation2 + $0x68] sm:$0xf] %vm1687_vm1, %v5996_v27  ;;  %v5994_v30 = vpack.c.bf16 %v1528_v44, %v1528_v44 }
 0x4a3   :  { %v6700_v35 = vpop.f32.mrf.mxu1 }
 0x4a4   :  { %1712 = vst.msk [vmem:[#allocation2 + $0x60] sm:$0xf] %vm1687_vm1, %v5994_v30  ;;  %v5997_v1 = vpack.c.bf16 %v6700_v35, %v6700_v35 }
 0x4a5   :  { %v1531_v26 = vpop.f32.mrf.mxu1 }
 0x4a6   :  { %1715 = vst.msk [vmem:[#allocation2 + $0x6c] sm:$0xf] %vm1687_vm1, %v5997_v1  ;;  %v5995_v17 = vpack.c.bf16 %v1531_v26, %v1531_v26 }
 0x4a8   :  { %1713 = vst.msk [vmem:[#allocation2 + $0x64] sm:$0xf] %vm1687_vm1, %v5995_v17 }
 0x4b1   :  { %v8836_v52 = vpop.f32.mrf.mxu0 }
 0x4b3   :  { %v8838_v7 = vpop.f32.mrf.mxu0 }
 0x4b4   :  { %2106 = vmax.xlane.f32.xlu0 %v8838_v7 }
 0x4b5   :  { %v8841_v37 = vpop.f32.mrf.mxu0 }
 0x4b7   :  { %v8843_v62 = vpop.f32.mrf.mxu0 }
 0x4b8   :  { %2110 = vmax.xlane.f32.xlu0 %v8836_v52  ;;  %2108 = vmax.xlane.f32.xlu1 %v8843_v62 }
 0x4bc   :  { %2112 = vmax.xlane.f32.xlu0 %v8841_v37 }
 0x4bf   :  { %v6703_v55 = vpop.f32.mrf.mxu1 }
 0x4c0   :  { %v6000_v15 = vpack.c.bf16 %v6703_v55, %v6703_v55 }
 0x4c1   :  { %v1544_v24 = vpop.f32.mrf.mxu1 }
 0x4c2   :  { %1718 = vst.msk [vmem:[#allocation2 + $0x78] sm:$0xf] %vm1687_vm1, %v6000_v15  ;;  %v5998_v33 = vpack.c.bf16 %v1544_v24, %v1544_v24 }
 0x4c3   :  { %v6704_v57 = vpop.f32.mrf.mxu1 }
 0x4c4   :  { %1716 = vst.msk [vmem:[#allocation2 + $0x70] sm:$0xf] %vm1687_vm1, %v5998_v33  ;;  %v6001_v14 = vpack.c.bf16 %v6704_v57, %v6704_v57 }
 0x4c5   :  { %v1547_v0 = vpop.f32.mrf.mxu1  ;;  %v8850_v34 = vpop.f32.mrf.mxu0 }
 0x4c6   :  { %1719 = vst.msk [vmem:[#allocation2 + $0x7c] sm:$0xf] %vm1687_vm1, %v6001_v14  ;;  %v5999_v6 = vpack.c.bf16 %v1547_v0, %v1547_v0 }
 0x4c7   :  { %v8853_v2 = vpop.f32.mrf.mxu0 }
 0x4c8   :  { %1717 = vst.msk [vmem:[#allocation2 + $0x74] sm:$0xf] %vm1687_vm1, %v5999_v6  ;;  %2114 = vmax.xlane.f32.xlu0 %v8853_v2 }
 0x4c9   :  { %v8857_v25 = vpop.f32.mrf.mxu0 }
 0x4cb   :  { %v8859_v40 = vpop.f32.mrf.mxu0 }
 0x4cc   :  { %2118 = vmax.xlane.f32.xlu0 %v8850_v34  ;;  %2116 = vmax.xlane.f32.xlu1 %v8859_v40 }
 0x4cd   :  { %v8863_v3 = vpop.f32.mrf.mxu0 }
 0x4cf   :  { %v8865_v19 = vpop.f32.mrf.mxu0 }
 0x4d0   :  { %2120 = vmax.xlane.f32.xlu1 %v8857_v25  ;;  %2122 = vmax.xlane.f32.xlu0 %v8865_v19 }
 0x4d1   :  { %v8869_v38 = vpop.f32.mrf.mxu0 }
 0x4d3   :  { %v8871_v46 = vpop.f32.mrf.mxu0 }
 0x4d4   :  { %2126 = vmax.xlane.f32.xlu0 %v8863_v3  ;;  %2124 = vmax.xlane.f32.xlu1 %v8871_v46 }
 0x4d5   :  { %v8875_v51 = vpop.f32.mrf.mxu0 }
 0x4d7   :  { %v8877_v18 = vpop.f32.mrf.mxu0 }
 0x4d8   :  { %2128 = vmax.xlane.f32.xlu1 %v8869_v38  ;;  %2130 = vmax.xlane.f32.xlu0 %v8877_v18 }
 0x4d9   :  { %v8881_v54 = vpop.f32.mrf.mxu0 }
 0x4db   :  { %v8883_v39 = vpop.f32.mrf.mxu0 }
 0x4dc   :  { %2134 = vmax.xlane.f32.xlu0 %v8875_v51  ;;  %2132 = vmax.xlane.f32.xlu1 %v8883_v39 }
 0x4e0   :  { %2136 = vmax.xlane.f32.xlu1 %v8881_v54 }
 0x4f1   :  { %2430 = vrot.lane.b32.xlu1 %v10700_v47, %s7906_s2 }
 0x4f2   :  { %2432 = vrot.lane.b32.xlu0 %v10701_v28, %s7906_s2 }
 0x4f5   :  { %2428 = vrot.lane.b32.xlu1 %v10702_v63, %s7906_s2 }
 0x4f6   :  { %2424 = vrot.lane.b32.xlu0 %v10703_v56, %s7906_s2 }
 0x4f9   :  { %2426 = vrot.lane.b32.xlu1 %v10704_v13, %s7906_s2 }
 0x4fa   :  { %2559 = vrot.lane.b32.xlu0 %v10690_v22, %s7906_s2 }
 0x4fd   :  { %2422 = vrot.lane.b32.xlu1 %v10705_v50, %s7906_s2 }
 0x4fe   :  { %2553 = vrot.lane.b32.xlu0 %v10693_v43, %s7906_s2 }
 0x501   :  { %2420 = vrot.lane.b32.xlu1 %v10706_v41, %s7906_s2 }
 0x502   :  { %2551 = vrot.lane.b32.xlu0 %v10694_v31, %s7906_s2 }
 0x505   :  { %2418 = vrot.lane.b32.xlu1 %v10707_v8, %s7906_s2 }
 0x506   :  { %2915 = vrot.lane.b32.xlu0 %v10708_v53, %s7902_s28 }
 0x509   :  { %2561 = vrot.lane.b32.xlu1 %v10689_v42, %s7906_s2 }
 0x50a   :  { %3098 = vrot.lane.b32.xlu0 %v10709_v60, %s7902_s28 }
 0x50d   :  { %2923 = vrot.lane.b32.xlu1 %v10710_v58, %s7902_s28 }
 0x50e   :  { %2911 = vrot.lane.b32.xlu0 %v10711_v49, %s7902_s28 }
 0x511   :  { %2557 = vrot.lane.b32.xlu1 %v10691_v61, %s7906_s2 }
 0x512   :  { %2909 = vrot.lane.b32.xlu0 %v10712_v45, %s7902_s28 }
 0x515   :  { %2921 = vrot.lane.b32.xlu1 %v10713_v48, %s7902_s28 }
 0x519   :  { %2555 = vrot.lane.b32.xlu1 %v10692_v16, %s7906_s2 }
 0x51d   :  { %2919 = vrot.lane.b32.xlu1 %v10714_v9, %s7902_s28 }
 0x521   :  { %2549 = vrot.lane.b32.xlu1 %v10695_v32, %s7906_s2 }
 0x525   :  { %2917 = vrot.lane.b32.xlu1 %v10715_v5, %s7902_s28 }
 0x529   :  { %2547 = vrot.lane.b32.xlu1 %v10696_v29, %s7906_s2 }
 0x52d   :  { %3100 = vrot.lane.b32.xlu1 %v10716_v20, %s7902_s28 }
 0x531   :  { %2913 = vrot.lane.b32.xlu1 %v10717_v4, %s7902_s28 }
 0x535   :  { %3096 = vrot.lane.b32.xlu1 %v10718_v21, %s7902_s28 }
 0x539   :  { %3094 = vrot.lane.b32.xlu1 %v8103_v36, %s7902_s28 }
 0x53d   :  { %v2107_v27 = vpop.xlane.xlu0 %2106 }
 0x53e   :  { %v2170_v1 = vsub.f32 %v8838_v7, %v2107_v27 }
 0x540   :  { %v2202_v17 = vmul.f32 1.442695, %v2170_v1 }
 0x541   :  { %v2111_v44 = vpop.xlane.xlu0 %2110  ;;  %v2109_v15 = vpop.xlane.xlu1 %2108 }
 0x542   :  { %v2172_v30 = vsub.f32 %v8836_v52, %v2111_v44  ;;  %v2171_v24 = vsub.f32 %v8843_v62, %v2109_v15 }
 0x544   :  { %v2206_v35 = vmul.f32 1.442695, %v2172_v30  ;;  %v2204_v0 = vmul.f32 1.442695, %v2171_v24 }
 0x545   :  { %v2113_v26 = vpop.xlane.xlu0 %2112 }
 0x546   :  { %7428 = vpow2.f32 %v2206_v35  ;;  %v2173_v55 = vsub.f32 %v8841_v37, %v2113_v26 }
 0x547   :  { %7430 = vpow2.f32 %v2202_v17 }
 0x548   :  { %v2208_v33 = vmul.f32 1.442695, %v2173_v55 }
 0x54a   :  { %7432 = vpow2.f32 %v2208_v33 }
 0x54b   :  { %7434 = vpow2.f32 %v2204_v0 }
 0x551   :  { %v2115_v57 = vpop.xlane.xlu0 %2114 }
 0x552   :  { %v2174_v52 = vsub.f32 %v8853_v2, %v2115_v57 }
 0x553   :  { %v8948_v14 = vpop.eup %7428 }
 0x554   :  { %2270 = vadd.xlane.f32.xlu0 %v8948_v14  ;;  %v2210_v62 = vmul.f32 1.442695, %v2174_v52  ;;  %v8956_v55 = vpop.eup %7430 }
 0x555   :  { %v2119_v6 = vpop.xlane.xlu0 %2118  ;;  %v2117_v7 = vpop.xlane.xlu1 %2116 }
 0x556   :  { %v2176_v27 = vsub.f32 %v8850_v34, %v2119_v6  ;;  %v2175_v37 = vsub.f32 %v8859_v40, %v2117_v7 }
 0x557   :  { %v8960_v33 = vpop.eup %7432 }
 0x558   :  { %v2214_v44 = vmul.f32 1.442695, %v2176_v27  ;;  %v2212_v30 = vmul.f32 1.442695, %v2175_v37  ;;  %v8965_v6 = vpop.eup %7434 }
 0x559   :  { %v2123_v35 = vpop.xlane.xlu0 %2122  ;;  %v2121_v1 = vpop.xlane.xlu1 %2120 }
 0x55a   :  { %7436 = vpow2.f32 %v2214_v44  ;;  %v2178_v26 = vsub.f32 %v8865_v19, %v2123_v35  ;;  %v2177_v17 = vsub.f32 %v8857_v25, %v2121_v1 }
 0x55b   :  { %7438 = vpow2.f32 %v2212_v30 }
 0x55c   :  { %v2218_v2 = vmul.f32 1.442695, %v2178_v26  ;;  %7440 = vpow2.f32 %v2210_v62  ;;  %v2216_v40 = vmul.f32 1.442695, %v2177_v17 }
 0x55d   :  { %v2127_v15 = vpop.xlane.xlu0 %2126  ;;  %2266 = vadd.xlane.f32.xlu1 %v8956_v55  ;;  %v2125_v34 = vpop.xlane.xlu1 %2124 }
 0x55e   :  { %7442 = vpow2.f32 %v2218_v2  ;;  %v2180_v24 = vsub.f32 %v8863_v3, %v2127_v15  ;;  %v2179_v0 = vsub.f32 %v8871_v46, %v2125_v34  ;;  %v8981_v2 = vpop.f32.mrf.mxu1 }
 0x55f   :  { %7444 = vpow2.f32 %v2216_v40 }
 0x560   :  { %v2222_v25 = vmul.f32 1.442695, %v2180_v24  ;;  %v2220_v3 = vmul.f32 1.442695, %v2179_v0 }
 0x561   :  { %v2131_v57 = vpop.xlane.xlu0 %2130  ;;  %2272 = vadd.xlane.f32.xlu1 %v8960_v33  ;;  %v2129_v19 = vpop.xlane.xlu1 %2128 }
 0x562   :  { %v2181_v52 = vsub.f32 %v8869_v38, %v2129_v19  ;;  %7446 = vpow2.f32 %v2222_v25  ;;  %v2182_v17 = vsub.f32 %v8877_v18, %v2131_v57  ;;  %v8988_v18 = vpop.f32.mrf.mxu1 }
 0x564   :  { %v2224_v7 = vmul.f32 1.442695, %v2181_v52  ;;  %v2226_v34 = vmul.f32 1.442695, %v2182_v17  ;;  %v8995_v52 = vpop.f32.mrf.mxu1 }
 0x565   :  { %v2135_v27 = vpop.xlane.xlu0 %2134  ;;  %2268 = vadd.xlane.f32.xlu1 %v8965_v6  ;;  %v2133_v37 = vpop.xlane.xlu1 %2132 }
 0x566   :  { %v2184_v44 = vsub.f32 %v8875_v51, %v2135_v27  ;;  %v2183_v30 = vsub.f32 %v8883_v39, %v2133_v37  ;;  %7448 = vpow2.f32 %v2224_v7 }
 0x567   :  { %v8970_v62 = vpop.eup %7436  ;;  %7450 = vpow2.f32 %v2220_v3  ;;  %v9003_v3 = vpop.f32.mrf.mxu1 }
 0x568   :  { %v8972_v35 = vpop.eup %7438  ;;  %v2228_v46 = vmul.f32 1.442695, %v2183_v30  ;;  %2278 = vadd.xlane.f32.xlu0 %v8970_v62  ;;  %v2230_v51 = vmul.f32 1.442695, %v2184_v44 }
 0x569   :  { %v2433_v38 = vpop.permute.xlu0 %2432  ;;  %2276 = vadd.xlane.f32.xlu1 %v8972_v35  ;;  %v2137_v1 = vpop.xlane.xlu1 %2136 }
 0x56a   :  { %v8976_v26 = vpop.eup %7440  ;;  %6769 = vmatprep.subr.bf16.mxu0 %v2433_v38  ;;  %7452 = vpow2.f32 %v2228_v46  ;;  %v2185_v40 = vsub.f32 %v8881_v54, %v2137_v1  ;;  %v9009_v46 = vpop.f32.mrf.mxu1 }
 0x56b   :  { %v8979_v39 = vpop.eup %7442  ;;  %6770 = vmatpush3.bf16.msra.mxu0 %v2433_v38  ;;  %7454 = vpow2.f32 %v2230_v51 }
 0x56c   :  { %2274 = vadd.xlane.f32.xlu0 %v8976_v26  ;;  %v8986_v24 = vpop.eup %7444  ;;  %7456 = vpow2.f32 %v2226_v34  ;;  %v2232_v19 = vmul.f32 1.442695, %v2185_v40  ;;  %v9015_v17 = vpop.f32.mrf.mxu1 }
 0x56d   :  { %2282 = vadd.xlane.f32.xlu1 %v8979_v39  ;;  %v2431_v15 = vpop.permute.xlu1 %2430  ;;  %v2425_v27 = vpop.permute.xlu0 %2424 }
 0x56e   :  { %6771 = vmatprep.subr.bf16.mxu0 %v2431_v15  ;;  %7458 = vpow2.f32 %v2232_v19  ;;  %v9021_v34 = vpop.f32.mrf.mxu1 }
 0x56f   :  { %6772 = vmatpush3.bf16.msra.mxu0 %v2431_v15  ;;  %v8991_v25 = vpop.eup %7446 }
 0x570   :  { %2280 = vadd.xlane.f32.xlu0 %v8986_v24  ;;  %v9025_v19 = vpop.f32.mrf.mxu1 }
 0x571   :  { %v2429_v57 = vpop.permute.xlu1 %2428 }
 0x572   :  { %6773 = vmatprep.subr.bf16.mxu0 %v2429_v57 }
 0x573   :  { %6774 = vmatpush3.bf16.msra.mxu0 %v2429_v57  ;;  %v8993_v0 = vpop.eup %7448  ;;  %v2560_v57 = vpop.permute.xlu0 %2559 }
 0x574   :  { %2286 = vadd.xlane.f32.xlu0 %v8991_v25  ;;  %2288 = vadd.xlane.f32.xlu1 %v8993_v0  ;;  %v8999_v7 = vpop.eup %7450 }
 0x575   :  { %v2427_v54 = vpop.permute.xlu1 %2426 }
 0x576   :  { %6775 = vmatprep.subr.bf16.mxu0 %v2427_v54 }
 0x577   :  { %6776 = vmatpush3.bf16.msra.mxu0 %v2427_v54  ;;  %v9001_v37 = vpop.eup %7452 }
 0x578   :  { %2284 = vadd.xlane.f32.xlu0 %v8999_v7  ;;  %6777 = vmatprep.subr.bf16.mxu0 %v2425_v27  ;;  %v9007_v30 = vpop.eup %7454 }
 0x579   :  { %2292 = vadd.xlane.f32.xlu1 %v9001_v37  ;;  %v2423_v44 = vpop.permute.xlu1 %2422  ;;  %v9013_v1 = vpop.eup %7456 }
 0x57b   :  { %6778 = vmatpush3.bf16.msra.mxu0 %v2425_v27  ;;  %v9019_v15 = vpop.eup %7458 }
 0x57c   :  { %2294 = vadd.xlane.f32.xlu0 %v9007_v30  ;;  %6779 = vmatprep.subr.bf16.mxu0 %v2423_v44 }
 0x57d   :  { %2144 = vmax.xlane.f32.xlu1 %v8995_v52  ;;  %v2421_v38 = vpop.permute.xlu1 %2420 }
 0x57f   :  { %6780 = vmatpush3.bf16.msra.mxu0 %v2423_v44 }
 0x580   :  { %2290 = vadd.xlane.f32.xlu0 %v9013_v1  ;;  %6781 = vmatprep.subr.bf16.mxu0 %v2421_v38 }
 0x581   :  { %2140 = vmax.xlane.f32.xlu1 %v9003_v3  ;;  %v2419_v51 = vpop.permute.xlu1 %2418 }
 0x583   :  { %6782 = vmatpush3.bf16.msra.mxu0 %v2421_v38  ;;  %v2554_v38 = vpop.permute.xlu0 %2553 }
 0x584   :  { %2296 = vadd.xlane.f32.xlu0 %v9019_v15  ;;  %6783 = vmatprep.subr.bf16.mxu0 %v2419_v51 }
 0x585   :  { %2152 = vmax.xlane.f32.xlu1 %v9021_v34  ;;  %v2562_v40 = vpop.permute.xlu1 %2561 }
 0x586   :  { %6801 = vmatprep.subr.bf16.mxu1 %v2562_v40 }
 0x587   :  { %6784 = vmatpush3.bf16.msra.mxu0 %v2419_v51  ;;  %6802 = vmatpush3.bf16.msra.mxu1 %v2562_v40  ;;  %v9038_v40 = vpop.f32.mrf.mxu1  ;;  %v2552_v45 = vpop.permute.xlu0 %2551 }
 0x588   :  { %2142 = vmax.xlane.f32.xlu0 %v8981_v2  ;;  %6803 = vmatprep.subr.bf16.mxu1 %v2560_v57 }
 0x589   :  { %2148 = vmax.xlane.f32.xlu1 %v9025_v19  ;;  %v9029_v54 = vpop.permute.xlu1 %2923 }
 0x58a   :  { %7185 = vmatprep.subr.msk.bf16.mxu0 %vm770_vm0, %v9029_v54 }
 0x58b   :  { %6804 = vmatpush3.bf16.msra.mxu1 %v2560_v57  ;;  %v9074_v5 = vpop.permute.xlu0 %2915 }
 0x58c   :  { %2138 = vmax.xlane.f32.xlu0 %v8988_v18 }
 0x58d   :  { %v2558_v27 = vpop.permute.xlu1 %2557 }
 0x58e   :  { %6805 = vmatprep.subr.bf16.mxu1 %v2558_v27 }
 0x58f   :  { %6806 = vmatpush3.bf16.msra.mxu1 %v2558_v27  ;;  %v9045_v27 = vpop.f32.mrf.mxu1  ;;  %v9078_v9 = vpop.permute.xlu0 %3098 }
 0x590   :  { %2150 = vmax.xlane.f32.xlu0 %v9009_v46 }
 0x591   :  { %v9035_v44 = vpop.permute.xlu1 %2921 }
 0x594   :  { %2146 = vmax.xlane.f32.xlu0 %v9015_v17 }
 0x595   :  { %v2556_v51 = vpop.permute.xlu1 %2555 }
 0x596   :  { %6807 = vmatprep.subr.bf16.mxu1 %v2556_v51 }
 0x597   :  { %6808 = vmatpush3.bf16.msra.mxu1 %v2556_v51 }
 0x598   :  { %2158 = vmax.xlane.f32.xlu0 %v9038_v40  ;;  %6809 = vmatprep.subr.bf16.mxu1 %v2554_v38 }
 0x599   :  { %v9041_v57 = vpop.permute.xlu1 %2919 }
 0x59a   :  { %2895 = vrot.lane.b32.xlu1 %v8017_v12, %s7902_s28  ;;  %v9082_v12 = vpop.permute.xlu0 %2911 }
 0x59b   :  { %6810 = vmatpush3.bf16.msra.mxu1 %v2554_v38  ;;  %v9056_v38 = vpop.f32.mrf.mxu1 }
 0x59c   :  { %2154 = vmax.xlane.f32.xlu0 %v9045_v27  ;;  %6811 = vmatprep.subr.bf16.mxu1 %v2552_v45 }
 0x59d   :  { %v2550_v49 = vpop.permute.xlu1 %2549 }
 0x59e   :  { %v9088_v22 = vpop.permute.xlu0 %2909 }
 0x59f   :  { %6812 = vmatpush3.bf16.msra.mxu1 %v2552_v45  ;;  %v9059_v45 = vpop.f32.mrf.mxu1 }
 0x5a0   :  { %6813 = vmatprep.subr.bf16.mxu1 %v2550_v49 }
 0x5a1   :  { %v9048_v60 = vpop.permute.xlu1 %2917 }
 0x5a3   :  { %6814 = vmatpush3.bf16.msra.mxu1 %v2550_v49  ;;  %v9062_v49 = vpop.f32.mrf.mxu1 }
 0x5a5   :  { %v2548_v51 = vpop.permute.xlu1 %2547 }
 0x5a6   :  { %6815 = vmatprep.subr.bf16.mxu1 %v2548_v51 }
 0x5a7   :  { %6816 = vmatpush3.bf16.msra.mxu1 %v2548_v51  ;;  %v9065_v51 = vpop.f32.mrf.mxu1 }
 0x5a9   :  { %v9050_v20 = vpop.permute.xlu1 %3100  ;;  %v9068_v53 = vpop.f32.mrf.mxu1 }
 0x5aa   :  { %7193 = vmatprep.subr.msk.bf16.mxu1 %vm770_vm0, %v9050_v20 }
 0x5ad   :  { %v9076_v31 = vpop.permute.xlu1 %2913 }
 0x5b1   :  { %v9080_v43 = vpop.permute.xlu1 %3096 }
 0x5b2   :  { %2893 = vrot.lane.b32.xlu0 %v8002_v59, %s7902_s28  ;;  %v9071_v59 = vpop.f32.mrf.mxu1 }
 0x5b5   :  { %v9084_v48 = vpop.permute.xlu1 %3094 }
 0x5be   :  { %2160 = vmax.xlane.f32.xlu1 %v9056_v38 }
 0x5c2   :  { %2156 = vmax.xlane.f32.xlu1 %v9059_v45 }
 0x5c6   :  { %2166 = vmax.xlane.f32.xlu1 %v9062_v49 }
 0x5ca   :  { %2162 = vmax.xlane.f32.xlu1 %v9065_v51 }
 0x5ce   :  { %2168 = vmax.xlane.f32.xlu1 %v9068_v53 }
 0x5d2   :  { %2164 = vmax.xlane.f32.xlu1 %v9071_v59 }
 0x5dd   :  { %v2271_v58 = vpop.xlane.xlu0 %2270 }
 0x5e3   :  { %3092 = vrot.lane.b32.xlu1 %v8199_v11, %s7902_s28 }
 0x5e6   :  { %v2267_v36 = vpop.xlane.xlu1 %2266 }
 0x5ea   :  { %v2273_v21 = vpop.xlane.xlu1 %2272 }
 0x5eb   :  { %7460 = vrcp.f32 %v2273_v21 }
 0x5ec   :  { %7462 = vrcp.f32 %v2267_v36 }
 0x5ed   :  { %7464 = vrcp.f32 %v2271_v58 }
 0x5ee   :  { %v2269_v4 = vpop.xlane.xlu1 %2268 }
 0x5ef   :  { %7466 = vrcp.f32 %v2269_v4 }
 0x5f1   :  { %v2279_v42 = vpop.xlane.xlu0 %2278 }
 0x5f2   :  { %v2277_v29 = vpop.xlane.xlu1 %2276 }
 0x5f3   :  { %7468 = vrcp.f32 %v2277_v29 }
 0x5f5   :  { %v2275_v8 = vpop.xlane.xlu0 %2274 }
 0x5f6   :  { %7470 = vrcp.f32 %v2275_v8  ;;  %v2283_v11 = vpop.xlane.xlu1 %2282 }
 0x5f7   :  { %7472 = vrcp.f32 %v2279_v42 }
 0x5f8   :  { %v7461_v32 = vpop.eup %7460 }
 0x5f9   :  { %v2281_v41 = vpop.xlane.xlu0 %2280  ;;  %v7463_v16 = vpop.eup %7462  ;;  %v2365_v13 = vmul.f32 %v7461_v32, %v8960_v33  ;;  %v2971_v32 = vsel %vm770_vm0, %v9029_v54, 0 }
 0x5fa   :  { %7474 = vrcp.f32 %v2281_v41  ;;  %v7465_v50 = vpop.eup %7464  ;;  %v2362_v36 = vmul.f32 %v7463_v16, %v8956_v55 }
 0x5fb   :  { %v2364_v29 = vmul.f32 %v7465_v50, %v8948_v14 }
 0x5fc   :  { %v7467_v61 = vpop.eup %7466 }
 0x5fd   :  { %v2287_v21 = vpop.xlane.xlu0 %2286  ;;  %v2363_v58 = vmul.f32 %v7467_v61, %v8965_v6  ;;  %v2289_v4 = vpop.xlane.xlu1 %2288  ;;  %v2395_v8 = vpack.c.bf16 %v2365_v13, %v2364_v29 }
 0x5fe   :  { %7476 = vrcp.f32 %v2287_v21  ;;  %v2968_v21 = vsel %vm770_vm0, %v9035_v44, 0 }
 0x5ff   :  { %7478 = vrcp.f32 %v2289_v4  ;;  %v2394_v42 = vpack.c.bf16 %v2363_v58, %v2362_v36 }
 0x600   :  { %7480 = vrcp.f32 %v2283_v11  ;;  %v7469_v56 = vpop.eup %7468 }
 0x601   :  { %v2285_v63 = vpop.xlane.xlu0 %2284  ;;  %6785 = vmatprep.mubr.bf16.mxu0 %v2394_v42  ;;  %v2367_v50 = vmul.f32 %v7469_v56, %v8972_v35 }
 0x602   :  { %7482 = vrcp.f32 %v2285_v63  ;;  %v2293_v41 = vpop.xlane.xlu1 %2292  ;;  %6786 = vmatmul.mubr.bf16.vlgmr.msra.gmra.mxu0 %v2395_v8 }
 0x603   :  { %v7471_v16 = vpop.eup %7470  ;;  %6834 = vmatpush3.bf16.xpose.msra.mxu0 %v2971_v32  ;;  %7484 = vrcp.f32 %v2293_v41 }
 0x604   :  { %7186 = vmatprep.subr.msk.bf16.mxu0 %vm770_vm0, %v9035_v44  ;;  %v2366_v61 = vmul.f32 %v7471_v16, %v8976_v26  ;;  %v7473_v11 = vpop.eup %7472  ;;  %v2965_v16 = vsel %vm770_vm0, %v9041_v57, 0 }
 0x605   :  { %v2295_v13 = vpop.xlane.xlu0 %2294  ;;  %v2368_v33 = vmul.f32 %v7473_v11, %v8970_v62 }
 0x606   :  { %v2396_v14 = vpack.c.bf16 %v2367_v50, %v2366_v61  ;;  %v2145_v63 = vpop.xlane.xlu1 %2144 }
 0x607   :  { %v7475_v55 = vpop.eup %7474 }
 0x608   :  { %6789 = vmatprep.mubr.bf16.mxu0 %v2396_v14  ;;  %v2369_v6 = vmul.f32 %v7475_v55, %v8986_v24 }
 0x609   :  { %v2291_v54 = vpop.xlane.xlu0 %2290 }
 0x60a   :  { %7486 = vrcp.f32 %v2291_v54  ;;  %v2397_v36 = vpack.c.bf16 %v2369_v6, %v2368_v33  ;;  %v2141_v4 = vpop.xlane.xlu1 %2140  ;;  %v2962_v54 = vsel %vm770_vm0, %v9048_v60, 0 }
 0x60b   :  { %v7477_v26 = vpop.eup %7476  ;;  %6836 = vmatpush3.bf16.xpose.msra.mxu0 %v2968_v21  ;;  %7488 = vrcp.f32 %v2295_v13  ;;  %v2187_v8 = vsub.f32 %v9003_v3, %v2141_v4  ;;  %v2953_v4 = vsel %vm770_vm0, %v9082_v12, 0 }
 0x60c   :  { %v7479_v56 = vpop.eup %7478  ;;  %7187 = vmatprep.subr.msk.bf16.mxu0 %vm770_vm0, %v9041_v57  ;;  %6790 = vmatmul.mubr.bf16.gmra.mxu0 %v2397_v36  ;;  %v2372_v24 = vmul.f32 %v7477_v26, %v8991_v25  ;;  %v2959_v26 = vsel %vm770_vm0, %v9074_v5, 0 }
 0x60d   :  { %v7481_v35 = vpop.eup %7480  ;;  %v2297_v58 = vpop.xlane.xlu0 %2296  ;;  %v2373_v29 = vmul.f32 %v7479_v56, %v8993_v0 }
 0x60e   :  { %7490 = vrcp.f32 %v2297_v58  ;;  %v2370_v44 = vmul.f32 %v7481_v35, %v8979_v39  ;;  %v2236_v39 = vmul.f32 1.442695, %v2187_v8 }
 0x60f   :  { %v7483_v62 = vpop.eup %7482  ;;  %v2399_v50 = vpack.c.bf16 %v2373_v29, %v2372_v24 }
 0x610   :  { %v2371_v42 = vmul.f32 %v7483_v62, %v8999_v7  ;;  %v7485_v25 = vpop.eup %7484  ;;  %v2189_v7 = vsub.f32 %v8995_v52, %v2145_v63  ;;  %v2153_v62 = vpop.xlane.xlu1 %2152 }
 0x611   :  { %v2143_v41 = vpop.xlane.xlu0 %2142  ;;  %v2375_v14 = vmul.f32 %v7485_v25, %v9001_v37 }
 0x612   :  { %v2188_v32 = vsub.f32 %v8981_v2, %v2143_v41  ;;  %v2398_v61 = vpack.c.bf16 %v2371_v42, %v2370_v44  ;;  %v2240_v6 = vmul.f32 1.442695, %v2189_v7 }
 0x613   :  { %6838 = vmatpush3.bf16.xpose.msra.mxu0 %v2965_v16 }
 0x614   :  { %v2238_v11 = vmul.f32 1.442695, %v2188_v32  ;;  %7188 = vmatprep.subr.msk.bf16.mxu0 %vm770_vm0, %v9048_v60  ;;  %6793 = vmatprep.mubr.bf16.mxu0 %v2398_v61  ;;  %v2149_v24 = vpop.xlane.xlu1 %2148  ;;  %v2193_v32 = vsub.f32 %v9021_v34, %v2153_v62  ;;  %v10725_v62 = vld [vmem:[#allocation32_spill] sm:$0xff] }
 0x615   :  { %v2139_v0 = vpop.xlane.xlu0 %2138  ;;  %6794 = vmatmul.mubr.bf16.gmra.mxu0 %v2399_v50  ;;  %v2191_v42 = vsub.f32 %v9025_v19, %v2149_v24  ;;  %v10727_v24 = vld [vmem:[#allocation46_spill] sm:$0xff] }
 0x616   :  { %7492 = vpow2.f32 %v2238_v11  ;;  %v2186_v2 = vsub.f32 %v8988_v18, %v2139_v0  ;;  %v2248_v25 = vmul.f32 1.442695, %v2193_v32 }
 0x617   :  { %v7487_v3 = vpop.eup %7486  ;;  %7494 = vpow2.f32 %v2236_v39  ;;  %v2244_v16 = vmul.f32 1.442695, %v2191_v42  ;;  %v10731_v42 = vld [vmem:[#allocation20_spill] sm:$0xff] }
 0x618   :  { %v2234_v13 = vmul.f32 1.442695, %v2186_v2  ;;  %v2374_v57 = vmul.f32 %v7487_v3, %v9013_v1  ;;  %v7489_v55 = vpop.eup %7488  ;;  %v2896_v29 = vpop.permute.xlu1 %2895 }
 0x619   :  { %v2151_v33 = vpop.xlane.xlu0 %2150  ;;  %v2376_v18 = vmul.f32 %v7489_v55, %v9007_v30 }
 0x61a   :  { %7496 = vpow2.f32 %v2234_v13  ;;  %v2400_v21 = vpack.c.bf16 %v2375_v14, %v2374_v57 }
 0x61b   :  { %v7491_v36 = vpop.eup %7490  ;;  %6840 = vmatpush3.bf16.xpose.msra.mxu0 %v2962_v54  ;;  %7498 = vpow2.f32 %v2240_v6 }
 0x61c   :  { %7189 = vmatprep.subr.msk.bf16.mxu0 %vm770_vm0, %v9074_v5  ;;  %6797 = vmatprep.mubr.bf16.mxu0 %v2400_v21  ;;  %v2377_v52 = vmul.f32 %v7491_v36, %v9019_v15  ;;  %v2956_v5 = vsel %vm770_vm0, %v9076_v31, 0 }
 0x61d   :  { %v2147_v37 = vpop.xlane.xlu0 %2146 }
 0x61e   :  { %v2401_v1 = vpack.c.bf16 %v2377_v52, %v2376_v18  ;;  %v2190_v41 = vsub.f32 %v9015_v17, %v2147_v37 }
 0x620   :  { %6798 = vmatmul.mubr.bf16.gmra.mxu0 %v2401_v1  ;;  %v2242_v61 = vmul.f32 1.442695, %v2190_v41  ;;  %v10733_v41 = vld [vmem:[#allocation24_spill] sm:$0xff] }
 0x621   :  { %v2159_v63 = vpop.xlane.xlu0 %2158 }
 0x622   :  { %v2196_v50 = vsub.f32 %v9038_v40, %v2159_v63  ;;  %v10719_v63 = vld [vmem:[#allocation36_spill] sm:$0xff] }
 0x623   :  { %v9128_v60 = vpop.eup %7492  ;;  %6842 = vmatpush3.bf16.xpose.msra.mxu0 %v2959_v26  ;;  %v10720_v26 = vld [vmem:[#allocation39_spill] sm:$0xff] }
 0x624   :  { %7190 = vmatprep.subr.msk.bf16.mxu0 %vm770_vm0, %v9076_v31  ;;  %2302 = vadd.xlane.f32.xlu0 %v9128_v60  ;;  %v9133_v30 = vpop.eup %7494  ;;  %v2950_v31 = vsel %vm770_vm0, %v9088_v22, 0 }
 0x625   :  { %v2155_v56 = vpop.xlane.xlu0 %2154 }
 0x626   :  { %v2194_v39 = vsub.f32 %v9045_v27, %v2155_v56  ;;  %v10721_v56 = vld [vmem:[#allocation19_spill] sm:$0xff] }
 0x627   :  { %v9135_v15 = vpop.eup %7496 }
 0x628   :  { %2298 = vadd.xlane.f32.xlu1 %v9135_v15  ;;  %2300 = vadd.xlane.f32.xlu0 %v9133_v30  ;;  %v9142_v58 = vpop.eup %7498  ;;  %v2250_v17 = vmul.f32 1.442695, %v2194_v39 }
 0x629   :  { %v2894_v35 = vpop.permute.xlu0 %2893 }
 0x62a   :  { %6849 = vmatprep.mubr.msk.bf16.mxu0 %vm770_vm0, %v2894_v35  ;;  %v10722_v35 = vld [vmem:[#allocation45_spill] sm:$0xff] }
 0x62b   :  { %6844 = vmatpush3.bf16.xpose.msra.mxu0 %v2956_v5  ;;  %v10723_v5 = vld [vmem:[#allocation27_spill] sm:$0xff] }
 0x62c   :  { %7191 = vmatprep.subr.msk.bf16.mxu0 %vm770_vm0, %v9082_v12  ;;  %2304 = vadd.xlane.f32.xlu1 %v9142_v58  ;;  %v2192_v12 = vsub.f32 %v9009_v46, %v2151_v33  ;;  %v2254_v46 = vmul.f32 1.442695, %v2196_v50 }
 0x62e   :  { %v2246_v8 = vmul.f32 1.442695, %v2192_v12  ;;  %v10729_v12 = vld [vmem:[#allocation14_spill] sm:$0xff] }
 0x630   :  { %7500 = vpow2.f32 %v2246_v8  ;;  %v10732_v8 = vld [vmem:[#allocation16_spill] sm:$0xff] }
 0x631   :  { %7502 = vpow2.f32 %v2244_v16 }
 0x632   :  { %7504 = vpow2.f32 %v2242_v61 }
 0x633   :  { %6846 = vmatpush3.bf16.xpose.msra.mxu0 %v2953_v4  ;;  %7506 = vpow2.f32 %v2248_v25  ;;  %v10724_v4 = vld [vmem:[#allocation23_spill] sm:$0xff] }
 0x634   :  { %7192 = vmatprep.subr.msk.bf16.mxu0 %vm770_vm0, %v9088_v22  ;;  %7508 = vpow2.f32 %v2254_v46 }
 0x635   :  { %7510 = vpow2.f32 %v2250_v17 }
 0x63b   :  { %6848 = vmatpush3.bf16.xpose.msra.mxu0 %v2950_v31  ;;  %v10726_v31 = vld [vmem:[#allocation29_spill] sm:$0xff] }
 0x63d   :  { %3088 = vrot.lane.b32.xlu1 %v8218_v10, %s7902_s28  ;;  %v9168_v14 = vpop.eup %7500 }
 0x63e   :  { %3090 = vrot.lane.b32.xlu0 %v8203_v23, %s7902_s28  ;;  %v9172_v55 = vpop.eup %7502 }
 0x63f   :  { %v9175_v6 = vpop.eup %7504 }
 0x642   :  { %6850 = vmatmul.mubr.msk.bf16.vlgmr.msra.gmra.mxu0 %vm770_vm0, %v2896_v29  ;;  %v10728_v29 = vld [vmem:[#allocation34_spill] sm:$0xff] }
 0x647   :  { %v2161_v44 = vpop.xlane.xlu1 %2160 }
 0x648   :  { %v2197_v7 = vsub.f32 %v9056_v38, %v2161_v44  ;;  %v10730_v44 = vld [vmem:[#allocation51_spill] sm:$0xff] }
 0x64a   :  { %v2256_v40 = vmul.f32 1.442695, %v2197_v7 }
 0x64b   :  { %v2157_v22 = vpop.xlane.xlu1 %2156 }
 0x64c   :  { %v2195_v19 = vsub.f32 %v9059_v45, %v2157_v22 }
 0x64e   :  { %v2252_v34 = vmul.f32 1.442695, %v2195_v19 }
 0x64f   :  { %v2167_v11 = vpop.xlane.xlu1 %2166 }
 0x650   :  { %v2200_v2 = vsub.f32 %v9062_v49, %v2167_v11  ;;  %7512 = vpow2.f32 %v2252_v34 }
 0x651   :  { %7514 = vpow2.f32 %v2256_v40  ;;  %v3148_v40 = vsel %vm770_vm0, %v9050_v20, 0  ;;  %v3142_v20 = vsel %vm770_vm0, %v9080_v43, 0 }
 0x652   :  { %v2262_v27 = vmul.f32 1.442695, %v2200_v2 }
 0x653   :  { %v2163_v0 = vpop.xlane.xlu1 %2162 }
 0x654   :  { %v2198_v13 = vsub.f32 %v9065_v51, %v2163_v0  ;;  %7516 = vpow2.f32 %v2262_v27  ;;  %v9179_v51 = vpop.eup %7506 }
 0x655   :  { %v9181_v54 = vpop.eup %7508 }
 0x656   :  { %v2258_v38 = vmul.f32 1.442695, %v2198_v13  ;;  %v9185_v21 = vpop.eup %7510 }
 0x657   :  { %v2169_v3 = vpop.xlane.xlu1 %2168 }
 0x658   :  { %v2201_v49 = vsub.f32 %v9068_v53, %v2169_v3  ;;  %7518 = vpow2.f32 %v2258_v38 }
 0x65b   :  { %v2165_v57 = vpop.xlane.xlu1 %2164 }
 0x65c   :  { %v2199_v45 = vsub.f32 %v9071_v59, %v2165_v57  ;;  %v2264_v59 = vmul.f32 1.442695, %v2201_v49 }
 0x65d   :  { %2310 = vadd.xlane.f32.xlu0 %v9168_v14  ;;  %v9187_v53 = vpop.eup %7512 }
 0x65e   :  { %v2260_v33 = vmul.f32 1.442695, %v2199_v45  ;;  %v9191_v36 = vpop.eup %7514 }
 0x65f   :  { %v3093_v22 = vpop.permute.xlu1 %3092 }
 0x660   :  { %7520 = vpow2.f32 %v2260_v33 }
 0x661   :  { %2306 = vadd.xlane.f32.xlu1 %v9175_v6  ;;  %2308 = vadd.xlane.f32.xlu0 %v9172_v55  ;;  %7522 = vpow2.f32 %v2264_v59  ;;  %v9193_v18 = vpop.eup %7516  ;;  %v3136_v59 = vsel %vm770_vm0, %v3093_v22, 0 }
 0x665   :  { %2312 = vadd.xlane.f32.xlu1 %v9179_v51  ;;  %2318 = vadd.xlane.f32.xlu0 %v9181_v54  ;;  %v9197_v52 = vpop.eup %7518 }
 0x669   :  { %2314 = vadd.xlane.f32.xlu1 %v9185_v21  ;;  %2316 = vadd.xlane.f32.xlu0 %v9187_v53 }
 0x66d   :  { %2320 = vadd.xlane.f32.xlu1 %v9191_v36  ;;  %2326 = vadd.xlane.f32.xlu0 %v9193_v18  ;;  %v9199_v37 = vpop.eup %7520 }
 0x66e   :  { %v9203_v1 = vpop.eup %7522 }
 0x671   :  { %2322 = vadd.xlane.f32.xlu1 %v9197_v52  ;;  %2324 = vadd.xlane.f32.xlu0 %v9199_v37 }
 0x675   :  { %2328 = vadd.xlane.f32.xlu1 %v9203_v1 }
 0x686   :  { %3070 = vrot.lane.b32.xlu1 %v10719_v63, %s7902_s28 }
 0x687   :  { %3086 = vrot.lane.b32.xlu0 %v10720_v26, %s7902_s28 }
 0x68a   :  { %2897 = vrot.lane.b32.xlu1 %v10721_v56, %s7902_s28 }
 0x68b   :  { %3072 = vrot.lane.b32.xlu0 %v10722_v35, %s7902_s28 }
 0x68e   :  { %2901 = vrot.lane.b32.xlu1 %v10723_v5, %s7902_s28 }
 0x68f   :  { %2899 = vrot.lane.b32.xlu0 %v10724_v4, %s7902_s28 }
 0x692   :  { %2905 = vrot.lane.b32.xlu1 %v10725_v62, %s7902_s28 }
 0x693   :  { %2903 = vrot.lane.b32.xlu0 %v10726_v31, %s7902_s28 }
 0x696   :  { %3074 = vrot.lane.b32.xlu1 %v10727_v24, %s7902_s28 }
 0x697   :  { %2907 = vrot.lane.b32.xlu0 %v10728_v29, %s7902_s28 }
 0x69a   :  { %3078 = vrot.lane.b32.xlu1 %v10729_v12, %s7902_s28 }
 0x69b   :  { %3076 = vrot.lane.b32.xlu0 %v10730_v44, %s7902_s28 }
 0x69e   :  { %3082 = vrot.lane.b32.xlu1 %v10731_v42, %s7902_s28 }
 0x69f   :  { %3080 = vrot.lane.b32.xlu0 %v10732_v8, %s7902_s28 }
 0x6a3   :  { %3084 = vrot.lane.b32.xlu0 %v10733_v41, %s7902_s28 }
 0x6ad   :  { %v2303_v32 = vpop.xlane.xlu0 %2302 }
 0x6b1   :  { %v2301_v16 = vpop.xlane.xlu0 %2300  ;;  %v2299_v61 = vpop.xlane.xlu1 %2298 }
 0x6b2   :  { %7524 = vrcp.f32 %v2301_v16 }
 0x6b3   :  { %7526 = vrcp.f32 %v2299_v61 }
 0x6b4   :  { %7528 = vrcp.f32 %v2303_v32 }
 0x6b5   :  { %v2305_v50 = vpop.xlane.xlu1 %2304  ;;  %v3091_v38 = vpop.permute.xlu0 %3090 }
 0x6b6   :  { %7530 = vrcp.f32 %v2305_v50 }
 0x6bf   :  { %v7525_v11 = vpop.eup %7524 }
 0x6c0   :  { %v7527_v25 = vpop.eup %7526  ;;  %v2379_v39 = vmul.f32 %v7525_v11, %v9133_v30 }
 0x6c1   :  { %v7529_v46 = vpop.eup %7528  ;;  %v2378_v19 = vmul.f32 %v7527_v25, %v9135_v15  ;;  %v3133_v25 = vsel %vm770_vm0, %v3091_v38, 0 }
 0x6c2   :  { %v2380_v7 = vmul.f32 %v7529_v46, %v9128_v60  ;;  %v9240_v3 = vpop.f32.mrf.mxu0  ;;  %v3145_v60 = vsel %vm770_vm0, %v9078_v9, 0 }
 0x6c3   :  { %v7531_v0 = vpop.eup %7530  ;;  %v2402_v17 = vpack.c.bf16 %v2379_v39, %v2378_v19  ;;  %10734 = vst [vmem:[#allocation61_spill] sm:$0xff] %v9240_v3 }
 0x6c4   :  { %v2381_v34 = vmul.f32 %v7531_v0, %v9142_v58  ;;  %v9246_v30 = vpop.f32.mrf.mxu0 }
 0x6c5   :  { %6817 = vmatprep.mubr.bf16.mxu1 %v2402_v17  ;;  %10735 = vst [vmem:[#allocation60_spill] sm:$0xff] %v9246_v30 }
 0x6c6   :  { %v2403_v2 = vpack.c.bf16 %v2381_v34, %v2380_v7  ;;  %v9248_v15 = vpop.f32.mrf.mxu0 }
 0x6c7   :  { %10736 = vst [vmem:[#allocation59_spill] sm:$0xff] %v9248_v15 }
 0x6c8   :  { %6818 = vmatmul.mubr.bf16.vlgmr.msra.gmra.mxu1 %v2403_v2  ;;  %v9254_v58 = vpop.f32.mrf.mxu0 }
 0x6c9   :  { %6866 = vmatpush3.bf16.xpose.msra.mxu1 %v3148_v40  ;;  %10737 = vst [vmem:[#allocation39_spill] sm:$0xff] %v9254_v58 }
 0x6ca   :  { %7194 = vmatprep.subr.msk.bf16.mxu1 %vm770_vm0, %v9078_v9  ;;  %v3139_v9 = vsel %vm770_vm0, %v9084_v48, 0 }
 0x6cc   :  { %v9256_v13 = vpop.f32.mrf.mxu0 }
 0x6cd   :  { %10738 = vst [vmem:[#allocation19_spill] sm:$0xff] %v9256_v13 }
 0x6ce   :  { %v9260_v27 = vpop.f32.mrf.mxu0 }
 0x6cf   :  { %10739 = vst [vmem:[#allocation27_spill] sm:$0xff] %v9260_v27 }
 0x6d0   :  { %v9264_v57 = vpop.f32.mrf.mxu0 }
 0x6d1   :  { %6868 = vmatpush3.bf16.xpose.msra.mxu1 %v3145_v60  ;;  %10740 = vst [vmem:[#allocation23_spill] sm:$0xff] %v9264_v57  ;;  %v10776_v57 = vld [vmem:[#allocation17_spill] sm:$0xff] }
 0x6d2   :  { %7195 = vmatprep.subr.msk.bf16.mxu1 %vm770_vm0, %v9080_v43  ;;  %v9268_v45 = vpop.f32.mrf.mxu0  ;;  %v3089_v43 = vpop.permute.xlu1 %3088 }
 0x6d3   :  { %10741 = vst [vmem:[#allocation32_spill] sm:$0xff] %v9268_v45  ;;  %v3130_v2 = vsel %vm770_vm0, %v3089_v43, 0 }
 0x6d5   :  { %v9271_v49 = vpop.f32.mrf.mxu0 }
 0x6d6   :  { %10742 = vst [vmem:[#allocation29_spill] sm:$0xff] %v9271_v49 }
 0x6d7   :  { %v9274_v32 = vpop.f32.mrf.mxu0 }
 0x6d8   :  { %10743 = vst [vmem:[#allocation62_spill] sm:$0xff] %v9274_v32  ;;  %v10773_v32 = vld [vmem:[#allocation26_spill] sm:$0xff] }
 0x6d9   :  { %6870 = vmatpush3.bf16.xpose.msra.mxu1 %v3142_v20 }
 0x6da   :  { %7196 = vmatprep.subr.msk.bf16.mxu1 %vm770_vm0, %v9084_v48  ;;  %v9277_v48 = vpop.f32.mrf.mxu0 }
 0x6db   :  { %10744 = vst [vmem:[#allocation63_spill] sm:$0xff] %v9277_v48  ;;  %v10767_v48 = vld [vmem:[#allocation15_spill] sm:$0xff] }
 0x6dc   :  { %v9280_v39 = vpop.f32.mrf.mxu0 }
 0x6dd   :  { %10745 = vst [vmem:[#allocation64_spill] sm:$0xff] %v9280_v39  ;;  %v10770_v39 = vld [vmem:[#allocation44_spill] sm:$0xff] }
 0x6e0   :  { %v9283_v19 = vpop.f32.mrf.mxu0 }
 0x6e1   :  { %6872 = vmatpush3.bf16.xpose.msra.mxu1 %v3139_v9  ;;  %10746 = vst [vmem:[#allocation65_spill] sm:$0xff] %v9283_v19  ;;  %v10765_v19 = vld [vmem:[#allocation31_spill] sm:$0xff] }
 0x6e2   :  { %7197 = vmatprep.subr.msk.bf16.mxu1 %vm770_vm0, %v3093_v22  ;;  %v9285_v34 = vpop.f32.mrf.mxu0 }
 0x6e3   :  { %10747 = vst [vmem:[#allocation66_spill] sm:$0xff] %v9285_v34  ;;  %v10766_v34 = vld [vmem:[#allocation33_spill] sm:$0xff] }
 0x6e6   :  { %v2311_v33 = vpop.xlane.xlu0 %2310 }
 0x6e9   :  { %6874 = vmatpush3.bf16.xpose.msra.mxu1 %v3136_v59  ;;  %v9290_v59 = vpop.f32.mrf.mxu0 }
 0x6ea   :  { %7198 = vmatprep.subr.msk.bf16.mxu1 %vm770_vm0, %v3091_v38  ;;  %v2309_v16 = vpop.xlane.xlu0 %2308  ;;  %v2307_v61 = vpop.xlane.xlu1 %2306  ;;  %10748 = vst [vmem:[#allocation67_spill] sm:$0xff] %v9290_v59  ;;  %v10763_v59 = vld [vmem:[#allocation18_spill] sm:$0xff] }
 0x6eb   :  { %7532 = vrcp.f32 %v2309_v16 }
 0x6ec   :  { %7534 = vrcp.f32 %v2307_v61 }
 0x6ed   :  { %7536 = vrcp.f32 %v2311_v33 }
 0x6ee   :  { %v2319_v50 = vpop.xlane.xlu0 %2318  ;;  %v2313_v11 = vpop.xlane.xlu1 %2312 }
 0x6ef   :  { %7538 = vrcp.f32 %v2313_v11 }
 0x6f1   :  { %6876 = vmatpush3.bf16.xpose.msra.mxu1 %v3133_v25 }
 0x6f2   :  { %7199 = vmatprep.subr.msk.bf16.mxu1 %vm770_vm0, %v3089_v43  ;;  %v2317_v22 = vpop.xlane.xlu0 %2316  ;;  %v2315_v46 = vpop.xlane.xlu1 %2314 }
 0x6f3   :  { %7540 = vrcp.f32 %v2317_v22  ;;  %v9296_v22 = vpop.f32.mrf.mxu0 }
 0x6f4   :  { %7542 = vrcp.f32 %v2315_v46  ;;  %10749 = vst [vmem:[#allocation68_spill] sm:$0xff] %v9296_v22  ;;  %v10764_v22 = vld [vmem:[#allocation53_spill] sm:$0xff] }
 0x6f5   :  { %7544 = vrcp.f32 %v2319_v50 }
 0x6f6   :  { %v2327_v0 = vpop.xlane.xlu0 %2326  ;;  %v2321_v17 = vpop.xlane.xlu1 %2320 }
 0x6f7   :  { %7546 = vrcp.f32 %v2321_v17 }
 0x6f8   :  { %v7533_v7 = vpop.eup %7532 }
 0x6f9   :  { %v7535_v40 = vpop.eup %7534  ;;  %6878 = vmatpush3.bf16.xpose.msra.mxu1 %v3130_v2  ;;  %v2383_v60 = vmul.f32 %v7533_v7, %v9172_v55 }
 0x6fa   :  { %v2325_v20 = vpop.xlane.xlu0 %2324  ;;  %v2323_v9 = vpop.xlane.xlu1 %2322  ;;  %v2382_v38 = vmul.f32 %v7535_v40, %v9175_v6 }
 0x6fb   :  { %v7537_v33 = vpop.eup %7536  ;;  %7548 = vrcp.f32 %v2325_v20 }
 0x6fc   :  { %7550 = vrcp.f32 %v2323_v9  ;;  %v2404_v16 = vpack.c.bf16 %v2383_v60, %v2382_v38  ;;  %v7539_v61 = vpop.eup %7538  ;;  %v2384_v43 = vmul.f32 %v7537_v33, %v9168_v14 }
 0x6fd   :  { %7552 = vrcp.f32 %v2327_v0  ;;  %v2385_v25 = vmul.f32 %v7539_v61, %v9179_v51 }
 0x6fe   :  { %6821 = vmatprep.mubr.bf16.mxu1 %v2404_v16  ;;  %v3087_v50 = vpop.permute.xlu0 %3086  ;;  %v2329_v11 = vpop.xlane.xlu1 %2328 }
 0x6ff   :  { %7554 = vrcp.f32 %v2329_v11  ;;  %7200 = vmatprep.subr.msk.bf16.mxu1 %vm770_vm0, %v3087_v50  ;;  %v3127_v55 = vsel %vm770_vm0, %v3087_v50, 0  ;;  %v2405_v46 = vpack.c.bf16 %v2385_v25, %v2384_v43 }
 0x700   :  { %v7541_v6 = vpop.eup %7540 }
 0x701   :  { %v7543_v17 = vpop.eup %7542  ;;  %6880 = vmatpush3.bf16.xpose.msra.mxu1 %v3127_v55  ;;  %v2387_v0 = vmul.f32 %v7541_v6, %v9187_v53 }
 0x702   :  { %6822 = vmatmul.mubr.bf16.gmra.mxu1 %v2405_v46  ;;  %v9299_v7 = vpop.f32.mrf.mxu0  ;;  %v3073_v2 = vpop.permute.xlu0 %3072  ;;  %v2386_v14 = vmul.f32 %v7543_v17, %v9185_v21 }
 0x703   :  { %v7545_v51 = vpop.eup %7544  ;;  %v3071_v40 = vpop.permute.xlu1 %3070 }
 0x704   :  { %v9302_v60 = vpop.f32.mrf.mxu0  ;;  %v2406_v20 = vpack.c.bf16 %v2387_v0, %v2386_v14  ;;  %v7547_v9 = vpop.eup %7546  ;;  %v2388_v33 = vmul.f32 %v7545_v51, %v9181_v54 }
 0x705   :  { %3247 = vmax.xlane.f32.xlu1 %v9302_v60  ;;  %v2389_v53 = vmul.f32 %v7547_v9, %v9191_v36 }
 0x706   :  { %6825 = vmatprep.mubr.bf16.mxu1 %v2406_v20  ;;  %v9305_v38 = vpop.f32.mrf.mxu0  ;;  %v2900_v16 = vpop.permute.xlu0 %2899 }
 0x707   :  { %v2898_v61 = vpop.permute.xlu1 %2897  ;;  %v2407_v21 = vpack.c.bf16 %v2389_v53, %v2388_v33 }
 0x708   :  { %v7549_v50 = vpop.eup %7548  ;;  %v9309_v11 = vpop.f32.mrf.mxu0  ;;  %6853 = vmatprep.mubr.msk.bf16.mxu0 %vm770_vm0, %v2898_v61 }
 0x709   :  { %v7551_v43 = vpop.eup %7550  ;;  %3253 = vmax.xlane.f32.xlu1 %v9305_v38  ;;  %3249 = vmax.xlane.f32.xlu0 %v9309_v11  ;;  %v2391_v25 = vmul.f32 %v7549_v50, %v9199_v37 }
 0x70a   :  { %v7553_v55 = vpop.eup %7552  ;;  %6854 = vmatmul.mubr.msk.bf16.gmra.mxu0 %vm770_vm0, %v2900_v16  ;;  %6826 = vmatmul.mubr.bf16.gmra.mxu1 %v2407_v21  ;;  %v2390_v54 = vmul.f32 %v7551_v43, %v9197_v52  ;;  %v2904_v37 = vpop.permute.xlu0 %2903 }
 0x70b   :  { %v2902_v36 = vpop.permute.xlu1 %2901  ;;  %v2392_v17 = vmul.f32 %v7553_v55, %v9193_v18 }
 0x70c   :  { %v7555_v6 = vpop.eup %7554  ;;  %6857 = vmatprep.mubr.msk.bf16.mxu0 %vm770_vm0, %v2902_v36  ;;  %v2408_v46 = vpack.c.bf16 %v2391_v25, %v2390_v54 }
 0x70d   :  { %3251 = vmax.xlane.f32.xlu0 %v9299_v7  ;;  %v2393_v0 = vmul.f32 %v7555_v6, %v9203_v1 }
 0x70e   :  { %6829 = vmatprep.mubr.bf16.mxu1 %v2408_v46  ;;  %v2908_v52 = vpop.permute.xlu0 %2907  ;;  %v10750_v46 = vld [vmem:[#allocation50_spill] sm:$0xff] }
 0x70f   :  { %v2409_v14 = vpack.c.bf16 %v2393_v0, %v2392_v17  ;;  %v2906_v51 = vpop.permute.xlu1 %2905  ;;  %v10751_v17 = vld [vmem:[#allocation54_spill] sm:$0xff]  ;;  %v10752_v0 = vld [vmem:[#allocation52_spill] sm:$0xff] }
 0x712   :  { %6858 = vmatmul.mubr.msk.bf16.gmra.mxu0 %vm770_vm0, %v2904_v37  ;;  %6830 = vmatmul.mubr.bf16.gmra.mxu1 %v2409_v14  ;;  %v3077_v18 = vpop.permute.xlu0 %3076  ;;  %v10753_v14 = vld [vmem:[#allocation48_spill] sm:$0xff]  ;;  %v10754_v37 = vld [vmem:[#allocation55_spill] sm:$0xff] }
 0x713   :  { %6861 = vmatprep.mubr.msk.bf16.mxu0 %vm770_vm0, %v2906_v51  ;;  %6881 = vmatprep.mubr.msk.bf16.mxu1 %vm770_vm0, %v3071_v40  ;;  %v3075_v20 = vpop.permute.xlu1 %3074  ;;  %v10755_v51 = vld [vmem:[#allocation49_spill] sm:$0xff] }
 0x716   :  { %v3081_v9 = vpop.permute.xlu0 %3080 }
 0x717   :  { %v3079_v1 = vpop.permute.xlu1 %3078 }
 0x71a   :  { %6862 = vmatmul.mubr.msk.bf16.gmra.mxu0 %vm770_vm0, %v2908_v52  ;;  %6882 = vmatmul.mubr.msk.bf16.vlgmr.msra.gmra.mxu1 %vm770_vm0, %v3073_v2  ;;  %v3085_v40 = vpop.permute.xlu0 %3084  ;;  %v10756_v52 = vld [vmem:[#allocation56_spill] sm:$0xff] }
 0x71b   :  { %6885 = vmatprep.mubr.msk.bf16.mxu1 %vm770_vm0, %v3075_v20  ;;  %v3083_v33 = vpop.permute.xlu1 %3082  ;;  %v10757_v20 = vld [vmem:[#allocation40_spill] sm:$0xff] }
 0x722   :  { %6886 = vmatmul.mubr.msk.bf16.gmra.mxu1 %vm770_vm0, %v3077_v18  ;;  %v10758_v18 = vld [vmem:[#allocation57_spill] sm:$0xff] }
 0x723   :  { %6889 = vmatprep.mubr.msk.bf16.mxu1 %vm770_vm0, %v3079_v1  ;;  %v10759_v1 = vld [vmem:[#allocation41_spill] sm:$0xff] }
 0x72a   :  { %6890 = vmatmul.mubr.msk.bf16.gmra.mxu1 %vm770_vm0, %v3081_v9  ;;  %v10760_v9 = vld [vmem:[#allocation58_spill] sm:$0xff] }
 0x72b   :  { %6893 = vmatprep.mubr.msk.bf16.mxu1 %vm770_vm0, %v3083_v33  ;;  %v10761_v33 = vld [vmem:[#allocation21_spill] sm:$0xff] }
 0x732   :  { %6894 = vmatmul.mubr.msk.bf16.gmra.mxu1 %vm770_vm0, %v3085_v40  ;;  %v10762_v40 = vld [vmem:[#allocation35_spill] sm:$0xff] }
 0x7ca   :  { %v9332_v53 = vpop.f32.mrf.mxu0 }
 0x7cc   :  { %v9334_v2 = vpop.f32.mrf.mxu0 }
 0x7cd   :  { %3255 = vmax.xlane.f32.xlu0 %v9334_v2 }
 0x7ce   :  { %v9337_v16 = vpop.f32.mrf.mxu0 }
 0x7d0   :  { %v9339_v61 = vpop.f32.mrf.mxu0 }
 0x7d1   :  { %3259 = vmax.xlane.f32.xlu0 %v9332_v53  ;;  %3257 = vmax.xlane.f32.xlu1 %v9339_v61 }
 0x7d2   :  { %v9343_v50 = vpop.f32.mrf.mxu0 }
 0x7d4   :  { %v9345_v21 = vpop.f32.mrf.mxu0 }
 0x7d5   :  { %3261 = vmax.xlane.f32.xlu1 %v9337_v16  ;;  %3263 = vmax.xlane.f32.xlu0 %v9345_v21 }
 0x7d6   :  { %v9349_v43 = vpop.f32.mrf.mxu0 }
 0x7d8   :  { %v9351_v25 = vpop.f32.mrf.mxu0 }
 0x7d9   :  { %3267 = vmax.xlane.f32.xlu0 %v9343_v50  ;;  %3265 = vmax.xlane.f32.xlu1 %v9351_v25 }
 0x7da   :  { %v9355_v55 = vpop.f32.mrf.mxu0 }
 0x7dc   :  { %v9357_v54 = vpop.f32.mrf.mxu0 }
 0x7dd   :  { %3269 = vmax.xlane.f32.xlu1 %v9349_v43  ;;  %3271 = vmax.xlane.f32.xlu0 %v9357_v54 }
 0x7de   :  { %v9361_v36 = vpop.f32.mrf.mxu0 }
 0x7e0   :  { %v9363_v6 = vpop.f32.mrf.mxu0 }
 0x7e1   :  { %3275 = vmax.xlane.f32.xlu0 %v9355_v55  ;;  %3273 = vmax.xlane.f32.xlu1 %v9363_v6 }
 0x7e5   :  { %3277 = vmax.xlane.f32.xlu1 %v9361_v36 }
 0x7f6   :  { %3563 = vrot.lane.b32.xlu1 %v10700_v47, %s7902_s28 }
 0x7f7   :  { %3565 = vrot.lane.b32.xlu0 %v10701_v28, %s7902_s28 }
 0x7fa   :  { %3561 = vrot.lane.b32.xlu1 %v10750_v46, %s7902_s28 }
 0x7fb   :  { %3557 = vrot.lane.b32.xlu0 %v10751_v17, %s7902_s28 }
 0x7fe   :  { %3559 = vrot.lane.b32.xlu1 %v10752_v0, %s7902_s28 }
 0x7ff   :  { %3682 = vrot.lane.b32.xlu0 %v10753_v14, %s7902_s28 }
 0x802   :  { %3555 = vrot.lane.b32.xlu1 %v10754_v37, %s7902_s28 }
 0x803   :  { %3680 = vrot.lane.b32.xlu0 %v10755_v51, %s7902_s28 }
 0x806   :  { %3553 = vrot.lane.b32.xlu1 %v10756_v52, %s7902_s28 }
 0x807   :  { %3674 = vrot.lane.b32.xlu0 %v10757_v20, %s7902_s28 }
 0x80a   :  { %3551 = vrot.lane.b32.xlu1 %v10758_v18, %s7902_s28 }
 0x80b   :  { %3672 = vrot.lane.b32.xlu0 %v10759_v1, %s7902_s28 }
 0x80e   :  { %3686 = vrot.lane.b32.xlu1 %v10760_v9, %s7902_s28 }
 0x80f   :  { %4038 = vrot.lane.b32.xlu0 %v10761_v33, %s7907_s11  ;;  %v10768_v33 = vld [vmem:[#allocation43_spill] sm:$0xff] }
 0x812   :  { %4048 = vrot.lane.b32.xlu1 %v10762_v40, %s7907_s11  ;;  %v3250_v40 = vpop.xlane.xlu0 %3249 }
 0x813   :  { %4221 = vrot.lane.b32.xlu0 %v10763_v59, %s7907_s11  ;;  %v10769_v59 = vld [vmem:[#allocation30_spill] sm:$0xff] }
 0x816   :  { %3684 = vrot.lane.b32.xlu1 %v10764_v22, %s7902_s28 }
 0x817   :  { %4219 = vrot.lane.b32.xlu0 %v10765_v19, %s7907_s11  ;;  %v3312_v19 = vsub.f32 %v9309_v11, %v3250_v40 }
 0x819   :  { %v3345_v49 = vmul.f32 1.442695, %v3312_v19  ;;  %v10778_v19 = vld [vmem:[#allocation38_spill] sm:$0xff] }
 0x81a   :  { %4046 = vrot.lane.b32.xlu1 %v10766_v34, %s7907_s11  ;;  %v10771_v34 = vld [vmem:[#allocation28_spill] sm:$0xff] }
 0x81b   :  { %4020 = vrot.lane.b32.xlu0 %v10767_v48, %s7907_s11  ;;  %v10772_v48 = vld [vmem:[#allocation25_spill] sm:$0xff]  ;;  %7556 = vpow2.f32 %v3345_v49 }
 0x81e   :  { %3678 = vrot.lane.b32.xlu1 %v10768_v33, %s7902_s28 }
 0x81f   :  { %4024 = vrot.lane.b32.xlu0 %v10724_v4, %s7907_s11  ;;  %v10774_v4 = vld [vmem:[#allocation22_spill] sm:$0xff] }
 0x822   :  { %4044 = vrot.lane.b32.xlu1 %v10769_v59, %s7907_s11  ;;  %v9425_v59 = vpop.f32.mrf.mxu1 }
 0x823   :  { %10775 = vst [vmem:[#allocation21_spill] sm:$0xff] %v9425_v59  ;;  %v3252_v59 = vpop.xlane.xlu0 %3251 }
 0x824   :  { %v9431_v40 = vpop.f32.mrf.mxu1 }
 0x825   :  { %10777 = vst [vmem:[#allocation35_spill] sm:$0xff] %v9431_v40 }
 0x826   :  { %3676 = vrot.lane.b32.xlu1 %v10770_v39, %s7902_s28  ;;  %v9436_v49 = vpop.f32.mrf.mxu1 }
 0x827   :  { %10779 = vst [vmem:[#allocation18_spill] sm:$0xff] %v9436_v49 }
 0x828   :  { %v9429_v11 = vpop.eup %7556 }
 0x82a   :  { %4042 = vrot.lane.b32.xlu1 %v10771_v34, %s7907_s11  ;;  %v9440_v34 = vpop.f32.mrf.mxu1 }
 0x82b   :  { %10781 = vst [vmem:[#allocation31_spill] sm:$0xff] %v9440_v34 }
 0x82e   :  { %4040 = vrot.lane.b32.xlu1 %v10772_v48, %s7907_s11  ;;  %v10782_v48 = vld [vmem:[#allocation37_spill] sm:$0xff] }
 0x832   :  { %4225 = vrot.lane.b32.xlu1 %v10773_v32, %s7907_s11  ;;  %v10780_v32 = vld [vmem:[#allocation13_spill] sm:$0xff] }
 0x836   :  { %4223 = vrot.lane.b32.xlu1 %v10774_v4, %s7907_s11 }
 0x83a   :  { %4036 = vrot.lane.b32.xlu1 %v10776_v57, %s7907_s11  ;;  %v9444_v57 = vpop.f32.mrf.mxu1 }
 0x83b   :  { %10783 = vst [vmem:[#allocation33_spill] sm:$0xff] %v9444_v57 }
 0x83c   :  { %v9448_v4 = vpop.f32.mrf.mxu1 }
 0x83d   :  { %10784 = vst [vmem:[#allocation15_spill] sm:$0xff] %v9448_v4  ;;  %v3313_v4 = vsub.f32 %v9299_v7, %v3252_v59 }
 0x83e   :  { %3409 = vadd.xlane.f32.xlu0 %v9429_v11  ;;  %4034 = vrot.lane.b32.xlu1 %v10778_v19, %s7907_s11  ;;  %v3248_v19 = vpop.xlane.xlu1 %3247  ;;  %v9452_v49 = vpop.f32.mrf.mxu1 }
 0x83f   :  { %10785 = vst [vmem:[#allocation30_spill] sm:$0xff] %v9452_v49  ;;  %v3347_v15 = vmul.f32 1.442695, %v3313_v4 }
 0x842   :  { %4018 = vrot.lane.b32.xlu1 %v10780_v32, %s7907_s11  ;;  %v9454_v32 = vpop.f32.mrf.mxu1  ;;  %v3254_v34 = vpop.xlane.xlu1 %3253 }
 0x843   :  { %10786 = vst [vmem:[#allocation28_spill] sm:$0xff] %v9454_v32  ;;  %v3311_v32 = vsub.f32 %v9302_v60, %v3248_v19  ;;  %v3314_v59 = vsub.f32 %v9305_v38, %v3254_v34 }
 0x844   :  { %v9456_v45 = vpop.f32.mrf.mxu1 }
 0x845   :  { %10787 = vst [vmem:[#allocation25_spill] sm:$0xff] %v9456_v45  ;;  %v3343_v7 = vmul.f32 1.442695, %v3311_v32  ;;  %v3349_v19 = vmul.f32 1.442695, %v3314_v59 }
 0x846   :  { %4217 = vrot.lane.b32.xlu1 %v10782_v48, %s7907_s11  ;;  %v9461_v27 = vpop.f32.mrf.mxu1 }
 0x847   :  { %10788 = vst [vmem:[#allocation26_spill] sm:$0xff] %v9461_v27 }
 0x848   :  { %v9464_v58 = vpop.f32.mrf.mxu1 }
 0x849   :  { %10789 = vst [vmem:[#allocation22_spill] sm:$0xff] %v9464_v58 }
 0x84a   :  { %4022 = vrot.lane.b32.xlu1 %v10721_v56, %s7907_s11 }
 0x84e   :  { %4215 = vrot.lane.b32.xlu1 %v8203_v23, %s7907_s11 }
 0x856   :  { %v3256_v40 = vpop.xlane.xlu0 %3255 }
 0x85a   :  { %v3260_v48 = vpop.xlane.xlu0 %3259  ;;  %v3258_v57 = vpop.xlane.xlu1 %3257 }
 0x85b   :  { %v3317_v13 = vsub.f32 %v9332_v53, %v3260_v48  ;;  %v3316_v56 = vsub.f32 %v9339_v61, %v3258_v57 }
 0x85d   :  { %v3355_v23 = vmul.f32 1.442695, %v3317_v13  ;;  %v3353_v1 = vmul.f32 1.442695, %v3316_v56  ;;  %v9469_v13 = vpop.f32.mrf.mxu1 }
 0x85e   :  { %v3264_v3 = vpop.xlane.xlu0 %3263  ;;  %v3262_v49 = vpop.xlane.xlu1 %3261  ;;  %10790 = vst [vmem:[#allocation17_spill] sm:$0xff] %v9469_v13 }
 0x85f   :  { %7558 = vpow2.f32 %v3355_v23  ;;  %v3319_v53 = vsub.f32 %v9345_v21, %v3264_v3  ;;  %v3315_v3 = vsub.f32 %v9334_v2, %v3256_v40 }
 0x860   :  { %7560 = vpow2.f32 %v3353_v1  ;;  %v9472_v1 = vpop.f32.mrf.mxu1 }
 0x861   :  { %7562 = vpow2.f32 %v3347_v15  ;;  %v3359_v60 = vmul.f32 1.442695, %v3319_v53  ;;  %10791 = vst [vmem:[#allocation38_spill] sm:$0xff] %v9472_v1  ;;  %v3351_v32 = vmul.f32 1.442695, %v3315_v3 }
 0x862   :  { %v3268_v45 = vpop.xlane.xlu0 %3267  ;;  %v3266_v30 = vpop.xlane.xlu1 %3265 }
 0x863   :  { %v3321_v61 = vsub.f32 %v9343_v50, %v3268_v45  ;;  %v9478_v34 = vpop.f32.mrf.mxu1  ;;  %v3320_v59 = vsub.f32 %v9351_v25, %v3266_v30 }
 0x864   :  { %10792 = vst [vmem:[#allocation13_spill] sm:$0xff] %v9478_v34 }
 0x865   :  { %v3363_v57 = vmul.f32 1.442695, %v3321_v61 }
 0x866   :  { %v3272_v48 = vpop.xlane.xlu0 %3271  ;;  %v3270_v56 = vpop.xlane.xlu1 %3269 }
 0x867   :  { %7564 = vpow2.f32 %v3363_v57  ;;  %v3322_v4 = vsub.f32 %v9349_v43, %v3270_v56  ;;  %v3318_v43 = vsub.f32 %v9337_v16, %v3262_v49 }
 0x868   :  { %7566 = vpow2.f32 %v3343_v7 }
 0x869   :  { %7568 = vpow2.f32 %v3359_v60  ;;  %v3365_v38 = vmul.f32 1.442695, %v3322_v4  ;;  %v3357_v7 = vmul.f32 1.442695, %v3318_v43  ;;  %v3361_v60 = vmul.f32 1.442695, %v3320_v59 }
 0x86a   :  { %v3276_v45 = vpop.xlane.xlu0 %3275  ;;  %v3274_v50 = vpop.xlane.xlu1 %3273  ;;  %7570 = vpow2.f32 %v3349_v19  ;;  %v3323_v4 = vsub.f32 %v9357_v54, %v3272_v48 }
 0x86b   :  { %v3325_v15 = vsub.f32 %v9355_v55, %v3276_v45  ;;  %7572 = vpow2.f32 %v3365_v38  ;;  %v3324_v40 = vsub.f32 %v9363_v6, %v3274_v50  ;;  %v9485_v55 = vpop.f32.mrf.mxu1 }
 0x86c   :  { %v9476_v21 = vpop.eup %7558  ;;  %10793 = vst [vmem:[#allocation37_spill] sm:$0xff] %v9485_v55  ;;  %7574 = vpow2.f32 %v3351_v32  ;;  %v3367_v45 = vmul.f32 1.442695, %v3323_v4 }
 0x86d   :  { %3419 = vadd.xlane.f32.xlu0 %v9476_v21  ;;  %v3371_v2 = vmul.f32 1.442695, %v3325_v15  ;;  %v9483_v61 = vpop.eup %7560  ;;  %v3369_v49 = vmul.f32 1.442695, %v3324_v40  ;;  %v9494_v56 = vpop.f32.mrf.mxu1 }
 0x86e   :  { %v3566_v23 = vpop.permute.xlu0 %3565  ;;  %v3278_v53 = vpop.xlane.xlu1 %3277  ;;  %10794 = vst [vmem:[#allocation69_spill] sm:$0xff] %v9494_v56 }
 0x86f   :  { %6897 = vmatprep.subr.bf16.mxu0 %v3566_v23  ;;  %v9488_v57 = vpop.eup %7562  ;;  %7576 = vpow2.f32 %v3371_v2  ;;  %v9503_v3 = vpop.f32.mrf.mxu1  ;;  %v3326_v50 = vsub.f32 %v9361_v36, %v3278_v53 }
 0x870   :  { %6898 = vmatpush3.bf16.msra.mxu0 %v3566_v23  ;;  %7578 = vpow2.f32 %v3357_v7 }
 0x871   :  { %3417 = vadd.xlane.f32.xlu0 %v9483_v61  ;;  %7580 = vpow2.f32 %v3369_v49  ;;  %v9512_v15 = vpop.f32.mrf.mxu1  ;;  %v3373_v32 = vmul.f32 1.442695, %v3326_v50 }
 0x872   :  { %3411 = vadd.xlane.f32.xlu1 %v9488_v57  ;;  %v3564_v16 = vpop.permute.xlu1 %3563  ;;  %7582 = vpow2.f32 %v3361_v60  ;;  %v3558_v43 = vpop.permute.xlu0 %3557 }
 0x873   :  { %6899 = vmatprep.subr.bf16.mxu0 %v3564_v16  ;;  %7584 = vpow2.f32 %v3367_v45  ;;  %v9520_v2 = vpop.f32.mrf.mxu1 }
 0x874   :  { %v9492_v6 = vpop.eup %7564  ;;  %6900 = vmatpush3.bf16.msra.mxu0 %v3564_v16  ;;  %7586 = vpow2.f32 %v3373_v32 }
 0x875   :  { %v9497_v30 = vpop.eup %7566  ;;  %3427 = vadd.xlane.f32.xlu0 %v9492_v6  ;;  %v9528_v16 = vpop.f32.mrf.mxu1 }
 0x876   :  { %3407 = vadd.xlane.f32.xlu1 %v9497_v30  ;;  %v3562_v25 = vpop.permute.xlu1 %3561  ;;  %v9501_v19 = vpop.eup %7568 }
 0x877   :  { %6901 = vmatprep.subr.bf16.mxu0 %v3562_v25  ;;  %v9506_v54 = vpop.eup %7570  ;;  %v9534_v4 = vpop.f32.mrf.mxu1 }
 0x878   :  { %6902 = vmatpush3.bf16.msra.mxu0 %v3562_v25  ;;  %v9510_v38 = vpop.eup %7572 }
 0x879   :  { %3423 = vadd.xlane.f32.xlu0 %v9501_v19  ;;  %v9514_v23 = vpop.eup %7574  ;;  %v9540_v50 = vpop.f32.mrf.mxu1 }
 0x87a   :  { %3413 = vadd.xlane.f32.xlu1 %v9506_v54  ;;  %v3560_v48 = vpop.permute.xlu1 %3559 }
 0x87b   :  { %6903 = vmatprep.subr.bf16.mxu0 %v3560_v48 }
 0x87c   :  { %6904 = vmatpush3.bf16.msra.mxu0 %v3560_v48  ;;  %v9518_v53 = vpop.eup %7576 }
 0x87d   :  { %3429 = vadd.xlane.f32.xlu0 %v9510_v38  ;;  %6905 = vmatprep.subr.bf16.mxu0 %v3558_v43  ;;  %v9522_v40 = vpop.eup %7578 }
 0x87e   :  { %3415 = vadd.xlane.f32.xlu1 %v9514_v23  ;;  %v3556_v36 = vpop.permute.xlu1 %3555  ;;  %v9526_v59 = vpop.eup %7580 }
 0x87f   :  { %v9530_v49 = vpop.eup %7582 }
 0x880   :  { %6906 = vmatpush3.bf16.msra.mxu0 %v3558_v43  ;;  %v9536_v25 = vpop.eup %7584  ;;  %v9550_v43 = vpop.f32.mrf.mxu1 }
 0x881   :  { %3435 = vadd.xlane.f32.xlu0 %v9518_v53  ;;  %6907 = vmatprep.subr.bf16.mxu0 %v3556_v36  ;;  %v9542_v48 = vpop.eup %7586 }
 0x882   :  { %3421 = vadd.xlane.f32.xlu1 %v9522_v40  ;;  %v3554_v7 = vpop.permute.xlu1 %3553 }
 0x884   :  { %6908 = vmatpush3.bf16.msra.mxu0 %v3556_v36  ;;  %v3683_v36 = vpop.permute.xlu0 %3682 }
 0x885   :  { %3433 = vadd.xlane.f32.xlu0 %v9526_v59  ;;  %6909 = vmatprep.subr.bf16.mxu0 %v3554_v7 }
 0x886   :  { %3425 = vadd.xlane.f32.xlu1 %v9530_v49  ;;  %v3552_v60 = vpop.permute.xlu1 %3551 }
 0x888   :  { %6910 = vmatpush3.bf16.msra.mxu0 %v3554_v7  ;;  %v3681_v56 = vpop.permute.xlu0 %3680 }
 0x889   :  { %3283 = vmax.xlane.f32.xlu0 %v9503_v3  ;;  %6911 = vmatprep.subr.bf16.mxu0 %v3552_v60 }
 0x88a   :  { %3431 = vadd.xlane.f32.xlu1 %v9536_v25  ;;  %v3687_v45 = vpop.permute.xlu1 %3686 }
 0x88b   :  { %6929 = vmatprep.subr.bf16.mxu1 %v3687_v45 }
 0x88c   :  { %6912 = vmatpush3.bf16.msra.mxu0 %v3552_v60  ;;  %6930 = vmatpush3.bf16.msra.mxu1 %v3687_v45  ;;  %v9554_v60 = vpop.f32.mrf.mxu1 }
 0x88d   :  { %3279 = vmax.xlane.f32.xlu0 %v9512_v15 }
 0x88e   :  { %3437 = vadd.xlane.f32.xlu1 %v9542_v48  ;;  %v9546_v32 = vpop.permute.xlu1 %4048  ;;  %v9560_v55 = vpop.f32.mrf.mxu1 }
 0x88f   :  { %7201 = vmatprep.subr.msk.bf16.mxu0 %vm770_vm0, %v9546_v32 }
 0x890   :  { %v9564_v34 = vpop.f32.mrf.mxu1 }
 0x891   :  { %3291 = vmax.xlane.f32.xlu0 %v9534_v4 }
 0x892   :  { %3285 = vmax.xlane.f32.xlu1 %v9520_v2  ;;  %v3685_v7 = vpop.permute.xlu1 %3684  ;;  %v9570_v58 = vpop.f32.mrf.mxu1 }
 0x893   :  { %6931 = vmatprep.subr.bf16.mxu1 %v3685_v7 }
 0x894   :  { %6932 = vmatpush3.bf16.msra.mxu1 %v3685_v7  ;;  %v9573_v27 = vpop.f32.mrf.mxu1 }
 0x895   :  { %3287 = vmax.xlane.f32.xlu0 %v9540_v50  ;;  %6933 = vmatprep.subr.bf16.mxu1 %v3683_v36 }
 0x896   :  { %3281 = vmax.xlane.f32.xlu1 %v9528_v16  ;;  %v9558_v45 = vpop.permute.xlu1 %4046  ;;  %v9578_v20 = vpop.f32.mrf.mxu1 }
 0x898   :  { %6934 = vmatpush3.bf16.msra.mxu1 %v3683_v36  ;;  %v3675_v36 = vpop.permute.xlu0 %3674  ;;  %v9583_v33 = vpop.f32.mrf.mxu1 }
 0x899   :  { %3299 = vmax.xlane.f32.xlu0 %v9560_v55  ;;  %6935 = vmatprep.subr.bf16.mxu1 %v3681_v56 }
 0x89a   :  { %3293 = vmax.xlane.f32.xlu1 %v9550_v43  ;;  %v3679_v1 = vpop.permute.xlu1 %3678  ;;  %v9590_v14 = vpop.f32.mrf.mxu1 }
 0x89c   :  { %6936 = vmatpush3.bf16.msra.mxu1 %v3681_v56  ;;  %v3673_v39 = vpop.permute.xlu0 %3672 }
 0x89d   :  { %3295 = vmax.xlane.f32.xlu0 %v9564_v34  ;;  %6937 = vmatprep.subr.bf16.mxu1 %v3679_v1 }
 0x89e   :  { %3289 = vmax.xlane.f32.xlu1 %v9554_v60  ;;  %v9568_v7 = vpop.permute.xlu1 %4044 }
 0x8a0   :  { %6938 = vmatpush3.bf16.msra.mxu1 %v3679_v1  ;;  %v9602_v51 = vpop.permute.xlu0 %4038 }
 0x8a2   :  { %3301 = vmax.xlane.f32.xlu1 %v9570_v58  ;;  %v3677_v13 = vpop.permute.xlu1 %3676 }
 0x8a3   :  { %6939 = vmatprep.subr.bf16.mxu1 %v3677_v13 }
 0x8a4   :  { %6940 = vmatpush3.bf16.msra.mxu1 %v3677_v13  ;;  %v9606_v18 = vpop.permute.xlu0 %4221 }
 0x8a5   :  { %6941 = vmatprep.subr.bf16.mxu1 %v3675_v36  ;;  %10797 = vst [vmem:[#allocation72_spill] sm:$0xff] %v9606_v18 }
 0x8a6   :  { %3297 = vmax.xlane.f32.xlu1 %v9573_v27  ;;  %v9576_v56 = vpop.permute.xlu1 %4042 }
 0x8a8   :  { %6942 = vmatpush3.bf16.msra.mxu1 %v3675_v36  ;;  %v9595_v36 = vpop.f32.mrf.mxu1  ;;  %v9610_v9 = vpop.permute.xlu0 %4219 }
 0x8a9   :  { %6943 = vmatprep.subr.bf16.mxu1 %v3673_v39  ;;  %10798 = vst [vmem:[#allocation73_spill] sm:$0xff] %v9610_v9 }
 0x8aa   :  { %3307 = vmax.xlane.f32.xlu1 %v9578_v20  ;;  %v9581_v1 = vpop.permute.xlu1 %4040 }
 0x8ac   :  { %6944 = vmatpush3.bf16.msra.mxu1 %v3673_v39  ;;  %v9614_v17 = vpop.permute.xlu0 %4020 }
 0x8ae   :  { %3303 = vmax.xlane.f32.xlu1 %v9583_v33  ;;  %v9586_v13 = vpop.permute.xlu1 %4225 }
 0x8af   :  { %10795 = vst [vmem:[#allocation70_spill] sm:$0xff] %v9586_v13  ;;  %7209 = vmatprep.subr.msk.bf16.mxu1 %vm770_vm0, %v9586_v13 }
 0x8b0   :  { %v9618_v46 = vpop.permute.xlu0 %4024 }
 0x8b2   :  { %3309 = vmax.xlane.f32.xlu1 %v9590_v14  ;;  %v9600_v39 = vpop.permute.xlu1 %4223 }
 0x8b3   :  { %4026 = vrot.lane.b32.xlu0 %v10723_v5, %s7907_s11  ;;  %10796 = vst [vmem:[#allocation71_spill] sm:$0xff] %v9600_v39 }
 0x8b6   :  { %3305 = vmax.xlane.f32.xlu1 %v9595_v36  ;;  %v9604_v22 = vpop.permute.xlu1 %4036 }
 0x8ba   :  { %v9608_v37 = vpop.permute.xlu1 %4034 }
 0x8be   :  { %v9612_v5 = vpop.permute.xlu1 %4018 }
 0x8c2   :  { %v9616_v52 = vpop.permute.xlu1 %4217 }
 0x8c3   :  { %10799 = vst [vmem:[#allocation74_spill] sm:$0xff] %v9616_v52 }
 0x8c7   :  { %4028 = vrot.lane.b32.xlu1 %v10726_v31, %s7907_s11  ;;  %v9620_v31 = vpop.permute.xlu1 %4022  ;;  %v3410_v0 = vpop.xlane.xlu0 %3409 }
 0x8c8   :  { %7588 = vrcp.f32 %v3410_v0 }
 0x8cb   :  { %v9622_v28 = vpop.permute.xlu1 %4215 }
 0x8cc   :  { %10800 = vst [vmem:[#allocation75_spill] sm:$0xff] %v9622_v28 }
 0x8d5   :  { %v7589_v63 = vpop.eup %7588 }
 0x8f6   :  { %v3420_v47 = vpop.xlane.xlu0 %3419 }
 0x8fa   :  { %v3418_v39 = vpop.xlane.xlu0 %3417 }
 0x8fb   :  { %v3412_v18 = vpop.xlane.xlu1 %3411 }
 0x8fe   :  { %v3428_v13 = vpop.xlane.xlu0 %3427 }
 0x8ff   :  { %v3408_v42 = vpop.xlane.xlu1 %3407 }
 0x900   :  { %7590 = vrcp.f32 %v3408_v42  ;;  %v3504_v42 = vmul.f32 %v7589_v63, %v9429_v11 }
 0x901   :  { %7592 = vrcp.f32 %v3412_v18 }
 0x902   :  { %v3424_v9 = vpop.xlane.xlu0 %3423 }
 0x903   :  { %v3414_v12 = vpop.xlane.xlu1 %3413 }
 0x904   :  { %7594 = vrcp.f32 %v3414_v12 }
 0x905   :  { %7596 = vrcp.f32 %v3418_v39 }
 0x906   :  { %v3430_v52 = vpop.xlane.xlu0 %3429 }
 0x907   :  { %v3416_v24 = vpop.xlane.xlu1 %3415 }
 0x908   :  { %7598 = vrcp.f32 %v3416_v24 }
 0x909   :  { %7600 = vrcp.f32 %v3420_v47 }
 0x90a   :  { %v3436_v41 = vpop.xlane.xlu0 %3435 }
 0x90b   :  { %v3422_v8 = vpop.xlane.xlu1 %3421 }
 0x90c   :  { %7602 = vrcp.f32 %v3422_v8 }
 0x90d   :  { %v7591_v28 = vpop.eup %7590  ;;  %7604 = vrcp.f32 %v3424_v9 }
 0x90e   :  { %v3434_v29 = vpop.xlane.xlu0 %3433  ;;  %v3503_v0 = vmul.f32 %v7591_v28, %v9497_v30  ;;  %v7593_v18 = vpop.eup %7592  ;;  %7606 = vrcp.f32 %v3430_v52 }
 0x90f   :  { %v3426_v44 = vpop.xlane.xlu1 %3425  ;;  %v3505_v47 = vmul.f32 %v7593_v18, %v9488_v57 }
 0x910   :  { %7608 = vrcp.f32 %v3426_v44  ;;  %v3535_v12 = vpack.c.bf16 %v3504_v42, %v3503_v0  ;;  %v4096_v44 = vsel %vm770_vm0, %v9546_v32, 0 }
 0x911   :  { %v7595_v39 = vpop.eup %7594  ;;  %7610 = vrcp.f32 %v3428_v13 }
 0x912   :  { %v3506_v24 = vmul.f32 %v7595_v39, %v9506_v54  ;;  %7612 = vrcp.f32 %v3434_v29  ;;  %v3284_v8 = vpop.xlane.xlu0 %3283  ;;  %6913 = vmatprep.mubr.bf16.mxu0 %v3535_v12  ;;  %v7597_v9 = vpop.eup %7596 }
 0x913   :  { %v3329_v35 = vsub.f32 %v9503_v3, %v3284_v8  ;;  %v3432_v28 = vpop.xlane.xlu1 %3431  ;;  %v3508_v54 = vmul.f32 %v7597_v9, %v9483_v61  ;;  %v4093_v9 = vsel %vm770_vm0, %v9558_v45, 0 }
 0x914   :  { %7614 = vrcp.f32 %v3432_v28  ;;  %v3536_v63 = vpack.c.bf16 %v3506_v24, %v3505_v47 }
 0x915   :  { %v7599_v11 = vpop.eup %7598  ;;  %v3379_v52 = vmul.f32 1.442695, %v3329_v35 }
 0x916   :  { %v3280_v30 = vpop.xlane.xlu0 %3279  ;;  %6914 = vmatmul.mubr.bf16.vlgmr.msra.gmra.mxu0 %v3536_v63  ;;  %v3507_v57 = vmul.f32 %v7599_v11, %v9514_v23  ;;  %v7601_v29 = vpop.eup %7600 }
 0x917   :  { %7616 = vpow2.f32 %v3379_v52  ;;  %v3327_v13 = vsub.f32 %v9512_v15, %v3280_v30  ;;  %6962 = vmatpush3.bf16.xpose.msra.mxu0 %v4096_v44  ;;  %v3438_v3 = vpop.xlane.xlu1 %3437  ;;  %v3509_v32 = vmul.f32 %v7601_v29, %v9476_v21 }
 0x918   :  { %7202 = vmatprep.subr.msk.bf16.mxu0 %vm770_vm0, %v9558_v45  ;;  %7618 = vrcp.f32 %v3438_v3  ;;  %v3537_v35 = vpack.c.bf16 %v3508_v54, %v3507_v57 }
 0x919   :  { %v7603_v0 = vpop.eup %7602  ;;  %v3375_v42 = vmul.f32 1.442695, %v3327_v13  ;;  %7620 = vrcp.f32 %v3436_v41 }
 0x91a   :  { %6917 = vmatprep.mubr.bf16.mxu0 %v3537_v35  ;;  %v3510_v23 = vmul.f32 %v7603_v0, %v9522_v40  ;;  %v7605_v61 = vpop.eup %7604  ;;  %v4084_v35 = vsel %vm770_vm0, %v9581_v1, 0  ;;  %v4081_v0 = vsel %vm770_vm0, %v9602_v51, 0 }
 0x91b   :  { %7622 = vpow2.f32 %v3375_v42  ;;  %v3286_v18 = vpop.xlane.xlu1 %3285  ;;  %v7607_v12 = vpop.eup %7606  ;;  %v3511_v41 = vmul.f32 %v7605_v61, %v9501_v19 }
 0x91c   :  { %v3330_v15 = vsub.f32 %v9520_v2, %v3286_v18  ;;  %v3538_v39 = vpack.c.bf16 %v3510_v23, %v3509_v32  ;;  %v3514_v11 = vmul.f32 %v7607_v12, %v9510_v38  ;;  %v4090_v38 = vsel %vm770_vm0, %v9568_v7, 0  ;;  %v3292_v42 = vpop.xlane.xlu0 %3291 }
 0x91d   :  { %v7609_v47 = vpop.eup %7608  ;;  %v3333_v23 = vsub.f32 %v9534_v4, %v3292_v42  ;;  %v4075_v18 = vsel %vm770_vm0, %v9608_v37, 0 }
 0x91e   :  { %v7611_v24 = vpop.eup %7610  ;;  %v3381_v8 = vmul.f32 1.442695, %v3330_v15  ;;  %6918 = vmatmul.mubr.bf16.gmra.mxu0 %v3538_v39  ;;  %v3512_v21 = vmul.f32 %v7609_v47, %v9530_v49 }
 0x91f   :  { %v7613_v28 = vpop.eup %7612  ;;  %6964 = vmatpush3.bf16.xpose.msra.mxu0 %v4093_v9  ;;  %v3282_v40 = vpop.xlane.xlu1 %3281  ;;  %v3513_v45 = vmul.f32 %v7611_v24, %v9492_v6 }
 0x920   :  { %7624 = vpow2.f32 %v3381_v8  ;;  %7203 = vmatprep.subr.msk.bf16.mxu0 %vm770_vm0, %v9568_v7  ;;  %v3328_v2 = vsub.f32 %v9528_v16, %v3282_v40  ;;  %v3539_v63 = vpack.c.bf16 %v3512_v21, %v3511_v41  ;;  %v3516_v49 = vmul.f32 %v7613_v28, %v9526_v59 }
 0x921   :  { %v7615_v52 = vpop.eup %7614  ;;  %v3540_v57 = vpack.c.bf16 %v3514_v11, %v3513_v45  ;;  %v4087_v7 = vsel %vm770_vm0, %v9576_v56, 0 }
 0x922   :  { %v3377_v30 = vmul.f32 1.442695, %v3328_v2  ;;  %6921 = vmatprep.mubr.bf16.mxu0 %v3539_v63  ;;  %v3515_v19 = vmul.f32 %v7615_v52, %v9536_v25 }
 0x924   :  { %v9650_v44 = vpop.eup %7616  ;;  %7626 = vpow2.f32 %v3377_v30  ;;  %v3541_v54 = vpack.c.bf16 %v3516_v49, %v3515_v19 }
 0x925   :  { %v7619_v29 = vpop.eup %7618  ;;  %3443 = vadd.xlane.f32.xlu0 %v9650_v44 }
 0x926   :  { %6922 = vmatmul.mubr.bf16.gmra.mxu0 %v3540_v57  ;;  %v7621_v16 = vpop.eup %7620  ;;  %v3518_v59 = vmul.f32 %v7619_v29, %v9542_v48 }
 0x927   :  { %6966 = vmatpush3.bf16.xpose.msra.mxu0 %v4090_v38  ;;  %6925 = vmatprep.mubr.bf16.mxu0 %v3541_v54  ;;  %v3517_v25 = vmul.f32 %v7621_v16, %v9518_v53  ;;  %v3294_v53 = vpop.xlane.xlu1 %3293  ;;  %v10801_v16 = vld [vmem:[#allocation45_spill] sm:$0xff] }
 0x928   :  { %v9655_v6 = vpop.eup %7622  ;;  %7204 = vmatprep.subr.msk.bf16.mxu0 %vm770_vm0, %v9576_v56  ;;  %v3334_v24 = vsub.f32 %v9550_v43, %v3294_v53  ;;  %v10806_v53 = vld [vmem:[#allocation24_spill] sm:$0xff] }
 0x929   :  { %3439 = vadd.xlane.f32.xlu0 %v9655_v6  ;;  %v3542_v13 = vpack.c.bf16 %v3518_v59, %v3517_v25  ;;  %v10802_v59 = vld [vmem:[#allocation51_spill] sm:$0xff]  ;;  %v10803_v25 = vld [vmem:[#allocation34_spill] sm:$0xff] }
 0x92b   :  { %v3290_v56 = vpop.xlane.xlu1 %3289 }
 0x92c   :  { %v3332_v15 = vsub.f32 %v9554_v60, %v3290_v56  ;;  %v3389_v60 = vmul.f32 1.442695, %v3334_v24  ;;  %v10809_v56 = vld [vmem:[#allocation20_spill] sm:$0xff] }
 0x92d   :  { %v9662_v3 = vpop.eup %7624 }
 0x92e   :  { %6926 = vmatmul.mubr.bf16.gmra.mxu0 %v3542_v13  ;;  %3445 = vadd.xlane.f32.xlu0 %v9662_v3  ;;  %v3385_v4 = vmul.f32 1.442695, %v3332_v15  ;;  %v10804_v13 = vld [vmem:[#allocation16_spill] sm:$0xff] }
 0x92f   :  { %6968 = vmatpush3.bf16.xpose.msra.mxu0 %v4087_v7  ;;  %6977 = vmatprep.mubr.msk.bf16.mxu0 %vm770_vm0, %v9612_v5  ;;  %v3302_v5 = vpop.xlane.xlu1 %3301  ;;  %v10805_v7 = vld [vmem:[#allocation36_spill] sm:$0xff] }
 0x930   :  { %7205 = vmatprep.subr.msk.bf16.mxu0 %vm770_vm0, %v9581_v1  ;;  %v4078_v1 = vsel %vm770_vm0, %v9604_v22, 0  ;;  %v3338_v9 = vsub.f32 %v9570_v58, %v3302_v5 }
 0x931   :  { %v9671_v48 = vpop.eup %7626 }
 0x932   :  { %3441 = vadd.xlane.f32.xlu1 %v9671_v48  ;;  %v3397_v21 = vmul.f32 1.442695, %v3338_v9 }
 0x933   :  { %v3298_v32 = vpop.xlane.xlu1 %3297 }
 0x934   :  { %v3336_v43 = vsub.f32 %v9573_v27, %v3298_v32 }
 0x937   :  { %6970 = vmatpush3.bf16.xpose.msra.mxu0 %v4084_v35  ;;  %v3308_v61 = vpop.xlane.xlu1 %3307  ;;  %v10808_v35 = vld [vmem:[#allocation14_spill] sm:$0xff] }
 0x938   :  { %7206 = vmatprep.subr.msk.bf16.mxu0 %vm770_vm0, %v9602_v51  ;;  %v3288_v51 = vpop.xlane.xlu0 %3287 }
 0x93c   :  { %v3300_v12 = vpop.xlane.xlu0 %3299 }
 0x93d   :  { %v3337_v47 = vsub.f32 %v9560_v55, %v3300_v12 }
 0x93f   :  { %6972 = vmatpush3.bf16.xpose.msra.mxu0 %v4081_v0 }
 0x940   :  { %7207 = vmatprep.subr.msk.bf16.mxu0 %vm770_vm0, %v9604_v22  ;;  %v3304_v22 = vpop.xlane.xlu1 %3303  ;;  %v3296_v8 = vpop.xlane.xlu0 %3295 }
 0x941   :  { %v3339_v58 = vsub.f32 %v9583_v33, %v3304_v22 }
 0x943   :  { %4030 = vrot.lane.b32.xlu1 %v10725_v62, %s7907_s11  ;;  %v3331_v62 = vsub.f32 %v9540_v50, %v3288_v51  ;;  %v3335_v50 = vsub.f32 %v9564_v34, %v3296_v8  ;;  %v3393_v34 = vmul.f32 1.442695, %v3336_v43  ;;  %v10811_v8 = vld [vmem:[#allocation71_spill] sm:$0xff]  ;;  %v10814_v43 = vld [vmem:[#allocation74_spill] sm:$0xff] }
 0x944   :  { %4213 = vrot.lane.b32.xlu0 %v8218_v10, %s7907_s11  ;;  %v3387_v10 = vmul.f32 1.442695, %v3333_v23  ;;  %v3310_v55 = vpop.xlane.xlu1 %3309  ;;  %v4027_v28 = vpop.permute.xlu0 %4026 }
 0x945   :  { %v3383_v39 = vmul.f32 1.442695, %v3331_v62  ;;  %v3391_v41 = vmul.f32 1.442695, %v3335_v50  ;;  %v3342_v2 = vsub.f32 %v9590_v14, %v3310_v55  ;;  %v10813_v50 = vld [vmem:[#allocation73_spill] sm:$0xff] }
 0x946   :  { %7628 = vpow2.f32 %v3387_v10  ;;  %v4264_v9 = vsel %vm770_vm0, %v10813_v50, 0 }
 0x947   :  { %6974 = vmatpush3.bf16.xpose.msra.mxu0 %v4078_v1  ;;  %7630 = vpow2.f32 %v3383_v39 }
 0x948   :  { %7208 = vmatprep.subr.msk.bf16.mxu0 %vm770_vm0, %v9608_v37  ;;  %v3395_v37 = vmul.f32 1.442695, %v3337_v47  ;;  %7632 = vpow2.f32 %v3385_v4  ;;  %v10810_v47 = vld [vmem:[#allocation70_spill] sm:$0xff] }
 0x949   :  { %v4273_v24 = vsel %vm770_vm0, %v10810_v47, 0 }
 0x94a   :  { %7634 = vpow2.f32 %v3395_v37 }
 0x94b   :  { %7636 = vpow2.f32 %v3389_v60 }
 0x94c   :  { %7638 = vpow2.f32 %v3391_v41 }
 0x94d   :  { %7640 = vpow2.f32 %v3397_v21 }
 0x94e   :  { %7642 = vpow2.f32 %v3393_v34 }
 0x94f   :  { %6976 = vmatpush3.bf16.xpose.msra.mxu0 %v4075_v18 }
 0x953   :  { %v9710_v27 = vpop.eup %7628 }
 0x954   :  { %v9713_v63 = vpop.eup %7630 }
 0x955   :  { %v9716_v30 = vpop.eup %7632 }
 0x956   :  { %6978 = vmatmul.mubr.msk.bf16.vlgmr.msra.gmra.mxu0 %vm770_vm0, %v9614_v17  ;;  %v3341_v17 = vsub.f32 %v9578_v20, %v3308_v61  ;;  %v3399_v20 = vmul.f32 1.442695, %v3339_v58  ;;  %v10815_v58 = vld [vmem:[#allocation75_spill] sm:$0xff] }
 0x957   :  { %6981 = vmatprep.mubr.msk.bf16.mxu0 %vm770_vm0, %v9620_v31  ;;  %v3306_v31 = vpop.xlane.xlu1 %3305  ;;  %v9721_v14 = vpop.eup %7634 }
 0x958   :  { %v3403_v40 = vmul.f32 1.442695, %v3341_v17  ;;  %v3340_v11 = vsub.f32 %v9595_v36, %v3306_v31  ;;  %v9723_v45 = vpop.eup %7636 }
 0x959   :  { %v9727_v36 = vpop.eup %7638 }
 0x95a   :  { %7644 = vpow2.f32 %v3403_v40  ;;  %v3401_v33 = vmul.f32 1.442695, %v3340_v11  ;;  %v9729_v19 = vpop.eup %7640  ;;  %v4258_v11 = vsel %vm770_vm0, %v10815_v58, 0 }
 0x95b   :  { %v4029_v52 = vpop.permute.xlu1 %4028  ;;  %7646 = vpow2.f32 %v3399_v20  ;;  %v9733_v49 = vpop.eup %7642 }
 0x95e   :  { %6982 = vmatmul.mubr.msk.bf16.gmra.mxu0 %vm770_vm0, %v9618_v46  ;;  %v3405_v46 = vmul.f32 1.442695, %v3342_v2 }
 0x95f   :  { %6985 = vmatprep.mubr.msk.bf16.mxu0 %vm770_vm0, %v4027_v28  ;;  %v4261_v28 = vsel %vm770_vm0, %v10814_v43, 0 }
 0x960   :  { %7648 = vpow2.f32 %v3405_v46 }
 0x961   :  { %7650 = vpow2.f32 %v3401_v33 }
 0x963   :  { %3451 = vadd.xlane.f32.xlu0 %v9710_v27 }
 0x966   :  { %6986 = vmatmul.mubr.msk.bf16.gmra.mxu0 %vm770_vm0, %v4029_v52 }
 0x967   :  { %3447 = vadd.xlane.f32.xlu0 %v9713_v63  ;;  %3449 = vadd.xlane.f32.xlu1 %v9716_v30  ;;  %v9735_v57 = vpop.eup %7644 }
 0x968   :  { %v9739_v54 = vpop.eup %7646 }
 0x96b   :  { %3453 = vadd.xlane.f32.xlu0 %v9723_v45  ;;  %3459 = vadd.xlane.f32.xlu1 %v9721_v14 }
 0x96d   :  { %v9741_v29 = vpop.eup %7648 }
 0x96e   :  { %v9745_v38 = vpop.eup %7650 }
 0x96f   :  { %3455 = vadd.xlane.f32.xlu1 %v9727_v36  ;;  %3461 = vadd.xlane.f32.xlu0 %v9729_v19 }
 0x973   :  { %3457 = vadd.xlane.f32.xlu0 %v9733_v49  ;;  %3467 = vadd.xlane.f32.xlu1 %v9735_v57 }
 0x977   :  { %3463 = vadd.xlane.f32.xlu1 %v9739_v54  ;;  %3469 = vadd.xlane.f32.xlu0 %v9741_v29 }
 0x97b   :  { %3465 = vadd.xlane.f32.xlu0 %v9745_v38 }
 0x988   :  { %4211 = vrot.lane.b32.xlu1 %v10720_v26, %s7907_s11  ;;  %v10807_v26 = vld [vmem:[#allocation46_spill] sm:$0xff] }
 0x98c   :  { %4197 = vrot.lane.b32.xlu1 %v10801_v16, %s7907_s11 }
 0x990   :  { %4201 = vrot.lane.b32.xlu1 %v10802_v59, %s7907_s11 }
 0x991   :  { %4032 = vrot.lane.b32.xlu0 %v10803_v25, %s7907_s11 }
 0x994   :  { %4205 = vrot.lane.b32.xlu1 %v10804_v13, %s7907_s11 }
 0x995   :  { %4195 = vrot.lane.b32.xlu0 %v10805_v7, %s7907_s11 }
 0x998   :  { %4209 = vrot.lane.b32.xlu1 %v10806_v53, %s7907_s11 }
 0x999   :  { %4199 = vrot.lane.b32.xlu0 %v10807_v26, %s7907_s11 }
 0x99d   :  { %4203 = vrot.lane.b32.xlu0 %v10808_v35, %s7907_s11 }
 0x9a1   :  { %4207 = vrot.lane.b32.xlu0 %v10809_v56, %s7907_s11 }
 0x9ae   :  { %v3444_v0 = vpop.xlane.xlu0 %3443 }
 0x9b2   :  { %v3440_v5 = vpop.xlane.xlu0 %3439 }
 0x9b7   :  { %v3446_v42 = vpop.xlane.xlu0 %3445 }
 0x9b8   :  { %7652 = vrcp.f32 %v3446_v42 }
 0x9b9   :  { %7654 = vrcp.f32 %v3440_v5 }
 0x9ba   :  { %7656 = vrcp.f32 %v3444_v0 }
 0x9bb   :  { %v3442_v1 = vpop.xlane.xlu1 %3441  ;;  %v4214_v55 = vpop.permute.xlu0 %4213 }
 0x9bc   :  { %7658 = vrcp.f32 %v3442_v1  ;;  %v4255_v26 = vsel %vm770_vm0, %v4214_v55, 0 }
 0x9bf   :  { %v4031_v32 = vpop.permute.xlu1 %4030 }
 0x9c0   :  { %6989 = vmatprep.mubr.msk.bf16.mxu0 %vm770_vm0, %v4031_v32 }
 0x9c5   :  { %v7653_v51 = vpop.eup %7652 }
 0x9c6   :  { %v7655_v23 = vpop.eup %7654  ;;  %v3522_v12 = vmul.f32 %v7653_v51, %v9662_v3  ;;  %v4270_v3 = vsel %vm770_vm0, %v10811_v8, 0 }
 0x9c7   :  { %v7657_v61 = vpop.eup %7656  ;;  %v3519_v62 = vmul.f32 %v7655_v23, %v9655_v6  ;;  %v10812_v6 = vld [vmem:[#allocation72_spill] sm:$0xff] }
 0x9c8   :  { %v3521_v15 = vmul.f32 %v7657_v61, %v9650_v44 }
 0x9c9   :  { %v7659_v18 = vpop.eup %7658 }
 0x9ca   :  { %v3520_v10 = vmul.f32 %v7659_v18, %v9671_v48  ;;  %v3544_v39 = vpack.c.bf16 %v3522_v12, %v3521_v15  ;;  %v4267_v48 = vsel %vm770_vm0, %v10812_v6, 0 }
 0x9cc   :  { %v3543_v22 = vpack.c.bf16 %v3520_v10, %v3519_v62 }
 0x9ce   :  { %6945 = vmatprep.mubr.bf16.mxu1 %v3543_v22 }
 0x9cf   :  { %6946 = vmatmul.mubr.bf16.vlgmr.msra.gmra.mxu1 %v3544_v39 }
 0x9d0   :  { %6994 = vmatpush3.bf16.xpose.msra.mxu1 %v4273_v24 }
 0x9d1   :  { %7210 = vmatprep.subr.msk.bf16.mxu1 %vm770_vm0, %v10811_v8 }
 0x9d6   :  { %v9779_v4 = vpop.f32.mrf.mxu0 }
 0x9d8   :  { %6996 = vmatpush3.bf16.xpose.msra.mxu1 %v4270_v3  ;;  %v9783_v44 = vpop.f32.mrf.mxu0 }
 0x9d9   :  { %7211 = vmatprep.subr.msk.bf16.mxu1 %vm770_vm0, %v10812_v6 }
 0x9da   :  { %v9787_v37 = vpop.f32.mrf.mxu0 }
 0x9dc   :  { %v9791_v60 = vpop.f32.mrf.mxu0 }
 0x9de   :  { %v9795_v41 = vpop.f32.mrf.mxu0 }
 0x9e0   :  { %6998 = vmatpush3.bf16.xpose.msra.mxu1 %v4267_v48  ;;  %v9799_v21 = vpop.f32.mrf.mxu0 }
 0x9e1   :  { %7212 = vmatprep.subr.msk.bf16.mxu1 %vm770_vm0, %v10813_v50 }
 0x9e2   :  { %v9803_v31 = vpop.f32.mrf.mxu0 }
 0x9e4   :  { %v9807_v2 = vpop.f32.mrf.mxu0 }
 0x9e6   :  { %v9811_v52 = vpop.f32.mrf.mxu0 }
 0x9e8   :  { %7000 = vmatpush3.bf16.xpose.msra.mxu1 %v4264_v9  ;;  %v9814_v59 = vpop.f32.mrf.mxu0 }
 0x9e9   :  { %7213 = vmatprep.subr.msk.bf16.mxu1 %vm770_vm0, %v10814_v43 }
 0x9ea   :  { %v9818_v0 = vpop.f32.mrf.mxu0 }
 0x9ec   :  { %v3452_v17 = vpop.xlane.xlu0 %3451  ;;  %v9823_v18 = vpop.f32.mrf.mxu0 }
 0x9ee   :  { %v9827_v22 = vpop.f32.mrf.mxu0 }
 0x9f0   :  { %7002 = vmatpush3.bf16.xpose.msra.mxu1 %v4261_v28  ;;  %v3448_v34 = vpop.xlane.xlu0 %3447  ;;  %v3450_v40 = vpop.xlane.xlu1 %3449 }
 0x9f1   :  { %7660 = vrcp.f32 %v3448_v34  ;;  %7214 = vmatprep.subr.msk.bf16.mxu1 %vm770_vm0, %v10815_v58  ;;  %v9833_v3 = vpop.f32.mrf.mxu0 }
 0x9f2   :  { %7662 = vrcp.f32 %v3450_v40 }
 0x9f3   :  { %7664 = vrcp.f32 %v3452_v17  ;;  %v9836_v43 = vpop.f32.mrf.mxu0 }
 0x9f4   :  { %v3454_v20 = vpop.xlane.xlu0 %3453  ;;  %v3460_v46 = vpop.xlane.xlu1 %3459 }
 0x9f5   :  { %7666 = vrcp.f32 %v3454_v20  ;;  %v9841_v34 = vpop.f32.mrf.mxu0 }
 0x9f8   :  { %7004 = vmatpush3.bf16.xpose.msra.mxu1 %v4258_v11  ;;  %v3462_v33 = vpop.xlane.xlu0 %3461  ;;  %v3456_v16 = vpop.xlane.xlu1 %3455 }
 0x9f9   :  { %7215 = vmatprep.subr.msk.bf16.mxu1 %vm770_vm0, %v4214_v55  ;;  %7668 = vrcp.f32 %v3462_v33 }
 0x9fa   :  { %7670 = vrcp.f32 %v3456_v16 }
 0x9fb   :  { %7672 = vrcp.f32 %v3460_v46 }
 0x9fc   :  { %v3458_v25 = vpop.xlane.xlu0 %3457  ;;  %v3468_v13 = vpop.xlane.xlu1 %3467 }
 0x9fd   :  { %7674 = vrcp.f32 %v3458_v25 }
 0x9fe   :  { %v7661_v7 = vpop.eup %7660 }
 0x9ff   :  { %v7663_v53 = vpop.eup %7662  ;;  %v3523_v35 = vmul.f32 %v7661_v7, %v9713_v63 }
 0xa00   :  { %v7665_v56 = vpop.eup %7664  ;;  %7006 = vmatpush3.bf16.xpose.msra.mxu1 %v4255_v26  ;;  %v3470_v5 = vpop.xlane.xlu0 %3469  ;;  %v3524_v42 = vmul.f32 %v7663_v53, %v9716_v30 }
 0xa01   :  { %v3464_v1 = vpop.xlane.xlu1 %3463  ;;  %7676 = vrcp.f32 %v3470_v5  ;;  %v3525_v23 = vmul.f32 %v7665_v56, %v9710_v27 }
 0xa02   :  { %v7667_v32 = vpop.eup %7666  ;;  %v3545_v51 = vpack.c.bf16 %v3524_v42, %v3523_v35  ;;  %7678 = vrcp.f32 %v3464_v1 }
 0xa03   :  { %v3526_v61 = vmul.f32 %v7667_v32, %v9723_v45  ;;  %7680 = vrcp.f32 %v3468_v13 }
 0xa04   :  { %6949 = vmatprep.mubr.bf16.mxu1 %v3545_v51  ;;  %v3466_v63 = vpop.xlane.xlu0 %3465 }
 0xa05   :  { %7682 = vrcp.f32 %v3466_v63  ;;  %v4212_v12 = vpop.permute.xlu1 %4211  ;;  %v3546_v62 = vpack.c.bf16 %v3526_v61, %v3525_v23 }
 0xa06   :  { %7216 = vmatprep.subr.msk.bf16.mxu1 %vm770_vm0, %v4212_v12  ;;  %v4252_v30 = vsel %vm770_vm0, %v4212_v12, 0  ;;  %v7669_v10 = vpop.eup %7668  ;;  %v10816_v12 = vld [vmem:[#allocation42_spill] sm:$0xff] }
 0xa07   :  { %6950 = vmatmul.mubr.bf16.gmra.mxu1 %v3546_v62  ;;  %v7671_v15 = vpop.eup %7670  ;;  %v3530_v47 = vmul.f32 %v7669_v10, %v9729_v19  ;;  %v10817_v62 = vld [vmem:[#allocation47_spill] sm:$0xff]  ;;  %v10819_v10 = vld [vmem:[#allocation50_spill] sm:$0xff] }
 0xa08   :  { %7008 = vmatpush3.bf16.xpose.msra.mxu1 %v4252_v30  ;;  %v4033_v27 = vpop.permute.xlu0 %4032  ;;  %v7673_v45 = vpop.eup %7672  ;;  %v3527_v24 = vmul.f32 %v7671_v15, %v9727_v36  ;;  %v10818_v30 = vld [vmem:[#allocation52_spill] sm:$0xff] }
 0xa09   :  { %6990 = vmatmul.mubr.msk.bf16.gmra.mxu0 %vm770_vm0, %v4033_v27  ;;  %v3529_v6 = vmul.f32 %v7673_v45, %v9721_v14  ;;  %v10820_v27 = vld [vmem:[#allocation56_spill] sm:$0xff]  ;;  %v10821_v45 = vld [vmem:[#allocation54_spill] sm:$0xff] }
 0xa0a   :  { %v7675_v39 = vpop.eup %7674 }
 0xa0b   :  { %v3528_v8 = vmul.f32 %v7675_v39, %v9733_v49  ;;  %v3548_v50 = vpack.c.bf16 %v3530_v47, %v3529_v6  ;;  %v10822_v47 = vld [vmem:[#allocation58_spill] sm:$0xff] }
 0xa0c   :  { %v4196_v46 = vpop.permute.xlu0 %4195 }
 0xa0d   :  { %v3547_v48 = vpack.c.bf16 %v3528_v8, %v3527_v24  ;;  %v10823_v8 = vld [vmem:[#allocation55_spill] sm:$0xff] }
 0xa0e   :  { %v7677_v9 = vpop.eup %7676 }
 0xa0f   :  { %6953 = vmatprep.mubr.bf16.mxu1 %v3547_v48  ;;  %v7679_v55 = vpop.eup %7678  ;;  %v3534_v19 = vmul.f32 %v7677_v9, %v9741_v29  ;;  %v10824_v48 = vld [vmem:[#allocation57_spill] sm:$0xff] }
 0xa10   :  { %6954 = vmatmul.mubr.bf16.gmra.mxu1 %v3548_v50  ;;  %v7681_v17 = vpop.eup %7680  ;;  %v3531_v36 = vmul.f32 %v7679_v55, %v9739_v54  ;;  %v4200_v16 = vpop.permute.xlu0 %4199  ;;  %v10825_v9 = vld [vmem:[#allocation53_spill] sm:$0xff] }
 0xa11   :  { %v3533_v14 = vmul.f32 %v7681_v17, %v9735_v57 }
 0xa12   :  { %v7683_v28 = vpop.eup %7682 }
 0xa13   :  { %v3532_v49 = vmul.f32 %v7683_v28, %v9745_v38  ;;  %v3550_v20 = vpack.c.bf16 %v3534_v19, %v3533_v14  ;;  %v4198_v38 = vpop.permute.xlu1 %4197 }
 0xa14   :  { %v4204_v35 = vpop.permute.xlu0 %4203 }
 0xa15   :  { %v3549_v58 = vpack.c.bf16 %v3532_v49, %v3531_v36 }
 0xa16   :  { %v9844_v40 = vpop.f32.mrf.mxu0 }
 0xa17   :  { %6957 = vmatprep.mubr.bf16.mxu1 %v3549_v58  ;;  %v4202_v53 = vpop.permute.xlu1 %4201 }
 0xa18   :  { %v9846_v11 = vpop.f32.mrf.mxu0  ;;  %6958 = vmatmul.mubr.bf16.gmra.mxu1 %v3550_v20  ;;  %v4208_v1 = vpop.permute.xlu0 %4207 }
 0xa19   :  { %4372 = vmax.xlane.f32.xlu0 %v9846_v11  ;;  %7009 = vmatprep.mubr.msk.bf16.mxu1 %vm770_vm0, %v4196_v46 }
 0xa1a   :  { %v9850_v54 = vpop.f32.mrf.mxu0 }
 0xa1b   :  { %v4206_v42 = vpop.permute.xlu1 %4205 }
 0xa1c   :  { %v9852_v29 = vpop.f32.mrf.mxu0 }
 0xa1d   :  { %4374 = vmax.xlane.f32.xlu1 %v9852_v29  ;;  %4376 = vmax.xlane.f32.xlu0 %v9844_v40 }
 0xa1e   :  { %v6983_v57 = vpop.f32.mrf.mxu0 }
 0xa1f   :  { %v4210_v32 = vpop.permute.xlu1 %4209 }
 0xa20   :  { %v4148_v33 = vpop.f32.mrf.mxu0  ;;  %7010 = vmatmul.mubr.msk.bf16.vlgmr.msra.gmra.mxu1 %vm770_vm0, %v4198_v38 }
 0xa21   :  { %4380 = vmax.xlane.f32.xlu1 %v4148_v33  ;;  %4378 = vmax.xlane.f32.xlu0 %v9850_v54 }
 0xa22   :  { %v9858_v25 = vpop.f32.mrf.mxu0  ;;  %7013 = vmatprep.mubr.msk.bf16.mxu1 %vm770_vm0, %v4200_v16 }
 0xa24   :  { %v9861_v13 = vpop.f32.mrf.mxu0 }
 0xa25   :  { %4384 = vmax.xlane.f32.xlu1 %v6983_v57  ;;  %4382 = vmax.xlane.f32.xlu0 %v9861_v13 }
 0xa26   :  { %v9864_v7 = vpop.f32.mrf.mxu0 }
 0xa28   :  { %v9866_v26 = vpop.f32.mrf.mxu0  ;;  %7014 = vmatmul.mubr.msk.bf16.gmra.mxu1 %vm770_vm0, %v4202_v53 }
 0xa29   :  { %4386 = vmax.xlane.f32.xlu0 %v9858_v25  ;;  %4388 = vmax.xlane.f32.xlu1 %v9866_v26 }
 0xa2a   :  { %v9871_v56 = vpop.f32.mrf.mxu0  ;;  %7017 = vmatprep.mubr.msk.bf16.mxu1 %vm770_vm0, %v4204_v35 }
 0xa2c   :  { %v9874_v5 = vpop.f32.mrf.mxu0 }
 0xa2d   :  { %4392 = vmax.xlane.f32.xlu1 %v9864_v7  ;;  %4390 = vmax.xlane.f32.xlu0 %v9874_v5 }
 0xa30   :  { %7018 = vmatmul.mubr.msk.bf16.gmra.mxu1 %vm770_vm0, %v4206_v42 }
 0xa31   :  { %4394 = vmax.xlane.f32.xlu0 %v9871_v56  ;;  %7021 = vmatprep.mubr.msk.bf16.mxu1 %vm770_vm0, %v4208_v1 }
 0xa38   :  { %7022 = vmatmul.mubr.msk.bf16.gmra.mxu1 %vm770_vm0, %v4210_v32 }
 0xaa2   :  { %v4373_v15 = vpop.xlane.xlu0 %4372 }
 0xaa3   :  { %v4436_v20 = vsub.f32 %v9846_v11, %v4373_v15 }
 0xaa5   :  { %v4468_v35 = vmul.f32 1.442695, %v4436_v20 }
 0xaa6   :  { %v4375_v39 = vpop.xlane.xlu1 %4374  ;;  %v4377_v24 = vpop.xlane.xlu0 %4376 }
 0xaa7   :  { %v4438_v19 = vsub.f32 %v9844_v40, %v4377_v24 }
 0xaa9   :  { %v4472_v46 = vmul.f32 1.442695, %v4438_v19 }
 0xaaa   :  { %v4381_v6 = vpop.xlane.xlu1 %4380  ;;  %v4379_v50 = vpop.xlane.xlu0 %4378 }
 0xaab   :  { %v4440_v49 = vsub.f32 %v4148_v33, %v4381_v6  ;;  %v4439_v42 = vsub.f32 %v9850_v54, %v4379_v50  ;;  %v4437_v33 = vsub.f32 %v9852_v29, %v4375_v39 }
 0xaad   :  { %v4476_v38 = vmul.f32 1.442695, %v4440_v49  ;;  %v4474_v32 = vmul.f32 1.442695, %v4439_v42 }
 0xaae   :  { %v4385_v55 = vpop.xlane.xlu1 %4384  ;;  %v4383_v17 = vpop.xlane.xlu0 %4382 }
 0xaaf   :  { %v4442_v28 = vsub.f32 %v6983_v57, %v4385_v55 }
 0xab1   :  { %v4480_v14 = vmul.f32 1.442695, %v4442_v28 }
 0xab2   :  { %v4389_v36 = vpop.xlane.xlu1 %4388  ;;  %v4387_v58 = vpop.xlane.xlu0 %4386 }
 0xab3   :  { %7684 = vpow2.f32 %v4480_v14  ;;  %v4443_v16 = vsub.f32 %v9858_v25, %v4387_v58  ;;  %v4444_v11 = vsub.f32 %v9866_v26, %v4389_v36  ;;  %v4470_v25 = vmul.f32 1.442695, %v4437_v33 }
 0xab4   :  { %7686 = vpow2.f32 %v4472_v46 }
 0xab5   :  { %7688 = vpow2.f32 %v4476_v38  ;;  %v4482_v57 = vmul.f32 1.442695, %v4443_v16 }
 0xab6   :  { %v4393_v53 = vpop.xlane.xlu1 %4392  ;;  %v4391_v1 = vpop.xlane.xlu0 %4390  ;;  %7690 = vpow2.f32 %v4468_v35 }
 0xab7   :  { %v4446_v40 = vsub.f32 %v9864_v7, %v4393_v53  ;;  %7692 = vpow2.f32 %v4482_v57  ;;  %v4445_v26 = vsub.f32 %v9874_v5, %v4391_v1 }
 0xab8   :  { %7694 = vpow2.f32 %v4474_v32 }
 0xac0   :  { %v9923_v15 = vpop.eup %7684 }
 0xac1   :  { %v9926_v7 = vpop.eup %7686 }
 0xac9   :  { %v9882_v51 = vpop.f32.mrf.mxu0 }
 0xacb   :  { %v9884_v23 = vpop.f32.mrf.mxu0 }
 0xacc   :  { %4396 = vmax.xlane.f32.xlu1 %v9884_v23 }
 0xacd   :  { %v9887_v61 = vpop.f32.mrf.mxu0 }
 0xacf   :  { %v9889_v63 = vpop.f32.mrf.mxu0 }
 0xad0   :  { %4400 = vmax.xlane.f32.xlu1 %v9882_v51  ;;  %4398 = vmax.xlane.f32.xlu0 %v9889_v63 }
 0xad4   :  { %4402 = vmax.xlane.f32.xlu0 %v9887_v61 }
 0xae1   :  { %4690 = vrot.lane.b32.xlu1 %v10816_v12, %s7907_s11  ;;  %v4488_v12 = vmul.f32 1.442695, %v4446_v40 }
 0xae3   :  { %7696 = vpow2.f32 %v4488_v12 }
 0xae4   :  { %7698 = vpow2.f32 %v4470_v25 }
 0xae5   :  { %4688 = vrot.lane.b32.xlu1 %v10817_v62, %s7907_s11  ;;  %v4395_v62 = vpop.xlane.xlu0 %4394 }
 0xae6   :  { %v4447_v54 = vsub.f32 %v9871_v56, %v4395_v62  ;;  %v4486_v56 = vmul.f32 1.442695, %v4445_v26 }
 0xae9   :  { %4684 = vrot.lane.b32.xlu1 %v10818_v30, %s7907_s11  ;;  %v4441_v30 = vsub.f32 %v9861_v13, %v4383_v17 }
 0xaea   :  { %4686 = vrot.lane.b32.xlu0 %v10819_v10, %s7907_s11  ;;  %v4484_v10 = vmul.f32 1.442695, %v4444_v11 }
 0xaeb   :  { %v4478_v29 = vmul.f32 1.442695, %v4441_v30 }
 0xaec   :  { %7700 = vpow2.f32 %v4484_v10 }
 0xaed   :  { %4678 = vrot.lane.b32.xlu1 %v10820_v27, %s7907_s11  ;;  %v4490_v27 = vmul.f32 1.442695, %v4447_v54  ;;  %7702 = vpow2.f32 %v4478_v29 }
 0xaee   :  { %4682 = vrot.lane.b32.xlu0 %v10821_v45, %s7907_s11  ;;  %v9929_v45 = vpop.eup %7688 }
 0xaef   :  { %v9933_v13 = vpop.eup %7690  ;;  %7704 = vpow2.f32 %v4490_v27 }
 0xaf0   :  { %v9935_v39 = vpop.eup %7692  ;;  %7706 = vpow2.f32 %v4486_v56 }
 0xaf1   :  { %4811 = vrot.lane.b32.xlu1 %v10822_v47, %s7907_s11  ;;  %v9937_v47 = vpop.f32.mrf.mxu1  ;;  %v9941_v5 = vpop.eup %7694 }
 0xaf2   :  { %4680 = vrot.lane.b32.xlu0 %v10823_v8, %s7907_s11  ;;  %10826 = vst [vmem:[#allocation45_spill] sm:$0xff] %v9937_v47  ;;  %v9943_v24 = vpop.eup %7696 }
 0xaf3   :  { %v9945_v8 = vpop.f32.mrf.mxu1  ;;  %v9949_v6 = vpop.eup %7698 }
 0xaf5   :  { %v9953_v50 = vpop.f32.mrf.mxu1 }
 0xaf6   :  { %4676 = vrot.lane.b32.xlu0 %v10824_v48, %s7907_s11  ;;  %10827 = vst [vmem:[#allocation51_spill] sm:$0xff] %v9953_v50 }
 0xaf7   :  { %v9961_v17 = vpop.f32.mrf.mxu1 }
 0xaf8   :  { %10828 = vst [vmem:[#allocation34_spill] sm:$0xff] %v9961_v17 }
 0xaf9   :  { %v9951_v48 = vpop.eup %7700  ;;  %v9965_v28 = vpop.f32.mrf.mxu1 }
 0xafa   :  { %4809 = vrot.lane.b32.xlu0 %v10825_v9, %s7907_s11  ;;  %v9957_v9 = vpop.eup %7702  ;;  %10829 = vst [vmem:[#allocation16_spill] sm:$0xff] %v9965_v28 }
 0xafb   :  { %v9970_v36 = vpop.f32.mrf.mxu1 }
 0xafc   :  { %v9959_v55 = vpop.eup %7704  ;;  %10830 = vst [vmem:[#allocation36_spill] sm:$0xff] %v9970_v36 }
 0xafd   :  { %v9967_v19 = vpop.eup %7706  ;;  %v9972_v49 = vpop.f32.mrf.mxu1 }
 0xafe   :  { %10831 = vst [vmem:[#allocation24_spill] sm:$0xff] %v9972_v49 }
 0xaff   :  { %v9974_v14 = vpop.f32.mrf.mxu1 }
 0xb00   :  { %10832 = vst [vmem:[#allocation46_spill] sm:$0xff] %v9974_v14 }
 0xb01   :  { %v9976_v58 = vpop.f32.mrf.mxu1 }
 0xb02   :  { %10833 = vst [vmem:[#allocation14_spill] sm:$0xff] %v9976_v58  ;;  %v10844_v58 = vld [vmem:[#allocation40_spill] sm:$0xff] }
 0xb03   :  { %v9978_v20 = vpop.f32.mrf.mxu1 }
 0xb04   :  { %10834 = vst [vmem:[#allocation20_spill] sm:$0xff] %v9978_v20 }
 0xb05   :  { %v9980_v46 = vpop.f32.mrf.mxu1 }
 0xb06   :  { %10835 = vst [vmem:[#allocation70_spill] sm:$0xff] %v9980_v46 }
 0xb07   :  { %v9982_v38 = vpop.f32.mrf.mxu1 }
 0xb08   :  { %10836 = vst [vmem:[#allocation71_spill] sm:$0xff] %v9982_v38 }
 0xb09   :  { %v9984_v16 = vpop.f32.mrf.mxu1 }
 0xb0a   :  { %10837 = vst [vmem:[#allocation72_spill] sm:$0xff] %v9984_v16 }
 0xb0b   :  { %v9986_v53 = vpop.f32.mrf.mxu1 }
 0xb0c   :  { %10838 = vst [vmem:[#allocation73_spill] sm:$0xff] %v9986_v53  ;;  %v10843_v53 = vld [vmem:[#allocation43_spill] sm:$0xff] }
 0xb0d   :  { %v9988_v35 = vpop.f32.mrf.mxu1 }
 0xb0e   :  { %10839 = vst [vmem:[#allocation74_spill] sm:$0xff] %v9988_v35  ;;  %v10842_v35 = vld [vmem:[#allocation48_spill] sm:$0xff] }
 0xb0f   :  { %v9991_v57 = vpop.f32.mrf.mxu1 }
 0xb10   :  { %10840 = vst [vmem:[#allocation75_spill] sm:$0xff] %v9991_v57 }
 0xb11   :  { %v9994_v12 = vpop.f32.mrf.mxu1 }
 0xb13   :  { %v9998_v29 = vpop.f32.mrf.mxu1 }
 0xb15   :  { %4544 = vadd.xlane.f32.xlu1 %v9923_v15 }
 0xb19   :  { %4536 = vadd.xlane.f32.xlu0 %v9926_v7  ;;  %4540 = vadd.xlane.f32.xlu1 %v9929_v45 }
 0xb1d   :  { %4532 = vadd.xlane.f32.xlu0 %v9933_v13  ;;  %4546 = vadd.xlane.f32.xlu1 %v9935_v39 }
 0xb21   :  { %4538 = vadd.xlane.f32.xlu0 %v9941_v5  ;;  %4552 = vadd.xlane.f32.xlu1 %v9943_v24 }
 0xb25   :  { %4534 = vadd.xlane.f32.xlu0 %v9949_v6  ;;  %4548 = vadd.xlane.f32.xlu1 %v9951_v48 }
 0xb29   :  { %4542 = vadd.xlane.f32.xlu0 %v9957_v9  ;;  %4554 = vadd.xlane.f32.xlu1 %v9959_v55 }
 0xb2d   :  { %4550 = vadd.xlane.f32.xlu0 %v9967_v19 }
 0xb55   :  { %v4397_v42 = vpop.xlane.xlu1 %4396 }
 0xb56   :  { %v4448_v1 = vsub.f32 %v9884_v23, %v4397_v42 }
 0xb58   :  { %v4492_v40 = vmul.f32 1.442695, %v4448_v1 }
 0xb59   :  { %v4399_v33 = vpop.xlane.xlu0 %4398  ;;  %v4401_v32 = vpop.xlane.xlu1 %4400 }
 0xb5a   :  { %7708 = vpow2.f32 %v4492_v40  ;;  %v4450_v11 = vsub.f32 %v9882_v51, %v4401_v32  ;;  %v4449_v62 = vsub.f32 %v9889_v63, %v4399_v33  ;;  %v10000_v51 = vpop.f32.mrf.mxu1 }
 0xb5c   :  { %v4496_v25 = vmul.f32 1.442695, %v4450_v11  ;;  %v4494_v23 = vmul.f32 1.442695, %v4449_v62 }
 0xb5d   :  { %v4403_v30 = vpop.xlane.xlu0 %4402  ;;  %v4691_v10 = vpop.permute.xlu1 %4690 }
 0xb5e   :  { %v4451_v54 = vsub.f32 %v9887_v61, %v4403_v30  ;;  %7025 = vmatprep.subr.bf16.mxu0 %v4691_v10  ;;  %7710 = vpow2.f32 %v4496_v25  ;;  %v10004_v61 = vpop.f32.mrf.mxu1 }
 0xb5f   :  { %7026 = vmatpush3.bf16.msra.mxu0 %v4691_v10 }
 0xb60   :  { %v4498_v26 = vmul.f32 1.442695, %v4451_v54  ;;  %v10007_v32 = vpop.f32.mrf.mxu1 }
 0xb61   :  { %v4687_v27 = vpop.permute.xlu0 %4686  ;;  %v4689_v56 = vpop.permute.xlu1 %4688 }
 0xb62   :  { %7712 = vpow2.f32 %v4498_v26  ;;  %7027 = vmatprep.subr.bf16.mxu0 %v4689_v56  ;;  %v10014_v10 = vpop.f32.mrf.mxu1 }
 0xb63   :  { %7714 = vpow2.f32 %v4494_v23  ;;  %7028 = vmatpush3.bf16.msra.mxu0 %v4689_v56 }
 0xb64   :  { %7029 = vmatprep.subr.bf16.mxu0 %v4687_v27  ;;  %v10020_v26 = vpop.f32.mrf.mxu1 }
 0xb65   :  { %v4683_v63 = vpop.permute.xlu0 %4682  ;;  %v4685_v42 = vpop.permute.xlu1 %4684 }
 0xb67   :  { %v10002_v1 = vpop.eup %7708  ;;  %7030 = vmatpush3.bf16.msra.mxu0 %v4687_v27  ;;  %v10024_v27 = vpop.f32.mrf.mxu1 }
 0xb68   :  { %4556 = vadd.xlane.f32.xlu1 %v10002_v1  ;;  %7031 = vmatprep.subr.bf16.mxu0 %v4685_v42 }
 0xb69   :  { %v4681_v40 = vpop.permute.xlu0 %4680  ;;  %v4679_v33 = vpop.permute.xlu1 %4678 }
 0xb6a   :  { %v10028_v56 = vpop.f32.mrf.mxu1 }
 0xb6b   :  { %7032 = vmatpush3.bf16.msra.mxu0 %v4685_v42  ;;  %v10009_v11 = vpop.eup %7710 }
 0xb6c   :  { %7033 = vmatprep.subr.bf16.mxu0 %v4683_v63  ;;  %4560 = vadd.xlane.f32.xlu0 %v10009_v11 }
 0xb6d   :  { %v4677_v62 = vpop.permute.xlu0 %4676  ;;  %v4812_v25 = vpop.permute.xlu1 %4811 }
 0xb6e   :  { %7057 = vmatprep.subr.bf16.mxu1 %v4812_v25 }
 0xb6f   :  { %v10012_v30 = vpop.eup %7712  ;;  %7034 = vmatpush3.bf16.msra.mxu0 %v4683_v63  ;;  %7058 = vmatpush3.bf16.msra.mxu1 %v4812_v25  ;;  %v10032_v63 = vpop.f32.mrf.mxu1 }
 0xb70   :  { %v10016_v54 = vpop.eup %7714  ;;  %4562 = vadd.xlane.f32.xlu1 %v10012_v30  ;;  %7035 = vmatprep.subr.bf16.mxu0 %v4681_v40 }
 0xb71   :  { %4558 = vadd.xlane.f32.xlu0 %v10016_v54  ;;  %v4810_v23 = vpop.permute.xlu0 %4809  ;;  %v10036_v42 = vpop.f32.mrf.mxu1 }
 0xb72   :  { %7059 = vmatprep.subr.bf16.mxu1 %v4810_v23 }
 0xb73   :  { %7036 = vmatpush3.bf16.msra.mxu0 %v4681_v40  ;;  %7060 = vmatpush3.bf16.msra.mxu1 %v4810_v23  ;;  %v10040_v40 = vpop.f32.mrf.mxu1  ;;  %v10841_v23 = vld [vmem:[#allocation49_spill] sm:$0xff] }
 0xb74   :  { %4408 = vmax.xlane.f32.xlu1 %v9994_v12  ;;  %7037 = vmatprep.subr.bf16.mxu0 %v4679_v33 }
 0xb75   :  { %4410 = vmax.xlane.f32.xlu0 %v10000_v51 }
 0xb77   :  { %7038 = vmatpush3.bf16.msra.mxu0 %v4679_v33  ;;  %v10044_v33 = vpop.f32.mrf.mxu1 }
 0xb78   :  { %4404 = vmax.xlane.f32.xlu1 %v9998_v29  ;;  %7039 = vmatprep.subr.bf16.mxu0 %v4677_v62 }
 0xb79   :  { %4406 = vmax.xlane.f32.xlu0 %v10004_v61 }
 0xb7b   :  { %7040 = vmatpush3.bf16.msra.mxu0 %v4677_v62  ;;  %v10047_v62 = vpop.f32.mrf.mxu1 }
 0xb7c   :  { %4416 = vmax.xlane.f32.xlu1 %v10007_v32 }
 0xb7d   :  { %4418 = vmax.xlane.f32.xlu0 %v10020_v26 }
 0xb80   :  { %4412 = vmax.xlane.f32.xlu1 %v10014_v10 }
 0xb81   :  { %4414 = vmax.xlane.f32.xlu0 %v10024_v27 }
 0xb84   :  { %4424 = vmax.xlane.f32.xlu1 %v10028_v56 }
 0xb85   :  { %4426 = vmax.xlane.f32.xlu0 %v10036_v42 }
 0xb88   :  { %4420 = vmax.xlane.f32.xlu1 %v10032_v63 }
 0xb89   :  { %4422 = vmax.xlane.f32.xlu0 %v10040_v40 }
 0xb8c   :  { %4432 = vmax.xlane.f32.xlu1 %v10044_v33 }
 0xb90   :  { %4428 = vmax.xlane.f32.xlu1 %v10047_v62 }
 0xb9e   :  { %v4545_v25 = vpop.xlane.xlu1 %4544 }
 0xb9f   :  { %4805 = vrot.lane.b32.xlu0 %v10841_v23, %s7907_s11 }
 0xba1   :  { %4807 = vrot.lane.b32.xlu1 %v10842_v35, %s7907_s11 }
 0xba2   :  { %v4537_v16 = vpop.xlane.xlu0 %4536  ;;  %v4541_v57 = vpop.xlane.xlu1 %4540 }
 0xba5   :  { %4803 = vrot.lane.b32.xlu1 %v10843_v53, %s7907_s11 }
 0xba6   :  { %v4533_v46 = vpop.xlane.xlu0 %4532  ;;  %v4547_v38 = vpop.xlane.xlu1 %4546 }
 0xba9   :  { %4799 = vrot.lane.b32.xlu1 %v10844_v58, %s7907_s11 }
 0xbaa   :  { %v4539_v20 = vpop.xlane.xlu0 %4538  ;;  %v4553_v49 = vpop.xlane.xlu1 %4552 }
 0xbab   :  { %7716 = vrcp.f32 %v4539_v20 }
 0xbac   :  { %7718 = vrcp.f32 %v4533_v46  ;;  %v10059_v46 = vpop.f32.mrf.mxu1 }
 0xbad   :  { %7720 = vrcp.f32 %v4537_v16 }
 0xbae   :  { %v4535_v14 = vpop.xlane.xlu0 %4534  ;;  %v4549_v35 = vpop.xlane.xlu1 %4548 }
 0xbaf   :  { %7722 = vrcp.f32 %v4535_v14  ;;  %v10065_v47 = vpop.f32.mrf.mxu1 }
 0xbb0   :  { %7724 = vrcp.f32 %v4541_v57 }
 0xbb2   :  { %v4543_v23 = vpop.xlane.xlu0 %4542  ;;  %v4555_v36 = vpop.xlane.xlu1 %4554 }
 0xbb3   :  { %7726 = vrcp.f32 %v4543_v23 }
 0xbb4   :  { %7728 = vrcp.f32 %v4547_v38 }
 0xbb5   :  { %7730 = vrcp.f32 %v4545_v25 }
 0xbb6   :  { %7732 = vrcp.f32 %v4549_v35  ;;  %v4551_v53 = vpop.xlane.xlu0 %4550 }
 0xbb7   :  { %7734 = vrcp.f32 %v4551_v53 }
 0xbb8   :  { %v7717_v28 = vpop.eup %7716  ;;  %7736 = vrcp.f32 %v4555_v36 }
 0xbb9   :  { %v7719_v50 = vpop.eup %7718  ;;  %v4631_v20 = vmul.f32 %v7717_v28, %v9941_v5  ;;  %7738 = vrcp.f32 %v4553_v49 }
 0xbba   :  { %v7721_v58 = vpop.eup %7720  ;;  %v4628_v14 = vmul.f32 %v7719_v50, %v9933_v13 }
 0xbbb   :  { %v4630_v38 = vmul.f32 %v7721_v58, %v9926_v7 }
 0xbbc   :  { %v7723_v17 = vpop.eup %7722 }
 0xbbd   :  { %v4629_v16 = vmul.f32 %v7723_v17, %v9949_v6  ;;  %v7725_v57 = vpop.eup %7724  ;;  %v4661_v35 = vpack.c.bf16 %v4631_v20, %v4630_v38 }
 0xbbe   :  { %4434 = vmax.xlane.f32.xlu0 %v10059_v46  ;;  %v4632_v5 = vmul.f32 %v7725_v57, %v9929_v45 }
 0xbbf   :  { %v4660_v25 = vpack.c.bf16 %v4629_v16, %v4628_v14 }
 0xbc0   :  { %v7727_v23 = vpop.eup %7726 }
 0xbc1   :  { %v7729_v53 = vpop.eup %7728  ;;  %7041 = vmatprep.mubr.bf16.mxu0 %v4660_v25  ;;  %v4633_v28 = vmul.f32 %v7727_v23, %v9957_v9 }
 0xbc2   :  { %v7731_v13 = vpop.eup %7730  ;;  %4430 = vmax.xlane.f32.xlu0 %v10065_v47  ;;  %7042 = vmatmul.mubr.bf16.vlgmr.msra.gmra.mxu0 %v4661_v35  ;;  %v4635_v17 = vmul.f32 %v7729_v53, %v9935_v39  ;;  %v10845_v39 = vld [vmem:[#allocation44_spill] sm:$0xff] }
 0xbc3   :  { %v7733_v6 = vpop.eup %7732  ;;  %v4662_v7 = vpack.c.bf16 %v4633_v28, %v4632_v5  ;;  %v4634_v49 = vmul.f32 %v7731_v13, %v9923_v15 }
 0xbc4   :  { %v7735_v50 = vpop.eup %7734  ;;  %v4636_v58 = vmul.f32 %v7733_v6, %v9951_v48 }
 0xbc5   :  { %7045 = vmatprep.mubr.bf16.mxu0 %v4662_v7  ;;  %v4637_v36 = vmul.f32 %v7735_v50, %v9967_v19  ;;  %v4663_v20 = vpack.c.bf16 %v4635_v17, %v4634_v49  ;;  %v7737_v45 = vpop.eup %7736 }
 0xbc6   :  { %v7739_v9 = vpop.eup %7738  ;;  %v4639_v16 = vmul.f32 %v7737_v45, %v9959_v55 }
 0xbc7   :  { %v4664_v14 = vpack.c.bf16 %v4637_v36, %v4636_v58  ;;  %v4638_v57 = vmul.f32 %v7739_v9, %v9943_v24 }
 0xbc9   :  { %v4665_v38 = vpack.c.bf16 %v4639_v16, %v4638_v57 }
 0xbca   :  { %7046 = vmatmul.mubr.bf16.gmra.mxu0 %v4663_v20 }
 0xbcb   :  { %7049 = vmatprep.mubr.bf16.mxu0 %v4664_v14 }
 0xbd2   :  { %7050 = vmatmul.mubr.bf16.gmra.mxu0 %v4665_v38 }
 0xbd8   :  { %4801 = vrot.lane.b32.xlu0 %v10845_v39, %s7907_s11 }
 0xbf1   :  { %v4557_v19 = vpop.xlane.xlu1 %4556 }
 0xbf5   :  { %v4561_v25 = vpop.xlane.xlu0 %4560 }
 0xbf6   :  { %7740 = vrcp.f32 %v4561_v25 }
 0xbf7   :  { %7742 = vrcp.f32 %v4557_v19 }
 0xbf9   :  { %v4563_v15 = vpop.xlane.xlu1 %4562 }
 0xbfa   :  { %v4559_v48 = vpop.xlane.xlu0 %4558  ;;  %7744 = vrcp.f32 %v4563_v15 }
 0xbfb   :  { %7746 = vrcp.f32 %v4559_v48 }
 0xbfd   :  { %v4409_v23 = vpop.xlane.xlu1 %4408 }
 0xbfe   :  { %v4411_v35 = vpop.xlane.xlu0 %4410  ;;  %v4454_v53 = vsub.f32 %v9994_v12, %v4409_v23 }
 0xbff   :  { %v4455_v24 = vsub.f32 %v10000_v51, %v4411_v35 }
 0xc00   :  { %v4504_v55 = vmul.f32 1.442695, %v4454_v53 }
 0xc01   :  { %v4405_v5 = vpop.xlane.xlu1 %4404  ;;  %v4506_v17 = vmul.f32 1.442695, %v4455_v24 }
 0xc02   :  { %7748 = vpow2.f32 %v4504_v55  ;;  %v4407_v28 = vpop.xlane.xlu0 %4406  ;;  %v4452_v13 = vsub.f32 %v9998_v29, %v4405_v5 }
 0xc03   :  { %v4453_v6 = vsub.f32 %v10004_v61, %v4407_v28  ;;  %v7741_v50 = vpop.eup %7740 }
 0xc04   :  { %v4500_v7 = vmul.f32 1.442695, %v4452_v13  ;;  %v7743_v58 = vpop.eup %7742  ;;  %v4642_v9 = vmul.f32 %v7741_v50, %v10009_v11 }
 0xc05   :  { %v4502_v36 = vmul.f32 1.442695, %v4453_v6  ;;  %v4417_v49 = vpop.xlane.xlu1 %4416  ;;  %v4640_v57 = vmul.f32 %v7743_v58, %v10002_v1 }
 0xc06   :  { %7750 = vpow2.f32 %v4500_v7  ;;  %v4419_v20 = vpop.xlane.xlu0 %4418  ;;  %v4458_v12 = vsub.f32 %v10007_v32, %v4417_v49 }
 0xc07   :  { %v7745_v45 = vpop.eup %7744  ;;  %7752 = vpow2.f32 %v4502_v36  ;;  %v4459_v61 = vsub.f32 %v10020_v26, %v4419_v20 }
 0xc08   :  { %v7747_v51 = vpop.eup %7746  ;;  %v4512_v14 = vmul.f32 1.442695, %v4458_v12  ;;  %v4643_v29 = vmul.f32 %v7745_v45, %v10012_v30  ;;  %7754 = vpow2.f32 %v4506_v17 }
 0xc09   :  { %v4413_v16 = vpop.xlane.xlu1 %4412  ;;  %v4641_v38 = vmul.f32 %v7747_v51, %v10016_v54  ;;  %v4514_v11 = vmul.f32 1.442695, %v4459_v61 }
 0xc0a   :  { %7756 = vpow2.f32 %v4512_v14  ;;  %v4415_v39 = vpop.xlane.xlu0 %4414  ;;  %v4456_v32 = vsub.f32 %v10014_v10, %v4413_v16  ;;  %v4667_v19 = vpack.c.bf16 %v4643_v29, %v4642_v9 }
 0xc0b   :  { %v4457_v25 = vsub.f32 %v10024_v27, %v4415_v39  ;;  %v4666_v15 = vpack.c.bf16 %v4641_v38, %v4640_v57 }
 0xc0c   :  { %v4508_v48 = vmul.f32 1.442695, %v4456_v32 }
 0xc0d   :  { %v4510_v23 = vmul.f32 1.442695, %v4457_v25  ;;  %7053 = vmatprep.mubr.bf16.mxu0 %v4666_v15  ;;  %v4425_v30 = vpop.xlane.xlu1 %4424 }
 0xc0e   :  { %7758 = vpow2.f32 %v4508_v48  ;;  %v4427_v26 = vpop.xlane.xlu0 %4426  ;;  %7054 = vmatmul.mubr.bf16.gmra.mxu0 %v4667_v19  ;;  %v4462_v1 = vsub.f32 %v10028_v56, %v4425_v30 }
 0xc0f   :  { %v10091_v35 = vpop.eup %7748  ;;  %7760 = vpow2.f32 %v4510_v23  ;;  %v4463_v10 = vsub.f32 %v10036_v42, %v4427_v26  ;;  %v10847_v26 = vld [vmem:[#allocation39_spill] sm:$0xff] }
 0xc10   :  { %v4520_v54 = vmul.f32 1.442695, %v4462_v1  ;;  %4568 = vadd.xlane.f32.xlu0 %v10091_v35  ;;  %7762 = vpow2.f32 %v4514_v11  ;;  %v6003_v1 = vpack.c.bf16 %v10847_v26, %v10847_v26  ;;  %v6038_v26 = vpack.c.bf16 %v9799_v21, %v9799_v21 }
 0xc11   :  { %v4421_v27 = vpop.xlane.xlu1 %4420  ;;  %v4522_v13 = vmul.f32 1.442695, %v4463_v10  ;;  %v10848_v10 = vld [vmem:[#allocation59_spill] sm:$0xff]  ;;  %v6041_v21 = vpack.c.bf16 %v9803_v31, %v9803_v31 }
 0xc12   :  { %7764 = vpow2.f32 %v4520_v54  ;;  %v4423_v53 = vpop.xlane.xlu0 %4422  ;;  %v4460_v55 = vsub.f32 %v10032_v63, %v4421_v27  ;;  %v7277_v54 = vld [vmem:[#allocation8 + $0x30] sm:$0xff]   ;;  %v6005_v27 = vpack.c.bf16 %v10848_v10, %v10848_v10  ;;  %v6039_v10 = vpack.c.bf16 %v9807_v2, %v9807_v2 }
 0xc13   :  { %v10096_v24 = vpop.eup %7750  ;;  %v4461_v5 = vsub.f32 %v10040_v40, %v4423_v53  ;;  %v7278_v53 = vld [vmem:[#allocation8 + $0x28] sm:$0xff]  }
 0xc14   :  { %v10099_v28 = vpop.eup %7752  ;;  %v4516_v56 = vmul.f32 1.442695, %v4460_v55  ;;  %4564 = vadd.xlane.f32.xlu1 %v10096_v24  ;;  %v10849_v55 = vld [vmem:[#allocation41_spill] sm:$0xff] }
 0xc15   :  { %v4518_v6 = vmul.f32 1.442695, %v4461_v5  ;;  %4566 = vadd.xlane.f32.xlu0 %v10099_v28  ;;  %v4433_v7 = vpop.xlane.xlu1 %4432  ;;  %v10103_v42 = vpop.eup %7754  ;;  %v6035_v5 = vpack.c.bf16 %v9791_v60, %v9791_v60  ;;  %v7280_v60 = vld [vmem:[#allocation8 + $0x18] sm:$0xff]  }
 0xc16   :  { %7766 = vpow2.f32 %v4516_v56  ;;  %v4466_v50 = vsub.f32 %v10044_v33, %v4433_v7  ;;  %v4806_v51 = vpop.permute.xlu0 %4805  ;;  %v10850_v56 = vld [vmem:[#allocation61_spill] sm:$0xff]  ;;  %v6037_v7 = vpack.c.bf16 %v9787_v37, %v9787_v37 }
 0xc17   :  { %v10106_v63 = vpop.eup %7756  ;;  %7768 = vpow2.f32 %v4518_v6  ;;  %v7279_v6 = vld [vmem:[#allocation8 + $0x20] sm:$0xff]  }
 0xc18   :  { %v4528_v17 = vmul.f32 1.442695, %v4466_v50  ;;  %4570 = vadd.xlane.f32.xlu1 %v10103_v42  ;;  %7770 = vpow2.f32 %v4522_v13  ;;  %v6004_v13 = vpack.c.bf16 %v10850_v56, %v10850_v56  ;;  %v6034_v50 = vpack.c.bf16 %v9783_v44, %v9783_v44 }
 0xc19   :  { %4576 = vadd.xlane.f32.xlu0 %v10106_v63  ;;  %v4429_v40 = vpop.xlane.xlu1 %4428 }
 0xc1a   :  { %7772 = vpow2.f32 %v4528_v17  ;;  %v4464_v36 = vsub.f32 %v10047_v62, %v4429_v40  ;;  %v6036_v17 = vpack.c.bf16 %v9779_v4, %v9779_v4  ;;  %v7281_v40 = vld [vmem:[#allocation8 + $0x10] sm:$0xff]  }
 0xc1b   :  { %v10111_v49 = vpop.eup %7758  ;;  %v10851_v4 = vld [vmem:[#allocation27_spill] sm:$0xff] }
 0xc1c   :  { %v10113_v58 = vpop.eup %7760  ;;  %v4524_v20 = vmul.f32 1.442695, %v4464_v36  ;;  %4572 = vadd.xlane.f32.xlu1 %v10111_v49  ;;  %v7282_v36 = vld [vmem:[#allocation8 + $0x8] sm:$0xff]  }
 0xc1d   :  { %4574 = vadd.xlane.f32.xlu0 %v10113_v58  ;;  %v4808_v33 = vpop.permute.xlu1 %4807  ;;  %v10117_v12 = vpop.eup %7762 }
 0xc1e   :  { %7774 = vpow2.f32 %v4524_v20  ;;  %7061 = vmatprep.subr.bf16.mxu1 %v4808_v33 }
 0xc1f   :  { %v10119_v45 = vpop.eup %7764  ;;  %7062 = vmatpush3.bf16.msra.mxu1 %v4808_v33 }
 0xc20   :  { %4578 = vadd.xlane.f32.xlu1 %v10117_v12  ;;  %7063 = vmatprep.subr.bf16.mxu1 %v4806_v51 }
 0xc21   :  { %4584 = vadd.xlane.f32.xlu0 %v10119_v45  ;;  %v4804_v14 = vpop.permute.xlu1 %4803 }
 0xc23   :  { %v10123_v62 = vpop.eup %7766  ;;  %7064 = vmatpush3.bf16.msra.mxu1 %v4806_v51  ;;  %v7283_v51 = vld [vmem:[#allocation8] sm:$0xff]  }
 0xc24   :  { %v10125_v9 = vpop.eup %7768  ;;  %4580 = vadd.xlane.f32.xlu1 %v10123_v62  ;;  %7065 = vmatprep.subr.bf16.mxu1 %v4804_v14 }
 0xc25   :  { %4582 = vadd.xlane.f32.xlu0 %v10125_v9  ;;  %v10129_v29 = vpop.eup %7770  ;;  %v4800_v48 = vpop.permute.xlu1 %4799 }
 0xc27   :  { %v10131_v61 = vpop.eup %7772  ;;  %7066 = vmatpush3.bf16.msra.mxu1 %v4804_v14 }
 0xc28   :  { %4586 = vadd.xlane.f32.xlu1 %v10129_v29 }
 0xc29   :  { %4592 = vadd.xlane.f32.xlu0 %v10131_v61 }
 0xc2b   :  { %v10135_v16 = vpop.eup %7774 }
 0xc2c   :  { %4588 = vadd.xlane.f32.xlu1 %v10135_v16 }
 0xc47   :  { %v4435_v57 = vpop.xlane.xlu0 %4434 }
 0xc48   :  { %v4467_v38 = vsub.f32 %v10059_v46, %v4435_v57  ;;  %v10846_v46 = vld [vmem:[#allocation60_spill] sm:$0xff] }
 0xc49   :  { %v6002_v30 = vpack.c.bf16 %v10846_v46, %v10846_v46 }
 0xc4a   :  { %v4530_v39 = vmul.f32 1.442695, %v4467_v38 }
 0xc4b   :  { %v4431_v32 = vpop.xlane.xlu0 %4430 }
 0xc4c   :  { %7776 = vpow2.f32 %v4530_v39  ;;  %v4465_v19 = vsub.f32 %v10065_v47, %v4431_v32  ;;  %v7276_v47 = vld [vmem:[#allocation8 + $0x38] sm:$0xff]   ;;  %v6006_v39 = vpack.c.bf16 %v10851_v4, %v10851_v4 }
 0xc4d   :  { %7089 = vmatprep.subr.bf16.mxu0 %v7276_v47 }
 0xc4e   :  { %v4526_v25 = vmul.f32 1.442695, %v4465_v19  ;;  %7090 = vmatpush3.bf16.msra.mxu0 %v7276_v47  ;;  %v10852_v19 = vld [vmem:[#allocation19_spill] sm:$0xff] }
 0xc4f   :  { %v4802_v15 = vpop.permute.xlu0 %4801  ;;  %7091 = vmatprep.subr.bf16.mxu0 %v7277_v54 }
 0xc50   :  { %7778 = vpow2.f32 %v4526_v25  ;;  %7067 = vmatprep.subr.bf16.mxu1 %v4802_v15  ;;  %v6008_v25 = vpack.c.bf16 %v10852_v19, %v10852_v19 }
 0xc51   :  { %7068 = vmatpush3.bf16.msra.mxu1 %v4802_v15  ;;  %v10853_v15 = vld [vmem:[#allocation32_spill] sm:$0xff] }
 0xc52   :  { %7069 = vmatprep.subr.bf16.mxu1 %v4800_v48  ;;  %7092 = vmatpush3.bf16.msra.mxu0 %v7277_v54  ;;  %v6040_v54 = vpack.c.bf16 %v9795_v41, %v9795_v41 }
 0xc53   :  { %7093 = vmatprep.subr.bf16.mxu0 %v7278_v53 }
 0xc55   :  { %7070 = vmatpush3.bf16.msra.mxu1 %v4800_v48  ;;  %v6007_v48 = vpack.c.bf16 %v10853_v15, %v10853_v15 }
 0xc56   :  { %7094 = vmatpush3.bf16.msra.mxu0 %v7278_v53 }
 0xc57   :  { %7095 = vmatprep.subr.bf16.mxu0 %v7279_v6 }
 0xc59   :  { %v10140_v11 = vpop.eup %7776 }
 0xc5a   :  { %4594 = vadd.xlane.f32.xlu1 %v10140_v11  ;;  %7096 = vmatpush3.bf16.msra.mxu0 %v7279_v6  ;;  %v10855_v6 = vld [vmem:[#allocation62_spill] sm:$0xff] }
 0xc5b   :  { %7097 = vmatprep.subr.bf16.mxu0 %v7280_v60 }
 0xc5d   :  { %v10143_v23 = vpop.eup %7778 }
 0xc5e   :  { %4590 = vadd.xlane.f32.xlu0 %v10143_v23  ;;  %7098 = vmatpush3.bf16.msra.mxu0 %v7280_v60 }
 0xc5f   :  { %7099 = vmatprep.subr.bf16.mxu0 %v7281_v40 }
 0xc62   :  { %7100 = vmatpush3.bf16.msra.mxu0 %v7281_v40 }
 0xc63   :  { %7101 = vmatprep.subr.bf16.mxu0 %v7282_v36 }
 0xc66   :  { %7102 = vmatpush3.bf16.msra.mxu0 %v7282_v36 }
 0xc67   :  { %7103 = vmatprep.subr.bf16.mxu0 %v7283_v51 }
 0xc6a   :  { %7104 = vmatpush3.bf16.msra.mxu0 %v7283_v51 }
 0xc6b   :  { %2764 = vrot.lane.b32.xlu1 %v6002_v30, %s7907_s11  ;;  %v10854_v30 = vld [vmem:[#allocation23_spill] sm:$0xff] }
 0xc6c   :  { %v6009_v47 = vpack.c.bf16 %v10854_v30, %v10854_v30  ;;  %v10861_v30 = vld [vmem:[#allocation68_spill] sm:$0xff] }
 0xc6f   :  { %2766 = vrot.lane.b32.xlu1 %v6003_v1, %s7907_s11 }
 0xc73   :  { %2770 = vrot.lane.b32.xlu1 %v6005_v27, %s7907_s11 }
 0xc74   :  { %4797 = vrot.lane.b32.xlu0 %v10849_v55, %s7907_s11 }
 0xc77   :  { %3891 = vrot.lane.b32.xlu1 %v6035_v5, %s7902_s28 }
 0xc78   :  { %2768 = vrot.lane.b32.xlu0 %v6004_v13, %s7907_s11 }
 0xc7b   :  { %3895 = vrot.lane.b32.xlu1 %v6037_v7, %s7902_s28  ;;  %v6010_v7 = vpack.c.bf16 %v10855_v6, %v10855_v6 }
 0xc7c   :  { %3889 = vrot.lane.b32.xlu0 %v6034_v50, %s7902_s28  ;;  %v10856_v50 = vld [vmem:[#allocation29_spill] sm:$0xff] }
 0xc7d   :  { %v6012_v60 = vpack.c.bf16 %v10856_v50, %v10856_v50 }
 0xc80   :  { %3893 = vrot.lane.b32.xlu0 %v6036_v17, %s7902_s28  ;;  %v10857_v17 = vld [vmem:[#allocation64_spill] sm:$0xff] }
 0xc81   :  { %v6011_v40 = vpack.c.bf16 %v10857_v17, %v10857_v17 }
 0xc82   :  { %v7043_v37 = vpop.f32.mrf.mxu0 }
 0xc83   :  { %v6068_v57 = vpack.c.bf16 %v7043_v37, %v7043_v37 }
 0xc84   :  { %v4734_v20 = vpop.f32.mrf.mxu0 }
 0xc85   :  { %v6066_v44 = vpack.c.bf16 %v4734_v20, %v4734_v20 }
 0xc86   :  { %v7044_v33 = vpop.f32.mrf.mxu0 }
 0xc87   :  { %5014 = vrot.lane.b32.xlu0 %v6066_v44, %s7906_s2  ;;  %v6069_v32 = vpack.c.bf16 %v7044_v33, %v7044_v33  ;;  %v10858_v33 = vld [vmem:[#allocation63_spill] sm:$0xff] }
 0xc88   :  { %v4737_v14 = vpop.f32.mrf.mxu0  ;;  %v6013_v51 = vpack.c.bf16 %v10858_v33, %v10858_v33 }
 0xc89   :  { %v6067_v38 = vpack.c.bf16 %v4737_v14, %v4737_v14  ;;  %v6042_v14 = vpack.c.bf16 %v9814_v59, %v9814_v59  ;;  %v6045_v59 = vpack.c.bf16 %v9818_v0, %v9818_v0  ;;  %v10860_v0 = vld [vmem:[#allocation65_spill] sm:$0xff] }
 0xc8a   :  { %v7047_v46 = vpop.f32.mrf.mxu0 }
 0xc8b   :  { %5018 = vrot.lane.b32.xlu0 %v6068_v57, %s7906_s2  ;;  %5016 = vrot.lane.b32.xlu1 %v6067_v38, %s7906_s2  ;;  %v6072_v41 = vpack.c.bf16 %v7047_v46, %v7047_v46  ;;  %v6016_v46 = vpack.c.bf16 %v10860_v0, %v10860_v0 }
 0xc8c   :  { %v4750_v1 = vpop.f32.mrf.mxu0 }
 0xc8d   :  { %v6070_v55 = vpack.c.bf16 %v4750_v1, %v4750_v1  ;;  %v10862_v1 = vld [vmem:[#allocation67_spill] sm:$0xff] }
 0xc8e   :  { %v7048_v53 = vpop.f32.mrf.mxu0 }
 0xc8f   :  { %2772 = vrot.lane.b32.xlu0 %v6006_v39, %s7907_s11  ;;  %5020 = vrot.lane.b32.xlu1 %v6069_v32, %s7906_s2  ;;  %v6073_v31 = vpack.c.bf16 %v7048_v53, %v7048_v53  ;;  %v6044_v39 = vpack.c.bf16 %v9811_v52, %v9811_v52 }
 0xc90   :  { %v4753_v56 = vpop.f32.mrf.mxu0 }
 0xc91   :  { %v6071_v2 = vpack.c.bf16 %v4753_v56, %v4753_v56  ;;  %v6049_v56 = vpack.c.bf16 %v9836_v43, %v9836_v43  ;;  %v10863_v43 = vld [vmem:[#allocation35_spill] sm:$0xff] }
 0xc92   :  { %v7051_v37 = vpop.f32.mrf.mxu0  ;;  %v6018_v17 = vpack.c.bf16 %v10863_v43, %v10863_v43 }
 0xc93   :  { %2776 = vrot.lane.b32.xlu0 %v6008_v25, %s7907_s11  ;;  %2774 = vrot.lane.b32.xlu1 %v6007_v48, %s7907_s11  ;;  %v6076_v25 = vpack.c.bf16 %v7051_v37, %v7051_v37 }
 0xc94   :  { %v4766_v38 = vpop.f32.mrf.mxu0 }
 0xc96   :  { %v7052_v32 = vpop.f32.mrf.mxu0 }
 0xc97   :  { %3897 = vrot.lane.b32.xlu0 %v6038_v26, %s7902_s28  ;;  %2778 = vrot.lane.b32.xlu1 %v6009_v47, %s7907_s11  ;;  %v6077_v48 = vpack.c.bf16 %v7052_v32, %v7052_v32  ;;  %v6015_v47 = vpack.c.bf16 %v10861_v30, %v10861_v30 }
 0xc98   :  { %v4769_v19 = vpop.f32.mrf.mxu0 }
 0xc99   :  { %v10195_v27 = vpop.xlane.xlu0 %4568  ;;  %v6075_v52 = vpack.c.bf16 %v4769_v19, %v4769_v19 }
 0xc9b   :  { %3901 = vrot.lane.b32.xlu0 %v6040_v54, %s7902_s28  ;;  %3899 = vrot.lane.b32.xlu1 %v6039_v10, %s7902_s28  ;;  %v6017_v54 = vpack.c.bf16 %v10862_v1, %v10862_v1  ;;  %v6046_v10 = vpack.c.bf16 %v9833_v3, %v9833_v3 }
 0xc9d   :  { %v4565_v5 = vpop.xlane.xlu1 %4564 }
 0xc9e   :  { %v4567_v13 = vpop.xlane.xlu0 %4566  ;;  %7780 = vrcp.f32 %v4565_v5 }
 0xc9f   :  { %7782 = vrcp.f32 %v4567_v13  ;;  %5022 = vrot.lane.b32.xlu0 %v6070_v55, %s7906_s2  ;;  %3903 = vrot.lane.b32.xlu1 %v6041_v21, %s7902_s28  ;;  %v6048_v21 = vpack.c.bf16 %v9827_v22, %v9827_v22  ;;  %v6047_v55 = vpack.c.bf16 %v9841_v34, %v9841_v34 }
 0xca1   :  { %v4571_v26 = vpop.xlane.xlu1 %4570 }
 0xca2   :  { %v4577_v5 = vpop.xlane.xlu0 %4576  ;;  %7784 = vrcp.f32 %v4571_v26 }
 0xca3   :  { %5026 = vrot.lane.b32.xlu0 %v6072_v41, %s7906_s2  ;;  %5024 = vrot.lane.b32.xlu1 %v6071_v2, %s7906_s2 }
 0xca5   :  { %v4573_v53 = vpop.xlane.xlu1 %4572 }
 0xca6   :  { %v4575_v2 = vpop.xlane.xlu0 %4574  ;;  %7786 = vrcp.f32 %v4573_v53 }
 0xca7   :  { %2780 = vrot.lane.b32.xlu0 %v6010_v7, %s7907_s11  ;;  %5028 = vrot.lane.b32.xlu1 %v6073_v31, %s7906_s2  ;;  %7788 = vrcp.f32 %v4575_v2 }
 0xca8   :  { %7790 = vrcp.f32 %v10195_v27 }
 0xca9   :  { %v4579_v3 = vpop.xlane.xlu1 %4578 }
 0xcaa   :  { %7792 = vrcp.f32 %v4579_v3 }
 0xcab   :  { %v7781_v36 = vpop.eup %7780  ;;  %2784 = vrot.lane.b32.xlu0 %v6012_v60, %s7907_s11  ;;  %2782 = vrot.lane.b32.xlu1 %v6011_v40, %s7907_s11  ;;  %v4585_v60 = vpop.xlane.xlu0 %4584 }
 0xcac   :  { %v7783_v20 = vpop.eup %7782  ;;  %v4644_v44 = vmul.f32 %v7781_v36, %v10096_v24  ;;  %v6043_v24 = vpack.c.bf16 %v9823_v18, %v9823_v18  ;;  %v10859_v18 = vld [vmem:[#allocation66_spill] sm:$0xff]  ;;  %v10864_v36 = vld [vmem:[#allocation21_spill] sm:$0xff] }
 0xcad   :  { %v4645_v57 = vmul.f32 %v7783_v20, %v10099_v28  ;;  %v6074_v28 = vpack.c.bf16 %v4766_v38, %v4766_v38  ;;  %v6014_v15 = vpack.c.bf16 %v10859_v18, %v10859_v18  ;;  %v4581_v22 = vpop.xlane.xlu1 %4580  ;;  %v6020_v20 = vpack.c.bf16 %v10864_v36, %v10864_v36  ;;  %v10876_v36 = vld [vmem:[#allocation46_spill] sm:$0xff] }
 0xcae   :  { %7794 = vrcp.f32 %v4581_v22  ;;  %v10874_v22 = vld [vmem:[#allocation36_spill] sm:$0xff] }
 0xcaf   :  { %3905 = vrot.lane.b32.xlu0 %v6042_v14, %s7902_s28  ;;  %2786 = vrot.lane.b32.xlu1 %v6013_v51, %s7907_s11  ;;  %v4668_v4 = vpack.c.bf16 %v4645_v57, %v4644_v44  ;;  %v10865_v44 = vld [vmem:[#allocation31_spill] sm:$0xff]  ;;  %v4583_v51 = vpop.xlane.xlu0 %4582  ;;  %v10866_v57 = vld [vmem:[#allocation18_spill] sm:$0xff]  ;;  %v7785_v19 = vpop.eup %7784 }
 0xcb0   :  { %v6019_v33 = vpack.c.bf16 %v10865_v44, %v10865_v44  ;;  %v6021_v38 = vpack.c.bf16 %v10866_v57, %v10866_v57  ;;  %7796 = vrcp.f32 %v4583_v51  ;;  %v10877_v57 = vld [vmem:[#allocation26_spill] sm:$0xff] }
 0xcb1   :  { %7073 = vmatprep.mubr.bf16.mxu1 %v4668_v4  ;;  %v4587_v40 = vpop.xlane.xlu1 %4586  ;;  %v6050_v4 = vpack.c.bf16 %v9945_v8, %v9945_v8  ;;  %7798 = vrcp.f32 %v4577_v5 }
 0xcb2   :  { %7800 = vrcp.f32 %v4587_v40 }
 0xcb3   :  { %3909 = vrot.lane.b32.xlu0 %v6044_v39, %s7902_s28  ;;  %3907 = vrot.lane.b32.xlu1 %v6043_v24, %s7902_s28  ;;  %v4593_v27 = vpop.xlane.xlu0 %4592  ;;  %v10867_v24 = vld [vmem:[#allocation45_spill] sm:$0xff] }
 0xcb4   :  { %v6052_v32 = vpack.c.bf16 %v10867_v24, %v10867_v24 }
 0xcb5   :  { %v4589_v14 = vpop.xlane.xlu1 %4588 }
 0xcb7   :  { %5030 = vrot.lane.b32.xlu0 %v6074_v28, %s7906_s2  ;;  %3911 = vrot.lane.b32.xlu1 %v6045_v59, %s7902_s28  ;;  %v10868_v59 = vld [vmem:[#allocation34_spill] sm:$0xff] }
 0xcb8   :  { %v6051_v28 = vpack.c.bf16 %v10868_v59, %v10868_v59 }
 0xcbb   :  { %5034 = vrot.lane.b32.xlu0 %v6076_v25, %s7906_s2  ;;  %5032 = vrot.lane.b32.xlu1 %v6075_v52, %s7906_s2  ;;  %v7787_v25 = vpop.eup %7786 }
 0xcbc   :  { %v7789_v18 = vpop.eup %7788 }
 0xcbf   :  { %2788 = vrot.lane.b32.xlu0 %v6014_v15, %s7907_s11  ;;  %5036 = vrot.lane.b32.xlu1 %v6077_v48, %s7906_s2  ;;  %v7791_v15 = vpop.eup %7790  ;;  %v10869_v48 = vld [vmem:[#allocation15_spill] sm:$0xff] }
 0xcc0   :  { %v6022_v0 = vpack.c.bf16 %v10869_v48, %v10869_v48  ;;  %v4646_v53 = vmul.f32 %v7791_v15, %v10091_v35 }
 0xcc3   :  { %2792 = vrot.lane.b32.xlu0 %v6016_v46, %s7907_s11  ;;  %2790 = vrot.lane.b32.xlu1 %v6015_v47, %s7907_s11  ;;  %v10870_v46 = vld [vmem:[#allocation51_spill] sm:$0xff]  ;;  %v4647_v47 = vmul.f32 %v7785_v19, %v10103_v42  ;;  %v10879_v19 = vld [vmem:[#allocation25_spill] sm:$0xff] }
 0xcc4   :  { %v6053_v30 = vpack.c.bf16 %v10870_v46, %v10870_v46  ;;  %v10881_v46 = vld [vmem:[#allocation22_spill] sm:$0xff] }
 0xcc5   :  { %v4669_v3 = vpack.c.bf16 %v4647_v47, %v4646_v53  ;;  %v10882_v47 = vld [vmem:[#allocation20_spill] sm:$0xff]  ;;  %v10883_v53 = vld [vmem:[#allocation14_spill] sm:$0xff] }
 0xcc7   :  { %3913 = vrot.lane.b32.xlu0 %v6046_v10, %s7902_s28  ;;  %2794 = vrot.lane.b32.xlu1 %v6017_v54, %s7907_s11  ;;  %v4648_v54 = vmul.f32 %v7787_v25, %v10111_v49  ;;  %v4649_v10 = vmul.f32 %v7789_v18, %v10113_v58  ;;  %v6028_v25 = vpack.c.bf16 %v10879_v19, %v10879_v19 }
 0xcc9   :  { %v4670_v58 = vpack.c.bf16 %v4649_v10, %v4648_v54 }
 0xccb   :  { %3917 = vrot.lane.b32.xlu0 %v6048_v21, %s7902_s28  ;;  %3915 = vrot.lane.b32.xlu1 %v6047_v55, %s7902_s28  ;;  %v10871_v21 = vld [vmem:[#allocation33_spill] sm:$0xff]  ;;  %v10872_v55 = vld [vmem:[#allocation28_spill] sm:$0xff] }
 0xccc   :  { %v6024_v42 = vpack.c.bf16 %v10871_v21, %v10871_v21  ;;  %v6023_v5 = vpack.c.bf16 %v10872_v55, %v10872_v55  ;;  %v6060_v21 = vpack.c.bf16 %v10883_v53, %v10883_v53 }
 0xcce   :  { %v7055_v13 = vpop.f32.mrf.mxu0 }
 0xccf   :  { %3919 = vrot.lane.b32.xlu1 %v6049_v56, %s7902_s28  ;;  %v6080_v31 = vpack.c.bf16 %v7055_v13, %v7055_v13  ;;  %v7793_v56 = vpop.eup %7792 }
 0xcd0   :  { %v4782_v41 = vpop.f32.mrf.mxu0  ;;  %v7795_v13 = vpop.eup %7794 }
 0xcd1   :  { %v6078_v6 = vpack.c.bf16 %v4782_v41, %v4782_v41  ;;  %v7797_v41 = vpop.eup %7796  ;;  %v4652_v43 = vmul.f32 %v7795_v13, %v10123_v62 }
 0xcd2   :  { %v7056_v7 = vpop.f32.mrf.mxu0  ;;  %v7799_v2 = vpop.eup %7798 }
 0xcd3   :  { %5038 = vrot.lane.b32.xlu0 %v6078_v6, %s7906_s2  ;;  %v6081_v37 = vpack.c.bf16 %v7056_v7, %v7056_v7  ;;  %v10873_v6 = vld [vmem:[#allocation30_spill] sm:$0xff]  ;;  %v4650_v40 = vmul.f32 %v7799_v2, %v10106_v63 }
 0xcd4   :  { %v4785_v34 = vpop.f32.mrf.mxu0  ;;  %v6025_v7 = vpack.c.bf16 %v10873_v6, %v10873_v6  ;;  %v10887_v6 = vld [vmem:[#allocation38_spill] sm:$0xff] }
 0xcd5   :  { %v6079_v50 = vpack.c.bf16 %v4785_v34, %v4785_v34  ;;  %v6054_v34 = vpack.c.bf16 %v10874_v22, %v10874_v22  ;;  %v10888_v22 = vld [vmem:[#allocation69_spill] sm:$0xff] }
 0xcd7   :  { %5042 = vrot.lane.b32.xlu0 %v6080_v31, %s7906_s2  ;;  %5040 = vrot.lane.b32.xlu1 %v6079_v50, %s7906_s2  ;;  %v4651_v31 = vmul.f32 %v7793_v56, %v10117_v12 }
 0xcd9   :  { %v4671_v44 = vpack.c.bf16 %v4651_v31, %v4650_v40 }
 0xcdb   :  { %2796 = vrot.lane.b32.xlu0 %v6018_v17, %s7907_s11  ;;  %5044 = vrot.lane.b32.xlu1 %v6081_v37, %s7906_s2  ;;  %v4653_v17 = vmul.f32 %v7797_v41, %v10125_v9  ;;  %v10875_v37 = vld [vmem:[#allocation16_spill] sm:$0xff] }
 0xcdc   :  { %v6056_v12 = vpack.c.bf16 %v10875_v37, %v10875_v37 }
 0xcdd   :  { %v4672_v51 = vpack.c.bf16 %v4653_v17, %v4652_v43  ;;  %v10890_v17 = vld [vmem:[#allocation73_spill] sm:$0xff] }
 0xcde   :  { %v6062_v40 = vpack.c.bf16 %v10890_v17, %v10890_v17 }
 0xcdf   :  { %2800 = vrot.lane.b32.xlu0 %v6020_v20, %s7907_s11  ;;  %2798 = vrot.lane.b32.xlu1 %v6019_v33, %s7907_s11  ;;  %v6055_v20 = vpack.c.bf16 %v10876_v36, %v10876_v36  ;;  %v7801_v33 = vpop.eup %7800  ;;  %v10891_v36 = vld [vmem:[#allocation75_spill] sm:$0xff] }
 0xce0   :  { %v4655_v24 = vmul.f32 %v7801_v33, %v10129_v29 }
 0xce3   :  { %3921 = vrot.lane.b32.xlu0 %v6050_v4, %s7902_s28  ;;  %2802 = vrot.lane.b32.xlu1 %v6021_v38, %s7907_s11  ;;  %v4595_v39 = vpop.xlane.xlu1 %4594  ;;  %v6026_v38 = vpack.c.bf16 %v10877_v57, %v10877_v57  ;;  %v10878_v4 = vld [vmem:[#allocation24_spill] sm:$0xff] }
 0xce7   :  { %3925 = vrot.lane.b32.xlu0 %v6052_v32, %s7902_s28  ;;  %v4591_v8 = vpop.xlane.xlu0 %4590  ;;  %3923 = vrot.lane.b32.xlu1 %v6051_v28, %s7902_s28  ;;  %v2765_v52 = vpop.permute.xlu1 %2764 }
 0xce8   :  { %2861 = vst.msk [vmem:[#allocation2] sm:$0xf] %vm2860_vm2, %v2765_v52  ;;  %7802 = vrcp.f32 %v4591_v8  ;;  %v10880_v8 = vld [vmem:[#allocation17_spill] sm:$0xff] }
 0xce9   :  { %7804 = vrcp.f32 %v4585_v60  ;;  %v6027_v52 = vpack.c.bf16 %v10880_v8, %v10880_v8 }
 0xcea   :  { %7806 = vrcp.f32 %v4589_v14 }
 0xceb   :  { %2804 = vrot.lane.b32.xlu0 %v6022_v0, %s7907_s11  ;;  %v4798_v26 = vpop.permute.xlu0 %4797  ;;  %3927 = vrot.lane.b32.xlu1 %v6053_v30, %s7902_s28  ;;  %v2767_v1 = vpop.permute.xlu1 %2766  ;;  %7808 = vrcp.f32 %v4595_v39  ;;  %v6029_v30 = vpack.c.bf16 %v10881_v46, %v10881_v46 }
 0xcec   :  { %2862 = vst.msk [vmem:[#allocation2 + $0x4] sm:$0xf] %vm2860_vm2, %v2767_v1  ;;  %7071 = vmatprep.subr.bf16.mxu1 %v4798_v26  ;;  %7810 = vrcp.f32 %v4593_v27  ;;  %v6057_v27 = vpack.c.bf16 %v10878_v4, %v10878_v4 }
 0xced   :  { %7072 = vmatpush3.bf16.msra.mxu1 %v4798_v26 }
 0xcef   :  { %2808 = vrot.lane.b32.xlu0 %v6024_v42, %s7907_s11  ;;  %v2769_v49 = vpop.permute.xlu0 %2768  ;;  %2806 = vrot.lane.b32.xlu1 %v6023_v5, %s7907_s11  ;;  %v2771_v35 = vpop.permute.xlu1 %2770  ;;  %v10884_v42 = vld [vmem:[#allocation71_spill] sm:$0xff] }
 0xcf0   :  { %2863 = vst.msk [vmem:[#allocation2 + $0x8] sm:$0xf] %vm2860_vm2, %v2769_v49  ;;  %2864 = vst.msk [vmem:[#allocation2 + $0xc] sm:$0xf] %vm2860_vm2, %v2771_v35  ;;  %7074 = vmatmul.mubr.bf16.vlgmr.msra.gmra.mxu1 %v4669_v3  ;;  %v6059_v55 = vpack.c.bf16 %v10884_v42, %v10884_v42  ;;  %v10886_v49 = vld [vmem:[#allocation70_spill] sm:$0xff] }
 0xcf1   :  { %7077 = vmatprep.mubr.bf16.mxu1 %v4670_v58  ;;  %v6061_v35 = vpack.c.bf16 %v10886_v49, %v10886_v49 }
 0xcf3   :  { %3929 = vrot.lane.b32.xlu0 %v6054_v34, %s7902_s28  ;;  %v3890_v50 = vpop.permute.xlu0 %3889  ;;  %2810 = vrot.lane.b32.xlu1 %v6025_v7, %s7907_s11  ;;  %v3892_v60 = vpop.permute.xlu1 %3891  ;;  %v6032_v7 = vpack.c.bf16 %v10887_v6, %v10887_v6  ;;  %v6031_v34 = vpack.c.bf16 %v10888_v22, %v10888_v22 }
 0xcf4   :  { %3986 = vst.msk [vmem:[#allocation2] sm:$0xf] %vm3985_vm3, %v3890_v50  ;;  %3987 = vst.msk [vmem:[#allocation2 + $0x4] sm:$0xf] %vm3985_vm3, %v3892_v60  ;;  %v10889_v60 = vld [vmem:[#allocation37_spill] sm:$0xff] }
 0xcf5   :  { %v7803_v14 = vpop.eup %7802  ;;  %v6033_v43 = vpack.c.bf16 %v10889_v60, %v10889_v60 }
 0xcf6   :  { %v7805_v63 = vpop.eup %7804  ;;  %v4657_v59 = vmul.f32 %v7803_v14, %v10143_v23 }
 0xcf7   :  { %3933 = vrot.lane.b32.xlu0 %v6056_v12, %s7902_s28  ;;  %v3894_v62 = vpop.permute.xlu0 %3893  ;;  %3931 = vrot.lane.b32.xlu1 %v6055_v20, %s7902_s28  ;;  %v3896_v9 = vpop.permute.xlu1 %3895  ;;  %v4654_v28 = vmul.f32 %v7805_v63, %v10119_v45  ;;  %v6063_v20 = vpack.c.bf16 %v10891_v36, %v10891_v36 }
 0xcf8   :  { %3988 = vst.msk [vmem:[#allocation2 + $0x8] sm:$0xf] %vm3985_vm3, %v3894_v62  ;;  %3989 = vst.msk [vmem:[#allocation2 + $0xc] sm:$0xf] %vm3985_vm3, %v3896_v9  ;;  %7078 = vmatmul.mubr.bf16.gmra.mxu1 %v4671_v44  ;;  %v7807_v39 = vpop.eup %7806 }
 0xcf9   :  { %7081 = vmatprep.mubr.bf16.mxu1 %v4672_v51  ;;  %v4656_v29 = vmul.f32 %v7807_v39, %v10135_v16  ;;  %v4673_v15 = vpack.c.bf16 %v4655_v24, %v4654_v28  ;;  %v7809_v48 = vpop.eup %7808  ;;  %v6058_v16 = vpack.c.bf16 %v10882_v47, %v10882_v47 }
 0xcfa   :  { %v7811_v45 = vpop.eup %7810  ;;  %v4659_v1 = vmul.f32 %v7809_v48, %v10140_v11 }
 0xcfb   :  { %2812 = vrot.lane.b32.xlu0 %v6026_v38, %s7907_s11  ;;  %v5015_v32 = vpop.permute.xlu0 %5014  ;;  %3935 = vrot.lane.b32.xlu1 %v6057_v27, %s7902_s28  ;;  %v4674_v0 = vpack.c.bf16 %v4657_v59, %v4656_v29  ;;  %v4658_v10 = vmul.f32 %v7811_v45, %v10131_v61  ;;  %v10885_v61 = vld [vmem:[#allocation13_spill] sm:$0xff] }
 0xcfc   :  { %5111 = vst.msk [vmem:[#allocation2] sm:$0xf] %vm5110_vm4, %v5015_v32  ;;  %v6030_v13 = vpack.c.bf16 %v10885_v61, %v10885_v61 }
 0xcfd   :  { %v5017_v18 = vpop.permute.xlu1 %5016  ;;  %v4675_v11 = vpack.c.bf16 %v4659_v1, %v4658_v10 }
 0xcfe   :  { %5112 = vst.msk [vmem:[#allocation2 + $0x4] sm:$0xf] %vm5110_vm4, %v5017_v18 }
 0xcff   :  { %2816 = vrot.lane.b32.xlu0 %v6028_v25, %s7907_s11  ;;  %v5019_v23 = vpop.permute.xlu0 %5018  ;;  %2814 = vrot.lane.b32.xlu1 %v6027_v52, %s7907_s11 }
 0xd00   :  { %5113 = vst.msk [vmem:[#allocation2 + $0x8] sm:$0xf] %vm5110_vm4, %v5019_v23  ;;  %7082 = vmatmul.mubr.bf16.gmra.mxu1 %v4673_v15 }
 0xd01   :  { %7085 = vmatprep.mubr.bf16.mxu1 %v4674_v0  ;;  %v5021_v26 = vpop.permute.xlu1 %5020 }
 0xd02   :  { %5114 = vst.msk [vmem:[#allocation2 + $0xc] sm:$0xf] %vm5110_vm4, %v5021_v26 }
 0xd03   :  { %3937 = vrot.lane.b32.xlu0 %v6058_v16, %s7902_s28  ;;  %v2773_v54 = vpop.permute.xlu0 %2772  ;;  %2818 = vrot.lane.b32.xlu1 %v6029_v30, %s7907_s11 }
 0xd04   :  { %2865 = vst.msk [vmem:[#allocation2 + $0x10] sm:$0xf] %vm2860_vm2, %v2773_v54 }
 0xd05   :  { %v2775_v5 = vpop.permute.xlu1 %2774  ;;  %v7284_v56 = vld [vmem:[#allocation2] sm:$0xff]  }
 0xd06   :  { %2866 = vst.msk [vmem:[#allocation2 + $0x14] sm:$0xf] %vm2860_vm2, %v2775_v5  ;;  %7105 = vmatprep.mubr.bf16.mxu0 %v7284_v56 }
 0xd07   :  { %3941 = vrot.lane.b32.xlu0 %v6060_v21, %s7902_s28  ;;  %v2777_v3 = vpop.permute.xlu0 %2776  ;;  %3939 = vrot.lane.b32.xlu1 %v6059_v55, %s7902_s28 }
 0xd08   :  { %2867 = vst.msk [vmem:[#allocation2 + $0x18] sm:$0xf] %vm2860_vm2, %v2777_v3  ;;  %7086 = vmatmul.mubr.bf16.gmra.mxu1 %v4675_v11 }
 0xd09   :  { %v2779_v58 = vpop.permute.xlu1 %2778  ;;  %v7285_v41 = vld [vmem:[#allocation2 + $0x8] sm:$0xff]  }
 0xd0a   :  { %2868 = vst.msk [vmem:[#allocation2 + $0x1c] sm:$0xf] %vm2860_vm2, %v2779_v58  ;;  %7106 = vmatmul.mubr.bf16.vlgmr.msra.gmra.mxu0 %v7285_v41 }
 0xd0b   :  { %2820 = vrot.lane.b32.xlu0 %v6030_v13, %s7907_s11  ;;  %v3898_v2 = vpop.permute.xlu0 %3897  ;;  %3943 = vrot.lane.b32.xlu1 %v6061_v35, %s7902_s28 }
 0xd0c   :  { %3990 = vst.msk [vmem:[#allocation2 + $0x10] sm:$0xf] %vm3985_vm3, %v3898_v2 }
 0xd0d   :  { %v3900_v31 = vpop.permute.xlu1 %3899 }
 0xd0e   :  { %3991 = vst.msk [vmem:[#allocation2 + $0x14] sm:$0xf] %vm3985_vm3, %v3900_v31 }
 0xd0f   :  { %2824 = vrot.lane.b32.xlu0 %v6032_v7, %s7907_s11  ;;  %v3902_v50 = vpop.permute.xlu0 %3901  ;;  %2822 = vrot.lane.b32.xlu1 %v6031_v34, %s7907_s11 }
 0xd10   :  { %3992 = vst.msk [vmem:[#allocation2 + $0x18] sm:$0xf] %vm3985_vm3, %v3902_v50 }
 0xd11   :  { %v3904_v37 = vpop.permute.xlu1 %3903 }
 0xd12   :  { %3993 = vst.msk [vmem:[#allocation2 + $0x1c] sm:$0xf] %vm3985_vm3, %v3904_v37 }
 0xd13   :  { %3945 = vrot.lane.b32.xlu0 %v6062_v40, %s7902_s28  ;;  %v5023_v12 = vpop.permute.xlu0 %5022  ;;  %2826 = vrot.lane.b32.xlu1 %v6033_v43, %s7907_s11 }
 0xd14   :  { %5115 = vst.msk [vmem:[#allocation2 + $0x10] sm:$0xf] %vm5110_vm4, %v5023_v12 }
 0xd15   :  { %v5025_v44 = vpop.permute.xlu1 %5024 }
 0xd16   :  { %5116 = vst.msk [vmem:[#allocation2 + $0x14] sm:$0xf] %vm5110_vm4, %v5025_v44 }
 0xd17   :  { %v5027_v33 = vpop.permute.xlu0 %5026  ;;  %3947 = vrot.lane.b32.xlu1 %v6063_v20, %s7902_s28 }
 0xd18   :  { %5117 = vst.msk [vmem:[#allocation2 + $0x18] sm:$0xf] %vm5110_vm4, %v5027_v33 }
 0xd19   :  { %v5029_v62 = vpop.permute.xlu1 %5028 }
 0xd1a   :  { %5118 = vst.msk [vmem:[#allocation2 + $0x1c] sm:$0xf] %vm5110_vm4, %v5029_v62 }
 0xd1b   :  { %v2781_v9 = vpop.permute.xlu0 %2780 }
 0xd1c   :  { %2869 = vst.msk [vmem:[#allocation2 + $0x20] sm:$0xf] %vm2860_vm2, %v2781_v9 }
 0xd1d   :  { %v2783_v51 = vpop.permute.xlu1 %2782  ;;  %v7286_v14 = vld [vmem:[#allocation2 + $0x10] sm:$0xff]  }
 0xd1e   :  { %2870 = vst.msk [vmem:[#allocation2 + $0x24] sm:$0xf] %vm2860_vm2, %v2783_v51  ;;  %7109 = vmatprep.mubr.bf16.mxu0 %v7286_v14 }
 0xd1f   :  { %v2785_v63 = vpop.permute.xlu0 %2784 }
 0xd20   :  { %2871 = vst.msk [vmem:[#allocation2 + $0x28] sm:$0xf] %vm2860_vm2, %v2785_v63 }
 0xd21   :  { %v2787_v57 = vpop.permute.xlu1 %2786  ;;  %v7287_v38 = vld [vmem:[#allocation2 + $0x18] sm:$0xff]  }
 0xd22   :  { %2872 = vst.msk [vmem:[#allocation2 + $0x2c] sm:$0xf] %vm2860_vm2, %v2787_v57  ;;  %7110 = vmatmul.mubr.bf16.gmra.mxu0 %v7287_v38 }
 0xd23   :  { %v3906_v4 = vpop.permute.xlu0 %3905 }
 0xd24   :  { %3994 = vst.msk [vmem:[#allocation2 + $0x20] sm:$0xf] %vm3985_vm3, %v3906_v4 }
 0xd25   :  { %v3908_v27 = vpop.permute.xlu1 %3907 }
 0xd26   :  { %3995 = vst.msk [vmem:[#allocation2 + $0x24] sm:$0xf] %vm3985_vm3, %v3908_v27 }
 0xd27   :  { %v3910_v39 = vpop.permute.xlu0 %3909 }
 0xd28   :  { %3996 = vst.msk [vmem:[#allocation2 + $0x28] sm:$0xf] %vm3985_vm3, %v3910_v39 }
 0xd29   :  { %v3912_v24 = vpop.permute.xlu1 %3911 }
 0xd2a   :  { %3997 = vst.msk [vmem:[#allocation2 + $0x2c] sm:$0xf] %vm3985_vm3, %v3912_v24 }
 0xd2b   :  { %v5031_v32 = vpop.permute.xlu0 %5030 }
 0xd2c   :  { %5119 = vst.msk [vmem:[#allocation2 + $0x20] sm:$0xf] %vm5110_vm4, %v5031_v32 }
 0xd2d   :  { %v5033_v59 = vpop.permute.xlu1 %5032 }
 0xd2e   :  { %5120 = vst.msk [vmem:[#allocation2 + $0x24] sm:$0xf] %vm5110_vm4, %v5033_v59 }
 0xd2f   :  { %v5035_v28 = vpop.permute.xlu0 %5034 }
 0xd30   :  { %5121 = vst.msk [vmem:[#allocation2 + $0x28] sm:$0xf] %vm5110_vm4, %v5035_v28 }
 0xd31   :  { %v5037_v19 = vpop.permute.xlu1 %5036 }
 0xd32   :  { %5122 = vst.msk [vmem:[#allocation2 + $0x2c] sm:$0xf] %vm5110_vm4, %v5037_v19 }
 0xd33   :  { %v2789_v25 = vpop.permute.xlu0 %2788 }
 0xd34   :  { %2873 = vst.msk [vmem:[#allocation2 + $0x30] sm:$0xf] %vm2860_vm2, %v2789_v25 }
 0xd35   :  { %v2791_v8 = vpop.permute.xlu1 %2790  ;;  %v7288_v52 = vld [vmem:[#allocation2 + $0x20] sm:$0xff]  }
 0xd36   :  { %2874 = vst.msk [vmem:[#allocation2 + $0x34] sm:$0xf] %vm2860_vm2, %v2791_v8  ;;  %7113 = vmatprep.mubr.bf16.mxu0 %v7288_v52 }
 0xd37   :  { %v2793_v18 = vpop.permute.xlu0 %2792 }
 0xd38   :  { %2875 = vst.msk [vmem:[#allocation2 + $0x38] sm:$0xf] %vm2860_vm2, %v2793_v18 }
 0xd39   :  { %v2795_v29 = vpop.permute.xlu1 %2794  ;;  %v7289_v15 = vld [vmem:[#allocation2 + $0x28] sm:$0xff]  }
 0xd3a   :  { %2876 = vst.msk [vmem:[#allocation2 + $0x3c] sm:$0xf] %vm2860_vm2, %v2795_v29  ;;  %7114 = vmatmul.mubr.bf16.gmra.mxu0 %v7289_v15 }
 0xd3b   :  { %v3914_v48 = vpop.permute.xlu0 %3913 }
 0xd3c   :  { %3998 = vst.msk [vmem:[#allocation2 + $0x30] sm:$0xf] %vm3985_vm3, %v3914_v48  ;;  %v10892_v48 = vld [vmem:[#allocation72_spill] sm:$0xff] }
 0xd3d   :  { %v3916_v23 = vpop.permute.xlu1 %3915 }
 0xd3e   :  { %3999 = vst.msk [vmem:[#allocation2 + $0x34] sm:$0xf] %vm3985_vm3, %v3916_v23  ;;  %v6064_v23 = vpack.c.bf16 %v10892_v48, %v10892_v48 }
 0xd3f   :  { %v3918_v0 = vpop.permute.xlu0 %3917 }
 0xd40   :  { %4000 = vst.msk [vmem:[#allocation2 + $0x38] sm:$0xf] %vm3985_vm3, %v3918_v0 }
 0xd41   :  { %v3920_v45 = vpop.permute.xlu1 %3919 }
 0xd42   :  { %4001 = vst.msk [vmem:[#allocation2 + $0x3c] sm:$0xf] %vm3985_vm3, %v3920_v45 }
 0xd45   :  { %v5039_v46 = vpop.permute.xlu0 %5038 }
 0xd46   :  { %5123 = vst.msk [vmem:[#allocation2 + $0x30] sm:$0xf] %vm5110_vm4, %v5039_v46 }
 0xd49   :  { %v5043_v30 = vpop.permute.xlu0 %5042  ;;  %v5041_v47 = vpop.permute.xlu1 %5040 }
 0xd4a   :  { %5125 = vst.msk [vmem:[#allocation2 + $0x38] sm:$0xf] %vm5110_vm4, %v5043_v30  ;;  %5124 = vst.msk [vmem:[#allocation2 + $0x34] sm:$0xf] %vm5110_vm4, %v5041_v47  ;;  %v10893_v47 = vld [vmem:[#allocation74_spill] sm:$0xff] }
 0xd4d   :  { %v2797_v16 = vpop.permute.xlu0 %2796  ;;  %v5045_v26 = vpop.permute.xlu1 %5044 }
 0xd4e   :  { %2877 = vst.msk [vmem:[#allocation2 + $0x40] sm:$0xf] %vm2860_vm2, %v2797_v16  ;;  %v6065_v16 = vpack.c.bf16 %v10893_v47, %v10893_v47 }
 0xd4f   :  { %5126 = vst.msk [vmem:[#allocation2 + $0x3c] sm:$0xf] %vm5110_vm4, %v5045_v26 }
 0xd51   :  { %v2801_v1 = vpop.permute.xlu0 %2800  ;;  %v2799_v54 = vpop.permute.xlu1 %2798  ;;  %v7290_v10 = vld [vmem:[#allocation2 + $0x30] sm:$0xff]  }
 0xd52   :  { %2879 = vst.msk [vmem:[#allocation2 + $0x48] sm:$0xf] %vm2860_vm2, %v2801_v1  ;;  %2878 = vst.msk [vmem:[#allocation2 + $0x44] sm:$0xf] %vm2860_vm2, %v2799_v54  ;;  %7117 = vmatprep.mubr.bf16.mxu0 %v7290_v10  ;;  %v10467_v1 = vld [vmem:[%s10534_s4] ss:$0 sm:$0xff] }
 0xd53   :  { %s7908_s4 = smov [#allocation9]  }
 0xd54   :  { %s5668_s14 = sshll.u32 %s7908_s4, 4  ;;  %s5669_s14 = int_to_ptr.vmem [resolvable:$true] %s5668_s14 }
 0xd55   :  { %v3922_v53 = vpop.permute.xlu0 %3921  ;;  %v2803_v21 = vpop.permute.xlu1 %2802  ;;  %s7872_s15 = scalar_lea.vmem %s5669_s14, 2048  ;;  %p7877_p2 = scmp.lt.s32.totalorder %s5669_s14, %s5669_s14 }
 0xd56   :  { %v7291_v42 = vld [vmem:[#allocation2 + $0x38] sm:$0xff]   ;;  %4002 = vst.msk [vmem:[#allocation2 + $0x40] sm:$0xf] %vm3985_vm3, %v3922_v53  ;;  %p7873_p1 = scmp.ne.s32.totalorder %s5669_s14, %s7872_s15  ;;  %p7878_p3 = scmp.lt.s32.totalorder %s7872_s15, %s7872_s15 }
 0xd57   :  { %2880 = vst.msk [vmem:[#allocation2 + $0x4c] sm:$0xf] %vm2860_vm2, %v2803_v21  ;;  %7118 = vmatmul.mubr.bf16.gmra.mxu0 %v7291_v42 }
 0xd58   :  { %p7879_p4 = por %p7878_p3, %p7877_p2 }
 0xd59   :  { %v3926_v55 = vpop.permute.xlu0 %3925  ;;  %v3924_v5 = vpop.permute.xlu1 %3923 }
 0xd5a   :  { %4004 = vst.msk [vmem:[#allocation2 + $0x48] sm:$0xf] %vm3985_vm3, %v3926_v55  ;;  %4003 = vst.msk [vmem:[#allocation2 + $0x44] sm:$0xf] %vm3985_vm3, %v3924_v5  ;;  %p7880_p5 = pnand %p7879_p4, %p7873_p1 }
 0xd5d   :  { %v2805_v56 = vpop.permute.xlu0 %2804  ;;  %v3928_v11 = vpop.permute.xlu1 %3927 }
 0xd5e   :  { %2881 = vst.msk [vmem:[#allocation2 + $0x50] sm:$0xf] %vm2860_vm2, %v2805_v56 }
 0xd5f   :  { %4005 = vst.msk [vmem:[#allocation2 + $0x4c] sm:$0xf] %vm3985_vm3, %v3928_v11 }
 0xd61   :  { %v2809_v3 = vpop.permute.xlu0 %2808  ;;  %v2807_v61 = vpop.permute.xlu1 %2806 }
 0xd62   :  { %2883 = vst.msk [vmem:[#allocation2 + $0x58] sm:$0xf] %vm2860_vm2, %v2809_v3  ;;  %2882 = vst.msk [vmem:[#allocation2 + $0x54] sm:$0xf] %vm2860_vm2, %v2807_v61 }
 0xd65   :  { %v3930_v13 = vpop.permute.xlu0 %3929  ;;  %v2811_v49 = vpop.permute.xlu1 %2810 }
 0xd66   :  { %4006 = vst.msk [vmem:[#allocation2 + $0x50] sm:$0xf] %vm3985_vm3, %v3930_v13 }
 0xd67   :  { %2884 = vst.msk [vmem:[#allocation2 + $0x5c] sm:$0xf] %vm2860_vm2, %v2811_v49 }
 0xd69   :  { %v3934_v35 = vpop.permute.xlu0 %3933  ;;  %v3932_v58 = vpop.permute.xlu1 %3931 }
 0xd6a   :  { %4008 = vst.msk [vmem:[#allocation2 + $0x58] sm:$0xf] %vm3985_vm3, %v3934_v35  ;;  %4007 = vst.msk [vmem:[#allocation2 + $0x54] sm:$0xf] %vm3985_vm3, %v3932_v58 }
 0xd6d   :  { %v2813_v41 = vpop.permute.xlu0 %2812  ;;  %v3936_v2 = vpop.permute.xlu1 %3935 }
 0xd6e   :  { %2885 = vst.msk [vmem:[#allocation2 + $0x60] sm:$0xf] %vm2860_vm2, %v2813_v41 }
 0xd6f   :  { %4009 = vst.msk [vmem:[#allocation2 + $0x5c] sm:$0xf] %vm3985_vm3, %v3936_v2 }
 0xd71   :  { %v2817_v6 = vpop.permute.xlu0 %2816  ;;  %v2815_v7 = vpop.permute.xlu1 %2814 }
 0xd72   :  { %2887 = vst.msk [vmem:[#allocation2 + $0x68] sm:$0xf] %vm2860_vm2, %v2817_v6  ;;  %2886 = vst.msk [vmem:[#allocation2 + $0x64] sm:$0xf] %vm2860_vm2, %v2815_v7 }
 0xd75   :  { %v3938_v22 = vpop.permute.xlu0 %3937  ;;  %v2819_v34 = vpop.permute.xlu1 %2818 }
 0xd76   :  { %4010 = vst.msk [vmem:[#allocation2 + $0x60] sm:$0xf] %vm3985_vm3, %v3938_v22 }
 0xd77   :  { %2888 = vst.msk [vmem:[#allocation2 + $0x6c] sm:$0xf] %vm2860_vm2, %v2819_v34 }
 0xd79   :  { %v3942_v31 = vpop.permute.xlu0 %3941  ;;  %v3940_v50 = vpop.permute.xlu1 %3939 }
 0xd7a   :  { %4012 = vst.msk [vmem:[#allocation2 + $0x68] sm:$0xf] %vm3985_vm3, %v3942_v31  ;;  %4011 = vst.msk [vmem:[#allocation2 + $0x64] sm:$0xf] %vm3985_vm3, %v3940_v50 }
 0xd7d   :  { %v2821_v60 = vpop.permute.xlu0 %2820  ;;  %v3944_v43 = vpop.permute.xlu1 %3943 }
 0xd7e   :  { %2889 = vst.msk [vmem:[#allocation2 + $0x70] sm:$0xf] %vm2860_vm2, %v2821_v60 }
 0xd7f   :  { %4013 = vst.msk [vmem:[#allocation2 + $0x6c] sm:$0xf] %vm3985_vm3, %v3944_v43 }
 0xd81   :  { %v2825_v17 = vpop.permute.xlu0 %2824  ;;  %v2823_v40 = vpop.permute.xlu1 %2822 }
 0xd82   :  { %2891 = vst.msk [vmem:[#allocation2 + $0x78] sm:$0xf] %vm2860_vm2, %v2825_v17  ;;  %2890 = vst.msk [vmem:[#allocation2 + $0x74] sm:$0xf] %vm2860_vm2, %v2823_v40 }
 0xd85   :  { %v3946_v37 = vpop.permute.xlu0 %3945  ;;  %v2827_v12 = vpop.permute.xlu1 %2826 }
 0xd86   :  { %4014 = vst.msk [vmem:[#allocation2 + $0x70] sm:$0xf] %vm3985_vm3, %v3946_v37 }
 0xd87   :  { %2892 = vst.msk [vmem:[#allocation2 + $0x7c] sm:$0xf] %vm2860_vm2, %v2827_v12 }
 0xd89   :  { %v3948_v36 = vpop.permute.xlu1 %3947 }
 0xd8a   :  { %4015 = vst.msk [vmem:[#allocation2 + $0x74] sm:$0xf] %vm3985_vm3, %v3948_v36 }
 0xdb0   :  { %v7075_v20 = vpop.f32.mrf.mxu1 }
 0xdb1   :  { %v6084_v44 = vpack.c.bf16 %v7075_v20, %v7075_v20 }
 0xdb2   :  { %v4855_v33 = vpop.f32.mrf.mxu1 }
 0xdb3   :  { %5050 = vrot.lane.b32.xlu0 %v6084_v44, %s7906_s2  ;;  %v6082_v9 = vpack.c.bf16 %v4855_v33, %v4855_v33 }
 0xdb4   :  { %v7076_v62 = vpop.f32.mrf.mxu1 }
 0xdb5   :  { %v6085_v51 = vpack.c.bf16 %v7076_v62, %v7076_v62 }
 0xdb6   :  { %v4858_v14 = vpop.f32.mrf.mxu1 }
 0xdb7   :  { %5046 = vrot.lane.b32.xlu0 %v6082_v9, %s7906_s2  ;;  %5052 = vrot.lane.b32.xlu1 %v6085_v51, %s7906_s2  ;;  %v6083_v57 = vpack.c.bf16 %v4858_v14, %v4858_v14 }
 0xdb8   :  { %v7079_v63 = vpop.f32.mrf.mxu1 }
 0xdb9   :  { %v6088_v38 = vpack.c.bf16 %v7079_v63, %v7079_v63 }
 0xdba   :  { %v4871_v4 = vpop.f32.mrf.mxu1 }
 0xdbb   :  { %5048 = vrot.lane.b32.xlu1 %v6083_v57, %s7906_s2  ;;  %5058 = vrot.lane.b32.xlu0 %v6088_v38, %s7906_s2  ;;  %v6086_v39 = vpack.c.bf16 %v4871_v4, %v4871_v4 }
 0xdbc   :  { %v7080_v27 = vpop.f32.mrf.mxu1 }
 0xdbd   :  { %v6089_v24 = vpack.c.bf16 %v7080_v27, %v7080_v27 }
 0xdbe   :  { %v4874_v32 = vpop.f32.mrf.mxu1 }
 0xdbf   :  { %5054 = vrot.lane.b32.xlu0 %v6086_v39, %s7906_s2  ;;  %5060 = vrot.lane.b32.xlu1 %v6089_v24, %s7906_s2  ;;  %v6087_v28 = vpack.c.bf16 %v4874_v32, %v4874_v32 }
 0xdc0   :  { %v7083_v59 = vpop.f32.mrf.mxu1 }
 0xdc1   :  { %v6092_v19 = vpack.c.bf16 %v7083_v59, %v7083_v59 }
 0xdc2   :  { %v4887_v25 = vpop.f32.mrf.mxu1 }
 0xdc3   :  { %5056 = vrot.lane.b32.xlu1 %v6087_v28, %s7906_s2  ;;  %5066 = vrot.lane.b32.xlu0 %v6092_v19, %s7906_s2  ;;  %v6090_v52 = vpack.c.bf16 %v4887_v25, %v4887_v25 }
 0xdc4   :  { %v7084_v8 = vpop.f32.mrf.mxu1 }
 0xdc5   :  { %v6093_v18 = vpack.c.bf16 %v7084_v8, %v7084_v8 }
 0xdc6   :  { %v4890_v29 = vpop.f32.mrf.mxu1 }
 0xdc7   :  { %5062 = vrot.lane.b32.xlu0 %v6090_v52, %s7906_s2  ;;  %5068 = vrot.lane.b32.xlu1 %v6093_v18, %s7906_s2  ;;  %v6091_v0 = vpack.c.bf16 %v4890_v29, %v4890_v29 }
 0xdc8   :  { %v7087_v15 = vpop.f32.mrf.mxu1 }
 0xdc9   :  { %v6096_v21 = vpack.c.bf16 %v7087_v15, %v7087_v15 }
 0xdca   :  { %v4903_v45 = vpop.f32.mrf.mxu1  ;;  %v7107_v30 = vpop.f32.mrf.mxu0 }
 0xdcb   :  { %3949 = vrot.lane.b32.xlu0 %v6064_v23, %s7902_s28  ;;  %5064 = vrot.lane.b32.xlu1 %v6091_v0, %s7906_s2  ;;  %v6094_v26 = vpack.c.bf16 %v4903_v45, %v4903_v45  ;;  %v5385_v42 = vadd.f32 %v7107_v30, %v10467_v1 }
 0xdcc   :  { %v7088_v46 = vpop.f32.mrf.mxu1  ;;  %v5376_v10 = vpop.f32.mrf.mxu0 }
 0xdcd   :  { %v5377_v11 = vadd.f32 %v10467_v1, %v5376_v10  ;;  %v6097_v13 = vpack.c.bf16 %v7088_v46, %v7088_v46 }
 0xdce   :  { %v4906_v54 = vpop.f32.mrf.mxu1  ;;  %v7108_v53 = vpop.f32.mrf.mxu0 }
 0xdcf   :  { %3951 = vrot.lane.b32.xlu1 %v6065_v16, %s7902_s28  ;;  %5070 = vrot.lane.b32.xlu0 %v6094_v26, %s7906_s2  ;;  %v6095_v55 = vpack.c.bf16 %v4906_v54, %v4906_v54  ;;  %v5388_v5 = vadd.f32 %v7108_v53, %v10467_v1 }
 0xdd0   :  { %v5379_v56 = vpop.f32.mrf.mxu0 }
 0xdd1   :  { %v6138_v3 = vpack.c.bf16 %v5388_v5, %v5385_v42  ;;  %v5380_v61 = vadd.f32 %v10467_v1, %v5379_v56 }
 0xdd3   :  { %5074 = vrot.lane.b32.xlu0 %v6096_v21, %s7906_s2  ;;  %5072 = vrot.lane.b32.xlu1 %v6095_v55, %s7906_s2  ;;  %6210 = vst [vmem:[#allocation9 + $0x8] sm:$0xff] %v6138_v3   ;;  %v6133_v49 = vpack.c.bf16 %v5380_v61, %v5377_v11 }
 0xdd5   :  { %6134 = vst [vmem:[#allocation9] sm:$0xff] %v6133_v49  }
 0xdd7   :  { %5076 = vrot.lane.b32.xlu1 %v6097_v13, %s7906_s2 }
 0xde2   :  { %v7111_v35 = vpop.f32.mrf.mxu0 }
 0xde3   :  { %v5401_v2 = vadd.f32 %v7111_v35, %v10467_v1 }
 0xde4   :  { %v5392_v58 = vpop.f32.mrf.mxu0 }
 0xde5   :  { %v5393_v22 = vadd.f32 %v10467_v1, %v5392_v58 }
 0xde6   :  { %v7112_v41 = vpop.f32.mrf.mxu0 }
 0xde7   :  { %v5404_v6 = vadd.f32 %v7112_v41, %v10467_v1 }
 0xde8   :  { %v5395_v7 = vpop.f32.mrf.mxu0 }
 0xde9   :  { %v6148_v34 = vpack.c.bf16 %v5404_v6, %v5401_v2  ;;  %v5396_v31 = vadd.f32 %v10467_v1, %v5395_v7 }
 0xdeb   :  { %6212 = vst [vmem:[#allocation9 + $0x18] sm:$0xff] %v6148_v34   ;;  %v6143_v50 = vpack.c.bf16 %v5396_v31, %v5393_v22 }
 0xded   :  { %6211 = vst [vmem:[#allocation9 + $0x10] sm:$0xff] %v6143_v50  }
 0xdfa   :  { %v7115_v60 = vpop.f32.mrf.mxu0 }
 0xdfb   :  { %v5417_v40 = vadd.f32 %v7115_v60, %v10467_v1 }
 0xdfc   :  { %v5408_v43 = vpop.f32.mrf.mxu0 }
 0xdfd   :  { %v5409_v36 = vadd.f32 %v10467_v1, %v5408_v43 }
 0xdfe   :  { %v7116_v17 = vpop.f32.mrf.mxu0 }
 0xdff   :  { %v5420_v37 = vadd.f32 %v7116_v17, %v10467_v1 }
 0xe00   :  { %v5411_v12 = vpop.f32.mrf.mxu0 }
 0xe01   :  { %v6158_v20 = vpack.c.bf16 %v5420_v37, %v5417_v40  ;;  %v5412_v44 = vadd.f32 %v10467_v1, %v5411_v12 }
 0xe03   :  { %6214 = vst [vmem:[#allocation9 + $0x28] sm:$0xff] %v6158_v20   ;;  %v6153_v33 = vpack.c.bf16 %v5412_v44, %v5409_v36 }
 0xe05   :  { %6213 = vst [vmem:[#allocation9 + $0x20] sm:$0xff] %v6153_v33  }
 0xe17   :  { %v7119_v62 = vpop.f32.mrf.mxu0 }
 0xe18   :  { %v5433_v14 = vadd.f32 %v7119_v62, %v10467_v1 }
 0xe19   :  { %v5424_v9 = vpop.f32.mrf.mxu0 }
 0xe1a   :  { %v5425_v38 = vadd.f32 %v10467_v1, %v5424_v9 }
 0xe1b   :  { %v7120_v51 = vpop.f32.mrf.mxu0 }
 0xe1c   :  { %v5436_v63 = vadd.f32 %v7120_v51, %v10467_v1 }
 0xe1d   :  { %v5427_v57 = vpop.f32.mrf.mxu0 }
 0xe1e   :  { %v6168_v4 = vpack.c.bf16 %v5436_v63, %v5433_v14  ;;  %v5428_v27 = vadd.f32 %v10467_v1, %v5427_v57 }
 0xe20   :  { %6216 = vst [vmem:[#allocation9 + $0x38] sm:$0xff] %v6168_v4   ;;  %v6163_v39 = vpack.c.bf16 %v5428_v27, %v5425_v38 }
 0xe22   :  { %6215 = vst [vmem:[#allocation9 + $0x30] sm:$0xff] %v6163_v39  }
 0xe25   :  { %v5051_v24 = vpop.permute.xlu0 %5050 }
 0xe26   :  { %5129 = vst.msk [vmem:[#allocation2 + $0x48] sm:$0xf] %vm5110_vm4, %v5051_v24 }
 0xe29   :  { %v5047_v32 = vpop.permute.xlu0 %5046  ;;  %v5053_v59 = vpop.permute.xlu1 %5052 }
 0xe2a   :  { %5127 = vst.msk [vmem:[#allocation2 + $0x40] sm:$0xf] %vm5110_vm4, %v5047_v32  ;;  %5130 = vst.msk [vmem:[#allocation2 + $0x4c] sm:$0xf] %vm5110_vm4, %v5053_v59 }
 0xe2d   :  { %v5059_v28 = vpop.permute.xlu0 %5058  ;;  %v5049_v19 = vpop.permute.xlu1 %5048 }
 0xe2e   :  { %5133 = vst.msk [vmem:[#allocation2 + $0x58] sm:$0xf] %vm5110_vm4, %v5059_v28  ;;  %5128 = vst.msk [vmem:[#allocation2 + $0x44] sm:$0xf] %vm5110_vm4, %v5049_v19 }
 0xe31   :  { %v5055_v25 = vpop.permute.xlu0 %5054  ;;  %v5061_v8 = vpop.permute.xlu1 %5060  ;;  %v7293_v15 = vld [vmem:[#allocation2 + $0x48] sm:$0xff]  }
 0xe32   :  { %5131 = vst.msk [vmem:[#allocation2 + $0x50] sm:$0xf] %vm5110_vm4, %v5055_v25  ;;  %5134 = vst.msk [vmem:[#allocation2 + $0x5c] sm:$0xf] %vm5110_vm4, %v5061_v8 }
 0xe35   :  { %v5067_v52 = vpop.permute.xlu0 %5066  ;;  %v5057_v18 = vpop.permute.xlu1 %5056  ;;  %v7292_v29 = vld [vmem:[#allocation2 + $0x40] sm:$0xff]  }
 0xe36   :  { %5137 = vst.msk [vmem:[#allocation2 + $0x68] sm:$0xf] %vm5110_vm4, %v5067_v52  ;;  %5132 = vst.msk [vmem:[#allocation2 + $0x54] sm:$0xf] %vm5110_vm4, %v5057_v18  ;;  %7121 = vmatprep.mubr.bf16.mxu0 %v7292_v29 }
 0xe37   :  { %7122 = vmatmul.mubr.bf16.gmra.mxu0 %v7293_v15 }
 0xe39   :  { %v5063_v48 = vpop.permute.xlu0 %5062  ;;  %v5069_v23 = vpop.permute.xlu1 %5068  ;;  %v7295_v30 = vld [vmem:[#allocation2 + $0x58] sm:$0xff]  }
 0xe3a   :  { %5135 = vst.msk [vmem:[#allocation2 + $0x60] sm:$0xf] %vm5110_vm4, %v5063_v48  ;;  %5138 = vst.msk [vmem:[#allocation2 + $0x6c] sm:$0xf] %vm5110_vm4, %v5069_v23 }
 0xe3d   :  { %v3950_v0 = vpop.permute.xlu0 %3949  ;;  %v5065_v45 = vpop.permute.xlu1 %5064  ;;  %v7294_v46 = vld [vmem:[#allocation2 + $0x50] sm:$0xff]  }
 0xe3e   :  { %4016 = vst.msk [vmem:[#allocation2 + $0x78] sm:$0xf] %vm3985_vm3, %v3950_v0  ;;  %7125 = vmatprep.mubr.bf16.mxu0 %v7294_v46 }
 0xe3f   :  { %5136 = vst.msk [vmem:[#allocation2 + $0x64] sm:$0xf] %vm5110_vm4, %v5065_v45  ;;  %7126 = vmatmul.mubr.bf16.gmra.mxu0 %v7295_v30 }
 0xe41   :  { %v5071_v47 = vpop.permute.xlu0 %5070  ;;  %v3952_v16 = vpop.permute.xlu1 %3951  ;;  %v7297_v53 = vld [vmem:[#allocation2 + $0x68] sm:$0xff]  }
 0xe42   :  { %5139 = vst.msk [vmem:[#allocation2 + $0x70] sm:$0xf] %vm5110_vm4, %v5071_v47 }
 0xe43   :  { %4017 = vst.msk [vmem:[#allocation2 + $0x7c] sm:$0xf] %vm3985_vm3, %v3952_v16 }
 0xe45   :  { %v5075_v26 = vpop.permute.xlu0 %5074  ;;  %v5073_v54 = vpop.permute.xlu1 %5072 }
 0xe46   :  { %v7296_v10 = vld [vmem:[#allocation2 + $0x60] sm:$0xff]   ;;  %5141 = vst.msk [vmem:[#allocation2 + $0x78] sm:$0xf] %vm5110_vm4, %v5075_v26  ;;  %5140 = vst.msk [vmem:[#allocation2 + $0x74] sm:$0xf] %vm5110_vm4, %v5073_v54 }
 0xe47   :  { %7129 = vmatprep.mubr.bf16.mxu0 %v7296_v10 }
 0xe48   :  { %7130 = vmatmul.mubr.bf16.gmra.mxu0 %v7297_v53 }
 0xe49   :  { %v5077_v21 = vpop.permute.xlu1 %5076 }
 0xe4a   :  { %5142 = vst.msk [vmem:[#allocation2 + $0x7c] sm:$0xf] %vm5110_vm4, %v5077_v21 }
 0xe4d   :  { %v7298_v42 = vld [vmem:[#allocation2 + $0x70] sm:$0xff]  }
 0xe4e   :  { %7133 = vmatprep.mubr.bf16.mxu0 %v7298_v42 }
 0xe51   :  { %v7299_v55 = vld [vmem:[#allocation2 + $0x78] sm:$0xff]  }
 0xe52   :  { %7134 = vmatmul.mubr.bf16.gmra.mxu0 %v7299_v55 }
 0xef7   :  { %v7123_v5 = vpop.f32.mrf.mxu0 }
 0xef8   :  { %v5449_v3 = vadd.f32 %v7123_v5, %v10467_v1 }
 0xef9   :  { %v5440_v56 = vpop.f32.mrf.mxu0 }
 0xefa   :  { %v5441_v49 = vadd.f32 %v10467_v1, %v5440_v56 }
 0xefb   :  { %v7124_v11 = vpop.f32.mrf.mxu0 }
 0xefc   :  { %v5452_v61 = vadd.f32 %v7124_v11, %v10467_v1 }
 0xefd   :  { %v5443_v13 = vpop.f32.mrf.mxu0 }
 0xefe   :  { %v6178_v35 = vpack.c.bf16 %v5452_v61, %v5449_v3  ;;  %v5444_v58 = vadd.f32 %v10467_v1, %v5443_v13 }
 0xeff   :  { %v7127_v41 = vpop.f32.mrf.mxu0 }
 0xf00   :  { %6218 = vst [vmem:[#allocation9 + $0x48] sm:$0xff] %v6178_v35   ;;  %v6173_v2 = vpack.c.bf16 %v5444_v58, %v5441_v49  ;;  %v5465_v22 = vadd.f32 %v7127_v41, %v10467_v1 }
 0xf01   :  { %v5456_v6 = vpop.f32.mrf.mxu0 }
 0xf02   :  { %6217 = vst [vmem:[#allocation9 + $0x40] sm:$0xff] %v6173_v2   ;;  %v5457_v50 = vadd.f32 %v10467_v1, %v5456_v6 }
 0xf03   :  { %v7128_v7 = vpop.f32.mrf.mxu0 }
 0xf04   :  { %v5468_v34 = vadd.f32 %v7128_v7, %v10467_v1 }
 0xf05   :  { %v5459_v31 = vpop.f32.mrf.mxu0 }
 0xf06   :  { %v6188_v60 = vpack.c.bf16 %v5468_v34, %v5465_v22  ;;  %v5460_v43 = vadd.f32 %v10467_v1, %v5459_v31 }
 0xf08   :  { %v7131_v17 = vpop.f32.mrf.mxu0  ;;  %6220 = vst [vmem:[#allocation9 + $0x58] sm:$0xff] %v6188_v60   ;;  %v6183_v40 = vpack.c.bf16 %v5460_v43, %v5457_v50 }
 0xf09   :  { %v5481_v36 = vadd.f32 %v7131_v17, %v10467_v1 }
 0xf0a   :  { %v5472_v37 = vpop.f32.mrf.mxu0  ;;  %6219 = vst [vmem:[#allocation9 + $0x50] sm:$0xff] %v6183_v40  }
 0xf0b   :  { %v5473_v33 = vadd.f32 %v10467_v1, %v5472_v37 }
 0xf0c   :  { %v7132_v12 = vpop.f32.mrf.mxu0 }
 0xf0d   :  { %v5484_v20 = vadd.f32 %v7132_v12, %v10467_v1 }
 0xf0e   :  { %v5475_v44 = vpop.f32.mrf.mxu0 }
 0xf0f   :  { %v6198_v62 = vpack.c.bf16 %v5484_v20, %v5481_v36  ;;  %v5476_v9 = vadd.f32 %v10467_v1, %v5475_v44 }
 0xf11   :  { %6222 = vst [vmem:[#allocation9 + $0x68] sm:$0xff] %v6198_v62   ;;  %v6193_v51 = vpack.c.bf16 %v5476_v9, %v5473_v33 }
 0xf12   :  { %v7135_v14 = vpop.f32.mrf.mxu0 }
 0xf13   :  { %6221 = vst [vmem:[#allocation9 + $0x60] sm:$0xff] %v6193_v51   ;;  %v5497_v38 = vadd.f32 %v7135_v14, %v10467_v1 }
 0xf14   :  { %v5488_v63 = vpop.f32.mrf.mxu0 }
 0xf15   :  { %v5489_v39 = vadd.f32 %v10467_v1, %v5488_v63 }
 0xf16   :  { %v7136_v57 = vpop.f32.mrf.mxu0 }
 0xf17   :  { %v5500_v4 = vadd.f32 %v7136_v57, %v10467_v1 }
 0xf18   :  { %v5491_v27 = vpop.f32.mrf.mxu0 }
 0xf19   :  { %v6208_v24 = vpack.c.bf16 %v5500_v4, %v5497_v38  ;;  %v5492_v32 = vadd.f32 %v10467_v1, %v5491_v27 }
 0xf1b   :  { %6224 = vst [vmem:[#allocation9 + $0x78] sm:$0xff] %v6208_v24   ;;  %v6203_v59 = vpack.c.bf16 %v5492_v32, %v5489_v39 }
 0xf1d   :  { %6223 = vst [vmem:[#allocation9 + $0x70] sm:$0xff] %v6203_v59  }
 0xf1e   :  { %7883 = shalt.err (!%p7880_p5)
}
 0xf1f   :  { %5674 = dma.vmem_to_hbm [thread:$0]  %s5669_s14, 2048, %s10535_s5, [#allocation5], %s7902_s28, %s7902_s28, %s7903_s29  }
 0xf20   :  { %7896 = dma.done.wait [#allocation5], 2048  }
 0xf21   :  { %7897 = vsyncadd [#allocation5], 4294965248 }
 0xf22   :  { %5678 = vsyncpa [#allocation4], 1 }
 0xf23   :  { %5679 = vsyncpa [#allocation7], 1 }
 0xf24   :  { %5680 = vsyncpa [#allocation5], 1 }

</bundles_post_ra>
